<compile_context>
chip_gen: v6e
topology: v6e:2x2x1
jax: 0.10.0
libtpu: 0.0.40
codegen_flags: <defaults>
</compile_context>

<pallas_src>
import functools

import jax
import jax.numpy as jnp
from jax.experimental import pallas as pl
from jax.experimental.pallas import tpu as pltpu

NO_FEATURE = 5
N_HIDDEN = 128
N_CLASS = 7
DROPOUT_P = 0.3
OUT_PAD = 128          # lane-dense head width (real logits = first N_CLASS)
FEAT_PAD = 128         # lane-dense padded feature dim


def _sigmoid(x):
    # Single EUP op per gate (instead of exp + add + reciprocal).
    return 0.5 * jnp.tanh(0.5 * x) + 0.5


def _lstm_cell(gates, c):
    """PyTorch gate order i, f, g, o.  All element-wise math in f32."""
    H = c.shape[-1]
    i_g = _sigmoid(gates[:, 0 * H:1 * H])
    f_g = _sigmoid(gates[:, 1 * H:2 * H])
    g_g = jnp.tanh(gates[:, 2 * H:3 * H])
    o_g = _sigmoid(gates[:, 3 * H:4 * H])
    c_new = f_g * c + i_g * g_g
    h_new = o_g * jnp.tanh(c_new)
    return h_new, c_new


# ----------------------------------------------------------------------------
# Fused kernel: LSTM layer 0 + layer 1 (interleaved) -> dropout -> Linear head
# ----------------------------------------------------------------------------
def fused_lstm_kernel(x_ref, wih0_ref, b0_ref, wpack_ref, b1_ref,
                      wout_ref, bout_ref, mask_ref, o_ref, gx_sc,
                      *, T, BP, H):
    """x_ref: (T*BP, FEAT_PAD) bf16, time-major flattened (row t*BP + b == (t, b)).

    gx_sc: VMEM scratch (T*BP, 4H) f32 holding the hoisted layer-0 input
    projection so only one (BP, 2H)@(2H, 8H) matmul remains per super-step.
    """
    # ---- hoisted layer-0 input projection: one big matmul, f32 accumulate --
    gx_sc[...] = (jnp.dot(x_ref[...], wih0_ref[...],
                          preferred_element_type=jnp.float32) + b0_ref[...])

    b1 = b1_ref[...]                                          # (1, 4H) f32

    # ---- layer-0 timestep 0 (zero initial state => gates are just gx0[0]) --
    h0, c0 = _lstm_cell(gx_sc[0:BP, :], jnp.zeros((BP, H), jnp.float32))
    h1 = jnp.zeros((BP, H), jnp.float32)
    c1 = jnp.zeros((BP, H), jnp.float32)

    # ---- T interleaved super-steps: ONE (BP,2H)@(2H,8H) matmul each --------
    #   fused[:, :4H] = h0_t @ W_hh0                       (layer-0 rec, step t+1)
    #   fused[:, 4H:] = h0_t @ W_ih1 + h1_{t-1} @ W_hh1    (layer-1 gates, step t)
    # Static unroll: T is small and known at trace time.
    # TODO(synk): for large / dynamic T switch to lax.fori_loop(..., unroll=k)
    # and stream gx0 in time chunks (v7x 64 MiB VMEM ceiling).
    for t in range(T):
        lhs = jnp.concatenate([h0, h1], axis=-1).astype(jnp.bfloat16)    # (BP, 2H)
        fused = jnp.dot(lhs, wpack_ref[...],
                        preferred_element_type=jnp.float32)              # (BP, 8H)
        h1, c1 = _lstm_cell(fused[:, 4 * H:] + b1, c1)                   # layer 1, step t
        if t + 1 < T:                                                    # layer 0, step t+1
            h0, c0 = _lstm_cell(
                gx_sc[(t + 1) * BP:(t + 2) * BP, :] + fused[:, :4 * H], c0)

    # ---- fused head: dropout (p=0.3, training-mode scaling) + Linear -------
    h_drop = (h1 * mask_ref[...]).astype(jnp.bfloat16)
    o_ref[...] = (jnp.dot(h_drop, wout_ref[...],
                          preferred_element_type=jnp.float32) + bout_ref[...])


# ----------------------------------------------------------------------------
# Wrapper: one gridless pallas_call, all operands resident in VMEM.
# ----------------------------------------------------------------------------
def _dropout_mask(key, B, H):
    # TODO(synk): F.dropout uses PyTorch's RNG stream; mask here comes from
    # jax.random (same p=0.3 training-mode scaling by 1/0.7).
    keep = jax.random.bernoulli(key, 1.0 - DROPOUT_P, (B, H))
    return keep.astype(jnp.float32) * (1.0 / (1.0 - DROPOUT_P))


@jax.jit
def lstm_forward(x_btf, params, dropout_key):
    """x_btf: (B, T, F) batch_first input, like the PyTorch module."""
    x = x_btf.astype(jnp.float32)
    B, T, F = x.shape
    H = N_HIDDEN
    C = N_CLASS
    BP = max(8, -(-B // 8) * 8)        # sublane-pad batch to a multiple of 8

    # Batch-pad, lane-pad features, time-major flatten: row t*BP + b == (t, b).
    x_pad = jnp.zeros((BP, T, FEAT_PAD), jnp.float32).at[:B, :, :F].set(x)
    x_flat = (jnp.transpose(x_pad, (1, 0, 2))
              .reshape(T * BP, FEAT_PAD).astype(jnp.bfloat16))

    # bf16 MXU operands; f32 biases (added after the f32 accumulate).
    wih0 = (jnp.zeros((FEAT_PAD, 4 * H), jnp.float32)
            .at[:F].set(params["w_ih0"].T).astype(jnp.bfloat16))         # (128, 4H)
    b0 = (params["b_ih0"] + params["b_hh0"]).reshape(1, 4 * H).astype(jnp.float32)
    whh0 = params["w_hh0"].T.astype(jnp.float32)                         # (H, 4H)
    wih1 = params["w_ih1"].T.astype(jnp.float32)                         # (H, 4H)
    whh1 = params["w_hh1"].T.astype(jnp.float32)                         # (H, 4H)
    # Packed recurrent weight for the interleaved super-step:
    #   [h0_t, h1_{t-1}] @ [[W_hh0, W_ih1], [0, W_hh1]]
    wpack = jnp.concatenate(
        [jnp.concatenate([whh0, wih1], axis=1),
         jnp.concatenate([jnp.zeros((H, 4 * H), jnp.float32), whh1], axis=1)],
        axis=0).astype(jnp.bfloat16)                                     # (2H, 8H)
    b1 = (params["b_ih1"] + params["b_hh1"]).reshape(1, 4 * H).astype(jnp.float32)

    # Lane-dense padded head (real logits in the first C columns).
    wout = (jnp.zeros((H, OUT_PAD), jnp.float32)
            .at[:, :C].set(params["w_out"].T).astype(jnp.bfloat16))
    bout = (jnp.zeros((1, OUT_PAD), jnp.float32)
            .at[:, :C].set(params["b_out"].reshape(1, C)))

    mask = (jnp.zeros((BP, H), jnp.float32)
            .at[:B].set(_dropout_mask(dropout_key, B, H)))

    kernel = functools.partial(fused_lstm_kernel, T=T, BP=BP, H=H)
    vmem_spec = pl.BlockSpec(memory_space=pltpu.MemorySpace.VMEM)

    # TODO(synk): if B grows beyond a few sublanes, add a leading batch grid
    # axis with dimension_semantics=("parallel",) so both v7x TensorCores run.
    out = pl.pallas_call(
        kernel,
        out_shape=jax.ShapeDtypeStruct((BP, OUT_PAD), jnp.float32),
        in_specs=[vmem_spec] * 8,
        out_specs=vmem_spec,
        scratch_shapes=[pltpu.VMEM((T * BP, 4 * H), jnp.float32)],   # layer-0 gx
    )(x_flat, wih0, b0, wpack, b1, wout, bout, mask)
    return out[:B, :C]


# ----------------------------------------------------------------------------
# Pure-JAX reference (for a correctness sanity check)
# ----------------------------------------------------------------------------
def _reference_forward(x_btf, params, dropout_mask):
    x = jnp.transpose(x_btf.astype(jnp.float32), (1, 0, 2))      # (T, B, F)
    H = N_HIDDEN

    def run_layer(inp, w_ih, w_hh, b_ih, b_hh):
        B = inp.shape[1]

        def step(carry, x_t):
            h, c = carry
            g = (jnp.dot(x_t, w_ih.T, precision=jax.lax.Precision.HIGHEST)
                 + jnp.dot(h, w_hh.T, precision=jax.lax.Precision.HIGHEST)
                 + b_ih + b_hh)
            i_g = jax.nn.sigmoid(g[:, 0 * H:1 * H])
            f_g = jax.nn.sigmoid(g[:, 1 * H:2 * H])
            g_g = jnp.tanh(g[:, 2 * H:3 * H])
            o_g = jax.nn.sigmoid(g[:, 3 * H:4 * H])
            c = f_g * c + i_g * g_g
            h = o_g * jnp.tanh(c)
            return (h, c), h

        init = (jnp.zeros((B, H), jnp.float32), jnp.zeros((B, H), jnp.float32))
        _, hs = jax.lax.scan(step, init, inp)
        return hs

    h0 = run_layer(x, params["w_ih0"], params["w_hh0"],
                   params["b_ih0"], params["b_hh0"])
    h1 = run_layer(h0, params["w_ih1"], params["w_hh1"],
                   params["b_ih1"], params["b_hh1"])
    h_drop = h1[-1] * dropout_mask
    return (jnp.dot(h_drop, params["w_out"].T,
                    precision=jax.lax.Precision.HIGHEST) + params["b_out"])


# ----------------------------------------------------------------------------
# Parameter init (deterministic, PyTorch-style uniform(-1/sqrt(H), 1/sqrt(H)))
# ----------------------------------------------------------------------------
def init_params(key, no_feature=NO_FEATURE, n_hidden=N_HIDDEN, n_class=N_CLASS):
    k = 1.0 / jnp.sqrt(jnp.float32(n_hidden))
    keys = jax.random.split(key, 10)
    u = lambda kk, shape: jax.random.uniform(kk, shape, jnp.float32, -k, k)
    return {
        "w_ih0": u(keys[0], (4 * n_hidden, no_feature)),
        "w_hh0": u(keys[1], (4 * n_hidden, n_hidden)),
        "b_ih0": u(keys[2], (4 * n_hidden,)),
        "b_hh0": u(keys[3], (4 * n_hidden,)),
        "w_ih1": u(keys[4], (4 * n_hidden, n_hidden)),
        "w_hh1": u(keys[5], (4 * n_hidden, n_hidden)),
        "b_ih1": u(keys[6], (4 * n_hidden,)),
        "b_hh1": u(keys[7], (4 * n_hidden,)),
        "w_out": u(keys[8], (n_class, n_hidden)),
        "b_out": u(keys[9], (n_class,)),
    }


if __name__ == "__main__":
    B, T = 2, 8
    key = jax.random.PRNGKey(0)
    k_x, k_p, k_drop = jax.random.split(key, 3)

    x = jax.random.normal(k_x, (B, T, NO_FEATURE), jnp.float32)
    params = init_params(k_p)

    out = lstm_forward(x, params, k_drop)
    jax.block_until_ready(out)
    assert out.shape == (B, N_CLASS) and out.dtype == jnp.float32

    ref = _reference_forward(x, params, _dropout_mask(k_drop, B, N_HIDDEN))
    err = float(jnp.max(jnp.abs(out - ref)))
    assert jnp.allclose(out, ref, rtol=2e-2, atol=2e-2), err

    print("KERNEL_OK")
</pallas_src>

<mosaic_0001>
module attributes {stable_mosaic.version = 11 : i64} {
  func.func @fused_lstm_kernel(%arg0: memref<64x128xbf16, #tpu.memory_space<vmem>>, %arg1: memref<128x512xbf16, #tpu.memory_space<vmem>>, %arg2: memref<1x512xf32, #tpu.memory_space<vmem>>, %arg3: memref<256x1024xbf16, #tpu.memory_space<vmem>>, %arg4: memref<1x512xf32, #tpu.memory_space<vmem>>, %arg5: memref<128x128xbf16, #tpu.memory_space<vmem>>, %arg6: memref<1x128xf32, #tpu.memory_space<vmem>>, %arg7: memref<8x128xf32, #tpu.memory_space<vmem>>, %arg8: memref<8x128xf32, #tpu.memory_space<vmem>>, %arg9: memref<64x512xf32, #tpu.memory_space<vmem>>) attributes {dimension_semantics = [], scalar_prefetch = 0 : i64, scratch_operands = 1 : i64, tpu.core_type = #tpu.core_type<tc>} {
    %c0 = arith.constant 0 : index
    %c0_0 = arith.constant 0 : index
    %0 = vector.load %arg0[%c0, %c0_0] : memref<64x128xbf16, #tpu.memory_space<vmem>>, vector<64x128xbf16>
    %c0_1 = arith.constant 0 : index
    %c0_2 = arith.constant 0 : index
    %1 = vector.load %arg1[%c0_1, %c0_2] : memref<128x512xbf16, #tpu.memory_space<vmem>>, vector<128x512xbf16>
    %cst = arith.constant dense<0.000000e+00> : vector<64x512xf32>
    %2 = tpu.matmul %0, %1, %cst {dimension_numbers = #tpu.dot_dimension_numbers<[1], [0], [0], [1], [0, 0, 1, 1], [], []>} : vector<64x128xbf16>, vector<128x512xbf16>, vector<64x512xf32> -> vector<64x512xf32>
    %c0_3 = arith.constant 0 : index
    %c0_4 = arith.constant 0 : index
    %3 = vector.load %arg2[%c0_3, %c0_4] : memref<1x512xf32, #tpu.memory_space<vmem>>, vector<1x512xf32>
    %4 = vector.broadcast %3 : vector<1x512xf32> to vector<64x512xf32>
    %5 = arith.addf %2, %4 : vector<64x512xf32>
    %c0_5 = arith.constant 0 : index
    %c0_6 = arith.constant 0 : index
    %6 = vector.load %arg9[%c0_5, %c0_6] : memref<64x512xf32, #tpu.memory_space<vmem>>, vector<64x512xf32>
    tpu.vector_store %arg9[%c0_5, %c0_6], %5 {strides = array<i32>} : memref<64x512xf32, #tpu.memory_space<vmem>>, vector<64x512xf32>,
    %c0_7 = arith.constant 0 : index
    %c0_8 = arith.constant 0 : index
    %7 = vector.load %arg4[%c0_7, %c0_8] : memref<1x512xf32, #tpu.memory_space<vmem>>, vector<1x512xf32>
    %c0_9 = arith.constant 0 : index
    %c0_10 = arith.constant 0 : index
    %8 = vector.load %arg9[%c0_9, %c0_10] : memref<64x512xf32, #tpu.memory_space<vmem>>, vector<8x512xf32>
    %cst_11 = arith.constant 0.000000e+00 : f32
    %9 = vector.broadcast %cst_11 : f32 to vector<8x128xf32>
    %10 = vector.extract_strided_slice %8 {offsets = [0, 0], sizes = [8, 128], strides = [1, 1]} : vector<8x512xf32> to vector<8x128xf32>
    %cst_12 = arith.constant 5.000000e-01 : f32
    %11 = vector.broadcast %cst_12 : f32 to vector<8x128xf32>
    %12 = arith.mulf %11, %10 : vector<8x128xf32>
    %13 = math.tanh %12 : vector<8x128xf32>
    %cst_13 = arith.constant 5.000000e-01 : f32
    %14 = vector.broadcast %cst_13 : f32 to vector<8x128xf32>
    %15 = arith.mulf %14, %13 : vector<8x128xf32>
    %cst_14 = arith.constant 5.000000e-01 : f32
    %16 = vector.broadcast %cst_14 : f32 to vector<8x128xf32>
    %17 = arith.addf %15, %16 : vector<8x128xf32>
    %18 = vector.extract_strided_slice %8 {offsets = [0, 128], sizes = [8, 128], strides = [1, 1]} : vector<8x512xf32> to vector<8x128xf32>
    %cst_15 = arith.constant 5.000000e-01 : f32
    %19 = vector.broadcast %cst_15 : f32 to vector<8x128xf32>
    %20 = arith.mulf %19, %18 : vector<8x128xf32>
    %21 = math.tanh %20 : vector<8x128xf32>
    %cst_16 = arith.constant 5.000000e-01 : f32
    %22 = vector.broadcast %cst_16 : f32 to vector<8x128xf32>
    %23 = arith.mulf %22, %21 : vector<8x128xf32>
    %cst_17 = arith.constant 5.000000e-01 : f32
    %24 = vector.broadcast %cst_17 : f32 to vector<8x128xf32>
    %25 = arith.addf %23, %24 : vector<8x128xf32>
    %26 = vector.extract_strided_slice %8 {offsets = [0, 256], sizes = [8, 128], strides = [1, 1]} : vector<8x512xf32> to vector<8x128xf32>
    %27 = math.tanh %26 : vector<8x128xf32>
    %28 = vector.extract_strided_slice %8 {offsets = [0, 384], sizes = [8, 128], strides = [1, 1]} : vector<8x512xf32> to vector<8x128xf32>
    %cst_18 = arith.constant 5.000000e-01 : f32
    %29 = vector.broadcast %cst_18 : f32 to vector<8x128xf32>
    %30 = arith.mulf %29, %28 : vector<8x128xf32>
    %31 = math.tanh %30 : vector<8x128xf32>
    %cst_19 = arith.constant 5.000000e-01 : f32
    %32 = vector.broadcast %cst_19 : f32 to vector<8x128xf32>
    %33 = arith.mulf %32, %31 : vector<8x128xf32>
    %cst_20 = arith.constant 5.000000e-01 : f32
    %34 = vector.broadcast %cst_20 : f32 to vector<8x128xf32>
    %35 = arith.addf %33, %34 : vector<8x128xf32>
    %36 = arith.mulf %25, %9 : vector<8x128xf32>
    %37 = arith.mulf %17, %27 : vector<8x128xf32>
    %38 = arith.addf %36, %37 : vector<8x128xf32>
    %39 = math.tanh %38 : vector<8x128xf32>
    %40 = arith.mulf %35, %39 : vector<8x128xf32>
    %cst_21 = arith.constant 0.000000e+00 : f32
    %41 = vector.broadcast %cst_21 : f32 to vector<8x128xf32>
    %cst_22 = arith.constant 0.000000e+00 : f32
    %42 = vector.broadcast %cst_22 : f32 to vector<8x128xf32>
    %43 = tpu.concatenate %40, %41 in 1 : vector<8x128xf32>, vector<8x128xf32> -> vector<8x256xf32>
    %44 = arith.truncf %43 : vector<8x256xf32> to vector<8x256xbf16>
    %c0_23 = arith.constant 0 : index
    %c0_24 = arith.constant 0 : index
    %45 = vector.load %arg3[%c0_23, %c0_24] : memref<256x1024xbf16, #tpu.memory_space<vmem>>, vector<256x1024xbf16>
    %cst_25 = arith.constant dense<0.000000e+00> : vector<8x1024xf32>
    %46 = tpu.matmul %44, %45, %cst_25 {dimension_numbers = #tpu.dot_dimension_numbers<[1], [0], [0], [1], [0, 0, 1, 1], [], []>} : vector<8x256xbf16>, vector<256x1024xbf16>, vector<8x1024xf32> -> vector<8x1024xf32>
    %47 = vector.extract_strided_slice %46 {offsets = [0, 512], sizes = [8, 512], strides = [1, 1]} : vector<8x1024xf32> to vector<8x512xf32>
    %48 = vector.broadcast %7 : vector<1x512xf32> to vector<8x512xf32>
    %49 = arith.addf %47, %48 : vector<8x512xf32>
    %50 = vector.extract_strided_slice %49 {offsets = [0, 0], sizes = [8, 128], strides = [1, 1]} : vector<8x512xf32> to vector<8x128xf32>
    %cst_26 = arith.constant 5.000000e-01 : f32
    %51 = vector.broadcast %cst_26 : f32 to vector<8x128xf32>
    %52 = arith.mulf %51, %50 : vector<8x128xf32>
    %53 = math.tanh %52 : vector<8x128xf32>
    %cst_27 = arith.constant 5.000000e-01 : f32
    %54 = vector.broadcast %cst_27 : f32 to vector<8x128xf32>
    %55 = arith.mulf %54, %53 : vector<8x128xf32>
    %cst_28 = arith.constant 5.000000e-01 : f32
    %56 = vector.broadcast %cst_28 : f32 to vector<8x128xf32>
    %57 = arith.addf %55, %56 : vector<8x128xf32>
    %58 = vector.extract_strided_slice %49 {offsets = [0, 128], sizes = [8, 128], strides = [1, 1]} : vector<8x512xf32> to vector<8x128xf32>
    %cst_29 = arith.constant 5.000000e-01 : f32
    %59 = vector.broadcast %cst_29 : f32 to vector<8x128xf32>
    %60 = arith.mulf %59, %58 : vector<8x128xf32>
    %61 = math.tanh %60 : vector<8x128xf32>
    %cst_30 = arith.constant 5.000000e-01 : f32
    %62 = vector.broadcast %cst_30 : f32 to vector<8x128xf32>
    %63 = arith.mulf %62, %61 : vector<8x128xf32>
    %cst_31 = arith.constant 5.000000e-01 : f32
    %64 = vector.broadcast %cst_31 : f32 to vector<8x128xf32>
    %65 = arith.addf %63, %64 : vector<8x128xf32>
    %66 = vector.extract_strided_slice %49 {offsets = [0, 256], sizes = [8, 128], strides = [1, 1]} : vector<8x512xf32> to vector<8x128xf32>
    %67 = math.tanh %66 : vector<8x128xf32>
    %68 = vector.extract_strided_slice %49 {offsets = [0, 384], sizes = [8, 128], strides = [1, 1]} : vector<8x512xf32> to vector<8x128xf32>
    %cst_32 = arith.constant 5.000000e-01 : f32
    %69 = vector.broadcast %cst_32 : f32 to vector<8x128xf32>
    %70 = arith.mulf %69, %68 : vector<8x128xf32>
    %71 = math.tanh %70 : vector<8x128xf32>
    %cst_33 = arith.constant 5.000000e-01 : f32
    %72 = vector.broadcast %cst_33 : f32 to vector<8x128xf32>
    %73 = arith.mulf %72, %71 : vector<8x128xf32>
    %cst_34 = arith.constant 5.000000e-01 : f32
    %74 = vector.broadcast %cst_34 : f32 to vector<8x128xf32>
    %75 = arith.addf %73, %74 : vector<8x128xf32>
    %76 = arith.mulf %65, %42 : vector<8x128xf32>
    %77 = arith.mulf %57, %67 : vector<8x128xf32>
    %78 = arith.addf %76, %77 : vector<8x128xf32>
    %79 = math.tanh %78 : vector<8x128xf32>
    %80 = arith.mulf %75, %79 : vector<8x128xf32>
    %c8 = arith.constant 8 : index
    %c0_35 = arith.constant 0 : index
    %81 = vector.load %arg9[%c8, %c0_35] : memref<64x512xf32, #tpu.memory_space<vmem>>, vector<8x512xf32>
    %82 = vector.extract_strided_slice %46 {offsets = [0, 0], sizes = [8, 512], strides = [1, 1]} : vector<8x1024xf32> to vector<8x512xf32>
    %83 = arith.addf %81, %82 : vector<8x512xf32>
    %84 = vector.extract_strided_slice %83 {offsets = [0, 0], sizes = [8, 128], strides = [1, 1]} : vector<8x512xf32> to vector<8x128xf32>
    %cst_36 = arith.constant 5.000000e-01 : f32
    %85 = vector.broadcast %cst_36 : f32 to vector<8x128xf32>
    %86 = arith.mulf %85, %84 : vector<8x128xf32>
    %87 = math.tanh %86 : vector<8x128xf32>
    %cst_37 = arith.constant 5.000000e-01 : f32
    %88 = vector.broadcast %cst_37 : f32 to vector<8x128xf32>
    %89 = arith.mulf %88, %87 : vector<8x128xf32>
    %cst_38 = arith.constant 5.000000e-01 : f32
    %90 = vector.broadcast %cst_38 : f32 to vector<8x128xf32>
    %91 = arith.addf %89, %90 : vector<8x128xf32>
    %92 = vector.extract_strided_slice %83 {offsets = [0, 128], sizes = [8, 128], strides = [1, 1]} : vector<8x512xf32> to vector<8x128xf32>
    %cst_39 = arith.constant 5.000000e-01 : f32
    %93 = vector.broadcast %cst_39 : f32 to vector<8x128xf32>
    %94 = arith.mulf %93, %92 : vector<8x128xf32>
    %95 = math.tanh %94 : vector<8x128xf32>
    %cst_40 = arith.constant 5.000000e-01 : f32
    %96 = vector.broadcast %cst_40 : f32 to vector<8x128xf32>
    %97 = arith.mulf %96, %95 : vector<8x128xf32>
    %cst_41 = arith.constant 5.000000e-01 : f32
    %98 = vector.broadcast %cst_41 : f32 to vector<8x128xf32>
    %99 = arith.addf %97, %98 : vector<8x128xf32>
    %100 = vector.extract_strided_slice %83 {offsets = [0, 256], sizes = [8, 128], strides = [1, 1]} : vector<8x512xf32> to vector<8x128xf32>
    %101 = math.tanh %100 : vector<8x128xf32>
    %102 = vector.extract_strided_slice %83 {offsets = [0, 384], sizes = [8, 128], strides = [1, 1]} : vector<8x512xf32> to vector<8x128xf32>
    %cst_42 = arith.constant 5.000000e-01 : f32
    %103 = vector.broadcast %cst_42 : f32 to vector<8x128xf32>
    %104 = arith.mulf %103, %102 : vector<8x128xf32>
    %105 = math.tanh %104 : vector<8x128xf32>
    %cst_43 = arith.constant 5.000000e-01 : f32
    %106 = vector.broadcast %cst_43 : f32 to vector<8x128xf32>
    %107 = arith.mulf %106, %105 : vector<8x128xf32>
    %cst_44 = arith.constant 5.000000e-01 : f32
    %108 = vector.broadcast %cst_44 : f32 to vector<8x128xf32>
    %109 = arith.addf %107, %108 : vector<8x128xf32>
    %110 = arith.mulf %99, %38 : vector<8x128xf32>
    %111 = arith.mulf %91, %101 : vector<8x128xf32>
    %112 = arith.addf %110, %111 : vector<8x128xf32>
    %113 = math.tanh %112 : vector<8x128xf32>
    %114 = arith.mulf %109, %113 : vector<8x128xf32>
    %115 = tpu.concatenate %114, %80 in 1 : vector<8x128xf32>, vector<8x128xf32> -> vector<8x256xf32>
    %116 = arith.truncf %115 : vector<8x256xf32> to vector<8x256xbf16>
    %c0_45 = arith.constant 0 : index
    %c0_46 = arith.constant 0 : index
    %117 = vector.load %arg3[%c0_45, %c0_46] : memref<256x1024xbf16, #tpu.memory_space<vmem>>, vector<256x1024xbf16>
    %cst_47 = arith.constant dense<0.000000e+00> : vector<8x1024xf32>
    %118 = tpu.matmul %116, %117, %cst_47 {dimension_numbers = #tpu.dot_dimension_numbers<[1], [0], [0], [1], [0, 0, 1, 1], [], []>} : vector<8x256xbf16>, vector<256x1024xbf16>, vector<8x1024xf32> -> vector<8x1024xf32>
    %119 = vector.extract_strided_slice %118 {offsets = [0, 512], sizes = [8, 512], strides = [1, 1]} : vector<8x1024xf32> to vector<8x512xf32>
    %120 = vector.broadcast %7 : vector<1x512xf32> to vector<8x512xf32>
    %121 = arith.addf %119, %120 : vector<8x512xf32>
    %122 = vector.extract_strided_slice %121 {offsets = [0, 0], sizes = [8, 128], strides = [1, 1]} : vector<8x512xf32> to vector<8x128xf32>
    %cst_48 = arith.constant 5.000000e-01 : f32
    %123 = vector.broadcast %cst_48 : f32 to vector<8x128xf32>
    %124 = arith.mulf %123, %122 : vector<8x128xf32>
    %125 = math.tanh %124 : vector<8x128xf32>
    %cst_49 = arith.constant 5.000000e-01 : f32
    %126 = vector.broadcast %cst_49 : f32 to vector<8x128xf32>
    %127 = arith.mulf %126, %125 : vector<8x128xf32>
    %cst_50 = arith.constant 5.000000e-01 : f32
    %128 = vector.broadcast %cst_50 : f32 to vector<8x128xf32>
    %129 = arith.addf %127, %128 : vector<8x128xf32>
    %130 = vector.extract_strided_slice %121 {offsets = [0, 128], sizes = [8, 128], strides = [1, 1]} : vector<8x512xf32> to vector<8x128xf32>
    %cst_51 = arith.constant 5.000000e-01 : f32
    %131 = vector.broadcast %cst_51 : f32 to vector<8x128xf32>
    %132 = arith.mulf %131, %130 : vector<8x128xf32>
    %133 = math.tanh %132 : vector<8x128xf32>
    %cst_52 = arith.constant 5.000000e-01 : f32
    %134 = vector.broadcast %cst_52 : f32 to vector<8x128xf32>
    %135 = arith.mulf %134, %133 : vector<8x128xf32>
    %cst_53 = arith.constant 5.000000e-01 : f32
    %136 = vector.broadcast %cst_53 : f32 to vector<8x128xf32>
    %137 = arith.addf %135, %136 : vector<8x128xf32>
    %138 = vector.extract_strided_slice %121 {offsets = [0, 256], sizes = [8, 128], strides = [1, 1]} : vector<8x512xf32> to vector<8x128xf32>
    %139 = math.tanh %138 : vector<8x128xf32>
    %140 = vector.extract_strided_slice %121 {offsets = [0, 384], sizes = [8, 128], strides = [1, 1]} : vector<8x512xf32> to vector<8x128xf32>
    %cst_54 = arith.constant 5.000000e-01 : f32
    %141 = vector.broadcast %cst_54 : f32 to vector<8x128xf32>
    %142 = arith.mulf %141, %140 : vector<8x128xf32>
    %143 = math.tanh %142 : vector<8x128xf32>
    %cst_55 = arith.constant 5.000000e-01 : f32
    %144 = vector.broadcast %cst_55 : f32 to vector<8x128xf32>
    %145 = arith.mulf %144, %143 : vector<8x128xf32>
    %cst_56 = arith.constant 5.000000e-01 : f32
    %146 = vector.broadcast %cst_56 : f32 to vector<8x128xf32>
    %147 = arith.addf %145, %146 : vector<8x128xf32>
    %148 = arith.mulf %137, %78 : vector<8x128xf32>
    %149 = arith.mulf %129, %139 : vector<8x128xf32>
    %150 = arith.addf %148, %149 : vector<8x128xf32>
    %151 = math.tanh %150 : vector<8x128xf32>
    %152 = arith.mulf %147, %151 : vector<8x128xf32>
    %c16 = arith.constant 16 : index
    %c0_57 = arith.constant 0 : index
    %153 = vector.load %arg9[%c16, %c0_57] : memref<64x512xf32, #tpu.memory_space<vmem>>, vector<8x512xf32>
    %154 = vector.extract_strided_slice %118 {offsets = [0, 0], sizes = [8, 512], strides = [1, 1]} : vector<8x1024xf32> to vector<8x512xf32>
    %155 = arith.addf %153, %154 : vector<8x512xf32>
    %156 = vector.extract_strided_slice %155 {offsets = [0, 0], sizes = [8, 128], strides = [1, 1]} : vector<8x512xf32> to vector<8x128xf32>
    %cst_58 = arith.constant 5.000000e-01 : f32
    %157 = vector.broadcast %cst_58 : f32 to vector<8x128xf32>
    %158 = arith.mulf %157, %156 : vector<8x128xf32>
    %159 = math.tanh %158 : vector<8x128xf32>
    %cst_59 = arith.constant 5.000000e-01 : f32
    %160 = vector.broadcast %cst_59 : f32 to vector<8x128xf32>
    %161 = arith.mulf %160, %159 : vector<8x128xf32>
    %cst_60 = arith.constant 5.000000e-01 : f32
    %162 = vector.broadcast %cst_60 : f32 to vector<8x128xf32>
    %163 = arith.addf %161, %162 : vector<8x128xf32>
    %164 = vector.extract_strided_slice %155 {offsets = [0, 128], sizes = [8, 128], strides = [1, 1]} : vector<8x512xf32> to vector<8x128xf32>
    %cst_61 = arith.constant 5.000000e-01 : f32
    %165 = vector.broadcast %cst_61 : f32 to vector<8x128xf32>
    %166 = arith.mulf %165, %164 : vector<8x128xf32>
    %167 = math.tanh %166 : vector<8x128xf32>
    %cst_62 = arith.constant 5.000000e-01 : f32
    %168 = vector.broadcast %cst_62 : f32 to vector<8x128xf32>
    %169 = arith.mulf %168, %167 : vector<8x128xf32>
    %cst_63 = arith.constant 5.000000e-01 : f32
    %170 = vector.broadcast %cst_63 : f32 to vector<8x128xf32>
    %171 = arith.addf %169, %170 : vector<8x128xf32>
    %172 = vector.extract_strided_slice %155 {offsets = [0, 256], sizes = [8, 128], strides = [1, 1]} : vector<8x512xf32> to vector<8x128xf32>
    %173 = math.tanh %172 : vector<8x128xf32>
    %174 = vector.extract_strided_slice %155 {offsets = [0, 384], sizes = [8, 128], strides = [1, 1]} : vector<8x512xf32> to vector<8x128xf32>
    %cst_64 = arith.constant 5.000000e-01 : f32
    %175 = vector.broadcast %cst_64 : f32 to vector<8x128xf32>
    %176 = arith.mulf %175, %174 : vector<8x128xf32>
    %177 = math.tanh %176 : vector<8x128xf32>
    %cst_65 = arith.constant 5.000000e-01 : f32
    %178 = vector.broadcast %cst_65 : f32 to vector<8x128xf32>
    %179 = arith.mulf %178, %177 : vector<8x128xf32>
    %cst_66 = arith.constant 5.000000e-01 : f32
    %180 = vector.broadcast %cst_66 : f32 to vector<8x128xf32>
    %181 = arith.addf %179, %180 : vector<8x128xf32>
    %182 = arith.mulf %171, %112 : vector<8x128xf32>
    %183 = arith.mulf %163, %173 : vector<8x128xf32>
    %184 = arith.addf %182, %183 : vector<8x128xf32>
    %185 = math.tanh %184 : vector<8x128xf32>
    %186 = arith.mulf %181, %185 : vector<8x128xf32>
    %187 = tpu.concatenate %186, %152 in 1 : vector<8x128xf32>, vector<8x128xf32> -> vector<8x256xf32>
    %188 = arith.truncf %187 : vector<8x256xf32> to vector<8x256xbf16>
    %c0_67 = arith.constant 0 : index
    %c0_68 = arith.constant 0 : index
    %189 = vector.load %arg3[%c0_67, %c0_68] : memref<256x1024xbf16, #tpu.memory_space<vmem>>, vector<256x1024xbf16>
    %cst_69 = arith.constant dense<0.000000e+00> : vector<8x1024xf32>
    %190 = tpu.matmul %188, %189, %cst_69 {dimension_numbers = #tpu.dot_dimension_numbers<[1], [0], [0], [1], [0, 0, 1, 1], [], []>} : vector<8x256xbf16>, vector<256x1024xbf16>, vector<8x1024xf32> -> vector<8x1024xf32>
    %191 = vector.extract_strided_slice %190 {offsets = [0, 512], sizes = [8, 512], strides = [1, 1]} : vector<8x1024xf32> to vector<8x512xf32>
    %192 = vector.broadcast %7 : vector<1x512xf32> to vector<8x512xf32>
    %193 = arith.addf %191, %192 : vector<8x512xf32>
    %194 = vector.extract_strided_slice %193 {offsets = [0, 0], sizes = [8, 128], strides = [1, 1]} : vector<8x512xf32> to vector<8x128xf32>
    %cst_70 = arith.constant 5.000000e-01 : f32
    %195 = vector.broadcast %cst_70 : f32 to vector<8x128xf32>
    %196 = arith.mulf %195, %194 : vector<8x128xf32>
    %197 = math.tanh %196 : vector<8x128xf32>
    %cst_71 = arith.constant 5.000000e-01 : f32
    %198 = vector.broadcast %cst_71 : f32 to vector<8x128xf32>
    %199 = arith.mulf %198, %197 : vector<8x128xf32>
    %cst_72 = arith.constant 5.000000e-01 : f32
    %200 = vector.broadcast %cst_72 : f32 to vector<8x128xf32>
    %201 = arith.addf %199, %200 : vector<8x128xf32>
    %202 = vector.extract_strided_slice %193 {offsets = [0, 128], sizes = [8, 128], strides = [1, 1]} : vector<8x512xf32> to vector<8x128xf32>
    %cst_73 = arith.constant 5.000000e-01 : f32
    %203 = vector.broadcast %cst_73 : f32 to vector<8x128xf32>
    %204 = arith.mulf %203, %202 : vector<8x128xf32>
    %205 = math.tanh %204 : vector<8x128xf32>
    %cst_74 = arith.constant 5.000000e-01 : f32
    %206 = vector.broadcast %cst_74 : f32 to vector<8x128xf32>
    %207 = arith.mulf %206, %205 : vector<8x128xf32>
    %cst_75 = arith.constant 5.000000e-01 : f32
    %208 = vector.broadcast %cst_75 : f32 to vector<8x128xf32>
    %209 = arith.addf %207, %208 : vector<8x128xf32>
    %210 = vector.extract_strided_slice %193 {offsets = [0, 256], sizes = [8, 128], strides = [1, 1]} : vector<8x512xf32> to vector<8x128xf32>
    %211 = math.tanh %210 : vector<8x128xf32>
    %212 = vector.extract_strided_slice %193 {offsets = [0, 384], sizes = [8, 128], strides = [1, 1]} : vector<8x512xf32> to vector<8x128xf32>
    %cst_76 = arith.constant 5.000000e-01 : f32
    %213 = vector.broadcast %cst_76 : f32 to vector<8x128xf32>
    %214 = arith.mulf %213, %212 : vector<8x128xf32>
    %215 = math.tanh %214 : vector<8x128xf32>
    %cst_77 = arith.constant 5.000000e-01 : f32
    %216 = vector.broadcast %cst_77 : f32 to vector<8x128xf32>
    %217 = arith.mulf %216, %215 : vector<8x128xf32>
    %cst_78 = arith.constant 5.000000e-01 : f32
    %218 = vector.broadcast %cst_78 : f32 to vector<8x128xf32>
    %219 = arith.addf %217, %218 : vector<8x128xf32>
    %220 = arith.mulf %209, %150 : vector<8x128xf32>
    %221 = arith.mulf %201, %211 : vector<8x128xf32>
    %222 = arith.addf %220, %221 : vector<8x128xf32>
    %223 = math.tanh %222 : vector<8x128xf32>
    %224 = arith.mulf %219, %223 : vector<8x128xf32>
    %c24 = arith.constant 24 : index
    %c0_79 = arith.constant 0 : index
    %225 = vector.load %arg9[%c24, %c0_79] : memref<64x512xf32, #tpu.memory_space<vmem>>, vector<8x512xf32>
    %226 = vector.extract_strided_slice %190 {offsets = [0, 0], sizes = [8, 512], strides = [1, 1]} : vector<8x1024xf32> to vector<8x512xf32>
    %227 = arith.addf %225, %226 : vector<8x512xf32>
    %228 = vector.extract_strided_slice %227 {offsets = [0, 0], sizes = [8, 128], strides = [1, 1]} : vector<8x512xf32> to vector<8x128xf32>
    %cst_80 = arith.constant 5.000000e-01 : f32
    %229 = vector.broadcast %cst_80 : f32 to vector<8x128xf32>
    %230 = arith.mulf %229, %228 : vector<8x128xf32>
    %231 = math.tanh %230 : vector<8x128xf32>
    %cst_81 = arith.constant 5.000000e-01 : f32
    %232 = vector.broadcast %cst_81 : f32 to vector<8x128xf32>
    %233 = arith.mulf %232, %231 : vector<8x128xf32>
    %cst_82 = arith.constant 5.000000e-01 : f32
    %234 = vector.broadcast %cst_82 : f32 to vector<8x128xf32>
    %235 = arith.addf %233, %234 : vector<8x128xf32>
    %236 = vector.extract_strided_slice %227 {offsets = [0, 128], sizes = [8, 128], strides = [1, 1]} : vector<8x512xf32> to vector<8x128xf32>
    %cst_83 = arith.constant 5.000000e-01 : f32
    %237 = vector.broadcast %cst_83 : f32 to vector<8x128xf32>
    %238 = arith.mulf %237, %236 : vector<8x128xf32>
    %239 = math.tanh %238 : vector<8x128xf32>
    %cst_84 = arith.constant 5.000000e-01 : f32
    %240 = vector.broadcast %cst_84 : f32 to vector<8x128xf32>
    %241 = arith.mulf %240, %239 : vector<8x128xf32>
    %cst_85 = arith.constant 5.000000e-01 : f32
    %242 = vector.broadcast %cst_85 : f32 to vector<8x128xf32>
    %243 = arith.addf %241, %242 : vector<8x128xf32>
    %244 = vector.extract_strided_slice %227 {offsets = [0, 256], sizes = [8, 128], strides = [1, 1]} : vector<8x512xf32> to vector<8x128xf32>
    %245 = math.tanh %244 : vector<8x128xf32>
    %246 = vector.extract_strided_slice %227 {offsets = [0, 384], sizes = [8, 128], strides = [1, 1]} : vector<8x512xf32> to vector<8x128xf32>
    %cst_86 = arith.constant 5.000000e-01 : f32
    %247 = vector.broadcast %cst_86 : f32 to vector<8x128xf32>
    %248 = arith.mulf %247, %246 : vector<8x128xf32>
    %249 = math.tanh %248 : vector<8x128xf32>
    %cst_87 = arith.constant 5.000000e-01 : f32
    %250 = vector.broadcast %cst_87 : f32 to vector<8x128xf32>
    %251 = arith.mulf %250, %249 : vector<8x128xf32>
    %cst_88 = arith.constant 5.000000e-01 : f32
    %252 = vector.broadcast %cst_88 : f32 to vector<8x128xf32>
    %253 = arith.addf %251, %252 : vector<8x128xf32>
    %254 = arith.mulf %243, %184 : vector<8x128xf32>
    %255 = arith.mulf %235, %245 : vector<8x128xf32>
    %256 = arith.addf %254, %255 : vector<8x128xf32>
    %257 = math.tanh %256 : vector<8x128xf32>
    %258 = arith.mulf %253, %257 : vector<8x128xf32>
    %259 = tpu.concatenate %258, %224 in 1 : vector<8x128xf32>, vector<8x128xf32> -> vector<8x256xf32>
    %260 = arith.truncf %259 : vector<8x256xf32> to vector<8x256xbf16>
    %c0_89 = arith.constant 0 : index
    %c0_90 = arith.constant 0 : index
    %261 = vector.load %arg3[%c0_89, %c0_90] : memref<256x1024xbf16, #tpu.memory_space<vmem>>, vector<256x1024xbf16>
    %cst_91 = arith.constant dense<0.000000e+00> : vector<8x1024xf32>
    %262 = tpu.matmul %260, %261, %cst_91 {dimension_numbers = #tpu.dot_dimension_numbers<[1], [0], [0], [1], [0, 0, 1, 1], [], []>} : vector<8x256xbf16>, vector<256x1024xbf16>, vector<8x1024xf32> -> vector<8x1024xf32>
    %263 = vector.extract_strided_slice %262 {offsets = [0, 512], sizes = [8, 512], strides = [1, 1]} : vector<8x1024xf32> to vector<8x512xf32>
    %264 = vector.broadcast %7 : vector<1x512xf32> to vector<8x512xf32>
    %265 = arith.addf %263, %264 : vector<8x512xf32>
    %266 = vector.extract_strided_slice %265 {offsets = [0, 0], sizes = [8, 128], strides = [1, 1]} : vector<8x512xf32> to vector<8x128xf32>
    %cst_92 = arith.constant 5.000000e-01 : f32
    %267 = vector.broadcast %cst_92 : f32 to vector<8x128xf32>
    %268 = arith.mulf %267, %266 : vector<8x128xf32>
    %269 = math.tanh %268 : vector<8x128xf32>
    %cst_93 = arith.constant 5.000000e-01 : f32
    %270 = vector.broadcast %cst_93 : f32 to vector<8x128xf32>
    %271 = arith.mulf %270, %269 : vector<8x128xf32>
    %cst_94 = arith.constant 5.000000e-01 : f32
    %272 = vector.broadcast %cst_94 : f32 to vector<8x128xf32>
    %273 = arith.addf %271, %272 : vector<8x128xf32>
    %274 = vector.extract_strided_slice %265 {offsets = [0, 128], sizes = [8, 128], strides = [1, 1]} : vector<8x512xf32> to vector<8x128xf32>
    %cst_95 = arith.constant 5.000000e-01 : f32
    %275 = vector.broadcast %cst_95 : f32 to vector<8x128xf32>
    %276 = arith.mulf %275, %274 : vector<8x128xf32>
    %277 = math.tanh %276 : vector<8x128xf32>
    %cst_96 = arith.constant 5.000000e-01 : f32
    %278 = vector.broadcast %cst_96 : f32 to vector<8x128xf32>
    %279 = arith.mulf %278, %277 : vector<8x128xf32>
    %cst_97 = arith.constant 5.000000e-01 : f32
    %280 = vector.broadcast %cst_97 : f32 to vector<8x128xf32>
    %281 = arith.addf %279, %280 : vector<8x128xf32>
    %282 = vector.extract_strided_slice %265 {offsets = [0, 256], sizes = [8, 128], strides = [1, 1]} : vector<8x512xf32> to vector<8x128xf32>
    %283 = math.tanh %282 : vector<8x128xf32>
    %284 = vector.extract_strided_slice %265 {offsets = [0, 384], sizes = [8, 128], strides = [1, 1]} : vector<8x512xf32> to vector<8x128xf32>
    %cst_98 = arith.constant 5.000000e-01 : f32
    %285 = vector.broadcast %cst_98 : f32 to vector<8x128xf32>
    %286 = arith.mulf %285, %284 : vector<8x128xf32>
    %287 = math.tanh %286 : vector<8x128xf32>
    %cst_99 = arith.constant 5.000000e-01 : f32
    %288 = vector.broadcast %cst_99 : f32 to vector<8x128xf32>
    %289 = arith.mulf %288, %287 : vector<8x128xf32>
    %cst_100 = arith.constant 5.000000e-01 : f32
    %290 = vector.broadcast %cst_100 : f32 to vector<8x128xf32>
    %291 = arith.addf %289, %290 : vector<8x128xf32>
    %292 = arith.mulf %281, %222 : vector<8x128xf32>
    %293 = arith.mulf %273, %283 : vector<8x128xf32>
    %294 = arith.addf %292, %293 : vector<8x128xf32>
    %295 = math.tanh %294 : vector<8x128xf32>
    %296 = arith.mulf %291, %295 : vector<8x128xf32>
    %c32 = arith.constant 32 : index
    %c0_101 = arith.constant 0 : index
    %297 = vector.load %arg9[%c32, %c0_101] : memref<64x512xf32, #tpu.memory_space<vmem>>, vector<8x512xf32>
    %298 = vector.extract_strided_slice %262 {offsets = [0, 0], sizes = [8, 512], strides = [1, 1]} : vector<8x1024xf32> to vector<8x512xf32>
    %299 = arith.addf %297, %298 : vector<8x512xf32>
    %300 = vector.extract_strided_slice %299 {offsets = [0, 0], sizes = [8, 128], strides = [1, 1]} : vector<8x512xf32> to vector<8x128xf32>
    %cst_102 = arith.constant 5.000000e-01 : f32
    %301 = vector.broadcast %cst_102 : f32 to vector<8x128xf32>
    %302 = arith.mulf %301, %300 : vector<8x128xf32>
    %303 = math.tanh %302 : vector<8x128xf32>
    %cst_103 = arith.constant 5.000000e-01 : f32
    %304 = vector.broadcast %cst_103 : f32 to vector<8x128xf32>
    %305 = arith.mulf %304, %303 : vector<8x128xf32>
    %cst_104 = arith.constant 5.000000e-01 : f32
    %306 = vector.broadcast %cst_104 : f32 to vector<8x128xf32>
    %307 = arith.addf %305, %306 : vector<8x128xf32>
    %308 = vector.extract_strided_slice %299 {offsets = [0, 128], sizes = [8, 128], strides = [1, 1]} : vector<8x512xf32> to vector<8x128xf32>
    %cst_105 = arith.constant 5.000000e-01 : f32
    %309 = vector.broadcast %cst_105 : f32 to vector<8x128xf32>
    %310 = arith.mulf %309, %308 : vector<8x128xf32>
    %311 = math.tanh %310 : vector<8x128xf32>
    %cst_106 = arith.constant 5.000000e-01 : f32
    %312 = vector.broadcast %cst_106 : f32 to vector<8x128xf32>
    %313 = arith.mulf %312, %311 : vector<8x128xf32>
    %cst_107 = arith.constant 5.000000e-01 : f32
    %314 = vector.broadcast %cst_107 : f32 to vector<8x128xf32>
    %315 = arith.addf %313, %314 : vector<8x128xf32>
    %316 = vector.extract_strided_slice %299 {offsets = [0, 256], sizes = [8, 128], strides = [1, 1]} : vector<8x512xf32> to vector<8x128xf32>
    %317 = math.tanh %316 : vector<8x128xf32>
    %318 = vector.extract_strided_slice %299 {offsets = [0, 384], sizes = [8, 128], strides = [1, 1]} : vector<8x512xf32> to vector<8x128xf32>
    %cst_108 = arith.constant 5.000000e-01 : f32
    %319 = vector.broadcast %cst_108 : f32 to vector<8x128xf32>
    %320 = arith.mulf %319, %318 : vector<8x128xf32>
    %321 = math.tanh %320 : vector<8x128xf32>
    %cst_109 = arith.constant 5.000000e-01 : f32
    %322 = vector.broadcast %cst_109 : f32 to vector<8x128xf32>
    %323 = arith.mulf %322, %321 : vector<8x128xf32>
    %cst_110 = arith.constant 5.000000e-01 : f32
    %324 = vector.broadcast %cst_110 : f32 to vector<8x128xf32>
    %325 = arith.addf %323, %324 : vector<8x128xf32>
    %326 = arith.mulf %315, %256 : vector<8x128xf32>
    %327 = arith.mulf %307, %317 : vector<8x128xf32>
    %328 = arith.addf %326, %327 : vector<8x128xf32>
    %329 = math.tanh %328 : vector<8x128xf32>
    %330 = arith.mulf %325, %329 : vector<8x128xf32>
    %331 = tpu.concatenate %330, %296 in 1 : vector<8x128xf32>, vector<8x128xf32> -> vector<8x256xf32>
    %332 = arith.truncf %331 : vector<8x256xf32> to vector<8x256xbf16>
    %c0_111 = arith.constant 0 : index
    %c0_112 = arith.constant 0 : index
    %333 = vector.load %arg3[%c0_111, %c0_112] : memref<256x1024xbf16, #tpu.memory_space<vmem>>, vector<256x1024xbf16>
    %cst_113 = arith.constant dense<0.000000e+00> : vector<8x1024xf32>
    %334 = tpu.matmul %332, %333, %cst_113 {dimension_numbers = #tpu.dot_dimension_numbers<[1], [0], [0], [1], [0, 0, 1, 1], [], []>} : vector<8x256xbf16>, vector<256x1024xbf16>, vector<8x1024xf32> -> vector<8x1024xf32>
    %335 = vector.extract_strided_slice %334 {offsets = [0, 512], sizes = [8, 512], strides = [1, 1]} : vector<8x1024xf32> to vector<8x512xf32>
    %336 = vector.broadcast %7 : vector<1x512xf32> to vector<8x512xf32>
    %337 = arith.addf %335, %336 : vector<8x512xf32>
    %338 = vector.extract_strided_slice %337 {offsets = [0, 0], sizes = [8, 128], strides = [1, 1]} : vector<8x512xf32> to vector<8x128xf32>
    %cst_114 = arith.constant 5.000000e-01 : f32
    %339 = vector.broadcast %cst_114 : f32 to vector<8x128xf32>
    %340 = arith.mulf %339, %338 : vector<8x128xf32>
    %341 = math.tanh %340 : vector<8x128xf32>
    %cst_115 = arith.constant 5.000000e-01 : f32
    %342 = vector.broadcast %cst_115 : f32 to vector<8x128xf32>
    %343 = arith.mulf %342, %341 : vector<8x128xf32>
    %cst_116 = arith.constant 5.000000e-01 : f32
    %344 = vector.broadcast %cst_116 : f32 to vector<8x128xf32>
    %345 = arith.addf %343, %344 : vector<8x128xf32>
    %346 = vector.extract_strided_slice %337 {offsets = [0, 128], sizes = [8, 128], strides = [1, 1]} : vector<8x512xf32> to vector<8x128xf32>
    %cst_117 = arith.constant 5.000000e-01 : f32
    %347 = vector.broadcast %cst_117 : f32 to vector<8x128xf32>
    %348 = arith.mulf %347, %346 : vector<8x128xf32>
    %349 = math.tanh %348 : vector<8x128xf32>
    %cst_118 = arith.constant 5.000000e-01 : f32
    %350 = vector.broadcast %cst_118 : f32 to vector<8x128xf32>
    %351 = arith.mulf %350, %349 : vector<8x128xf32>
    %cst_119 = arith.constant 5.000000e-01 : f32
    %352 = vector.broadcast %cst_119 : f32 to vector<8x128xf32>
    %353 = arith.addf %351, %352 : vector<8x128xf32>
    %354 = vector.extract_strided_slice %337 {offsets = [0, 256], sizes = [8, 128], strides = [1, 1]} : vector<8x512xf32> to vector<8x128xf32>
    %355 = math.tanh %354 : vector<8x128xf32>
    %356 = vector.extract_strided_slice %337 {offsets = [0, 384], sizes = [8, 128], strides = [1, 1]} : vector<8x512xf32> to vector<8x128xf32>
    %cst_120 = arith.constant 5.000000e-01 : f32
    %357 = vector.broadcast %cst_120 : f32 to vector<8x128xf32>
    %358 = arith.mulf %357, %356 : vector<8x128xf32>
    %359 = math.tanh %358 : vector<8x128xf32>
    %cst_121 = arith.constant 5.000000e-01 : f32
    %360 = vector.broadcast %cst_121 : f32 to vector<8x128xf32>
    %361 = arith.mulf %360, %359 : vector<8x128xf32>
    %cst_122 = arith.constant 5.000000e-01 : f32
    %362 = vector.broadcast %cst_122 : f32 to vector<8x128xf32>
    %363 = arith.addf %361, %362 : vector<8x128xf32>
    %364 = arith.mulf %353, %294 : vector<8x128xf32>
    %365 = arith.mulf %345, %355 : vector<8x128xf32>
    %366 = arith.addf %364, %365 : vector<8x128xf32>
    %367 = math.tanh %366 : vector<8x128xf32>
    %368 = arith.mulf %363, %367 : vector<8x128xf32>
    %c40 = arith.constant 40 : index
    %c0_123 = arith.constant 0 : index
    %369 = vector.load %arg9[%c40, %c0_123] : memref<64x512xf32, #tpu.memory_space<vmem>>, vector<8x512xf32>
    %370 = vector.extract_strided_slice %334 {offsets = [0, 0], sizes = [8, 512], strides = [1, 1]} : vector<8x1024xf32> to vector<8x512xf32>
    %371 = arith.addf %369, %370 : vector<8x512xf32>
    %372 = vector.extract_strided_slice %371 {offsets = [0, 0], sizes = [8, 128], strides = [1, 1]} : vector<8x512xf32> to vector<8x128xf32>
    %cst_124 = arith.constant 5.000000e-01 : f32
    %373 = vector.broadcast %cst_124 : f32 to vector<8x128xf32>
    %374 = arith.mulf %373, %372 : vector<8x128xf32>
    %375 = math.tanh %374 : vector<8x128xf32>
    %cst_125 = arith.constant 5.000000e-01 : f32
    %376 = vector.broadcast %cst_125 : f32 to vector<8x128xf32>
    %377 = arith.mulf %376, %375 : vector<8x128xf32>
    %cst_126 = arith.constant 5.000000e-01 : f32
    %378 = vector.broadcast %cst_126 : f32 to vector<8x128xf32>
    %379 = arith.addf %377, %378 : vector<8x128xf32>
    %380 = vector.extract_strided_slice %371 {offsets = [0, 128], sizes = [8, 128], strides = [1, 1]} : vector<8x512xf32> to vector<8x128xf32>
    %cst_127 = arith.constant 5.000000e-01 : f32
    %381 = vector.broadcast %cst_127 : f32 to vector<8x128xf32>
    %382 = arith.mulf %381, %380 : vector<8x128xf32>
    %383 = math.tanh %382 : vector<8x128xf32>
    %cst_128 = arith.constant 5.000000e-01 : f32
    %384 = vector.broadcast %cst_128 : f32 to vector<8x128xf32>
    %385 = arith.mulf %384, %383 : vector<8x128xf32>
    %cst_129 = arith.constant 5.000000e-01 : f32
    %386 = vector.broadcast %cst_129 : f32 to vector<8x128xf32>
    %387 = arith.addf %385, %386 : vector<8x128xf32>
    %388 = vector.extract_strided_slice %371 {offsets = [0, 256], sizes = [8, 128], strides = [1, 1]} : vector<8x512xf32> to vector<8x128xf32>
    %389 = math.tanh %388 : vector<8x128xf32>
    %390 = vector.extract_strided_slice %371 {offsets = [0, 384], sizes = [8, 128], strides = [1, 1]} : vector<8x512xf32> to vector<8x128xf32>
    %cst_130 = arith.constant 5.000000e-01 : f32
    %391 = vector.broadcast %cst_130 : f32 to vector<8x128xf32>
    %392 = arith.mulf %391, %390 : vector<8x128xf32>
    %393 = math.tanh %392 : vector<8x128xf32>
    %cst_131 = arith.constant 5.000000e-01 : f32
    %394 = vector.broadcast %cst_131 : f32 to vector<8x128xf32>
    %395 = arith.mulf %394, %393 : vector<8x128xf32>
    %cst_132 = arith.constant 5.000000e-01 : f32
    %396 = vector.broadcast %cst_132 : f32 to vector<8x128xf32>
    %397 = arith.addf %395, %396 : vector<8x128xf32>
    %398 = arith.mulf %387, %328 : vector<8x128xf32>
    %399 = arith.mulf %379, %389 : vector<8x128xf32>
    %400 = arith.addf %398, %399 : vector<8x128xf32>
    %401 = math.tanh %400 : vector<8x128xf32>
    %402 = arith.mulf %397, %401 : vector<8x128xf32>
    %403 = tpu.concatenate %402, %368 in 1 : vector<8x128xf32>, vector<8x128xf32> -> vector<8x256xf32>
    %404 = arith.truncf %403 : vector<8x256xf32> to vector<8x256xbf16>
    %c0_133 = arith.constant 0 : index
    %c0_134 = arith.constant 0 : index
    %405 = vector.load %arg3[%c0_133, %c0_134] : memref<256x1024xbf16, #tpu.memory_space<vmem>>, vector<256x1024xbf16>
    %cst_135 = arith.constant dense<0.000000e+00> : vector<8x1024xf32>
    %406 = tpu.matmul %404, %405, %cst_135 {dimension_numbers = #tpu.dot_dimension_numbers<[1], [0], [0], [1], [0, 0, 1, 1], [], []>} : vector<8x256xbf16>, vector<256x1024xbf16>, vector<8x1024xf32> -> vector<8x1024xf32>
    %407 = vector.extract_strided_slice %406 {offsets = [0, 512], sizes = [8, 512], strides = [1, 1]} : vector<8x1024xf32> to vector<8x512xf32>
    %408 = vector.broadcast %7 : vector<1x512xf32> to vector<8x512xf32>
    %409 = arith.addf %407, %408 : vector<8x512xf32>
    %410 = vector.extract_strided_slice %409 {offsets = [0, 0], sizes = [8, 128], strides = [1, 1]} : vector<8x512xf32> to vector<8x128xf32>
    %cst_136 = arith.constant 5.000000e-01 : f32
    %411 = vector.broadcast %cst_136 : f32 to vector<8x128xf32>
    %412 = arith.mulf %411, %410 : vector<8x128xf32>
    %413 = math.tanh %412 : vector<8x128xf32>
    %cst_137 = arith.constant 5.000000e-01 : f32
    %414 = vector.broadcast %cst_137 : f32 to vector<8x128xf32>
    %415 = arith.mulf %414, %413 : vector<8x128xf32>
    %cst_138 = arith.constant 5.000000e-01 : f32
    %416 = vector.broadcast %cst_138 : f32 to vector<8x128xf32>
    %417 = arith.addf %415, %416 : vector<8x128xf32>
    %418 = vector.extract_strided_slice %409 {offsets = [0, 128], sizes = [8, 128], strides = [1, 1]} : vector<8x512xf32> to vector<8x128xf32>
    %cst_139 = arith.constant 5.000000e-01 : f32
    %419 = vector.broadcast %cst_139 : f32 to vector<8x128xf32>
    %420 = arith.mulf %419, %418 : vector<8x128xf32>
    %421 = math.tanh %420 : vector<8x128xf32>
    %cst_140 = arith.constant 5.000000e-01 : f32
    %422 = vector.broadcast %cst_140 : f32 to vector<8x128xf32>
    %423 = arith.mulf %422, %421 : vector<8x128xf32>
    %cst_141 = arith.constant 5.000000e-01 : f32
    %424 = vector.broadcast %cst_141 : f32 to vector<8x128xf32>
    %425 = arith.addf %423, %424 : vector<8x128xf32>
    %426 = vector.extract_strided_slice %409 {offsets = [0, 256], sizes = [8, 128], strides = [1, 1]} : vector<8x512xf32> to vector<8x128xf32>
    %427 = math.tanh %426 : vector<8x128xf32>
    %428 = vector.extract_strided_slice %409 {offsets = [0, 384], sizes = [8, 128], strides = [1, 1]} : vector<8x512xf32> to vector<8x128xf32>
    %cst_142 = arith.constant 5.000000e-01 : f32
    %429 = vector.broadcast %cst_142 : f32 to vector<8x128xf32>
    %430 = arith.mulf %429, %428 : vector<8x128xf32>
    %431 = math.tanh %430 : vector<8x128xf32>
    %cst_143 = arith.constant 5.000000e-01 : f32
    %432 = vector.broadcast %cst_143 : f32 to vector<8x128xf32>
    %433 = arith.mulf %432, %431 : vector<8x128xf32>
    %cst_144 = arith.constant 5.000000e-01 : f32
    %434 = vector.broadcast %cst_144 : f32 to vector<8x128xf32>
    %435 = arith.addf %433, %434 : vector<8x128xf32>
    %436 = arith.mulf %425, %366 : vector<8x128xf32>
    %437 = arith.mulf %417, %427 : vector<8x128xf32>
    %438 = arith.addf %436, %437 : vector<8x128xf32>
    %439 = math.tanh %438 : vector<8x128xf32>
    %440 = arith.mulf %435, %439 : vector<8x128xf32>
    %c48 = arith.constant 48 : index
    %c0_145 = arith.constant 0 : index
    %441 = vector.load %arg9[%c48, %c0_145] : memref<64x512xf32, #tpu.memory_space<vmem>>, vector<8x512xf32>
    %442 = vector.extract_strided_slice %406 {offsets = [0, 0], sizes = [8, 512], strides = [1, 1]} : vector<8x1024xf32> to vector<8x512xf32>
    %443 = arith.addf %441, %442 : vector<8x512xf32>
    %444 = vector.extract_strided_slice %443 {offsets = [0, 0], sizes = [8, 128], strides = [1, 1]} : vector<8x512xf32> to vector<8x128xf32>
    %cst_146 = arith.constant 5.000000e-01 : f32
    %445 = vector.broadcast %cst_146 : f32 to vector<8x128xf32>
    %446 = arith.mulf %445, %444 : vector<8x128xf32>
    %447 = math.tanh %446 : vector<8x128xf32>
    %cst_147 = arith.constant 5.000000e-01 : f32
    %448 = vector.broadcast %cst_147 : f32 to vector<8x128xf32>
    %449 = arith.mulf %448, %447 : vector<8x128xf32>
    %cst_148 = arith.constant 5.000000e-01 : f32
    %450 = vector.broadcast %cst_148 : f32 to vector<8x128xf32>
    %451 = arith.addf %449, %450 : vector<8x128xf32>
    %452 = vector.extract_strided_slice %443 {offsets = [0, 128], sizes = [8, 128], strides = [1, 1]} : vector<8x512xf32> to vector<8x128xf32>
    %cst_149 = arith.constant 5.000000e-01 : f32
    %453 = vector.broadcast %cst_149 : f32 to vector<8x128xf32>
    %454 = arith.mulf %453, %452 : vector<8x128xf32>
    %455 = math.tanh %454 : vector<8x128xf32>
    %cst_150 = arith.constant 5.000000e-01 : f32
    %456 = vector.broadcast %cst_150 : f32 to vector<8x128xf32>
    %457 = arith.mulf %456, %455 : vector<8x128xf32>
    %cst_151 = arith.constant 5.000000e-01 : f32
    %458 = vector.broadcast %cst_151 : f32 to vector<8x128xf32>
    %459 = arith.addf %457, %458 : vector<8x128xf32>
    %460 = vector.extract_strided_slice %443 {offsets = [0, 256], sizes = [8, 128], strides = [1, 1]} : vector<8x512xf32> to vector<8x128xf32>
    %461 = math.tanh %460 : vector<8x128xf32>
    %462 = vector.extract_strided_slice %443 {offsets = [0, 384], sizes = [8, 128], strides = [1, 1]} : vector<8x512xf32> to vector<8x128xf32>
    %cst_152 = arith.constant 5.000000e-01 : f32
    %463 = vector.broadcast %cst_152 : f32 to vector<8x128xf32>
    %464 = arith.mulf %463, %462 : vector<8x128xf32>
    %465 = math.tanh %464 : vector<8x128xf32>
    %cst_153 = arith.constant 5.000000e-01 : f32
    %466 = vector.broadcast %cst_153 : f32 to vector<8x128xf32>
    %467 = arith.mulf %466, %465 : vector<8x128xf32>
    %cst_154 = arith.constant 5.000000e-01 : f32
    %468 = vector.broadcast %cst_154 : f32 to vector<8x128xf32>
    %469 = arith.addf %467, %468 : vector<8x128xf32>
    %470 = arith.mulf %459, %400 : vector<8x128xf32>
    %471 = arith.mulf %451, %461 : vector<8x128xf32>
    %472 = arith.addf %470, %471 : vector<8x128xf32>
    %473 = math.tanh %472 : vector<8x128xf32>
    %474 = arith.mulf %469, %473 : vector<8x128xf32>
    %475 = tpu.concatenate %474, %440 in 1 : vector<8x128xf32>, vector<8x128xf32> -> vector<8x256xf32>
    %476 = arith.truncf %475 : vector<8x256xf32> to vector<8x256xbf16>
    %c0_155 = arith.constant 0 : index
    %c0_156 = arith.constant 0 : index
    %477 = vector.load %arg3[%c0_155, %c0_156] : memref<256x1024xbf16, #tpu.memory_space<vmem>>, vector<256x1024xbf16>
    %cst_157 = arith.constant dense<0.000000e+00> : vector<8x1024xf32>
    %478 = tpu.matmul %476, %477, %cst_157 {dimension_numbers = #tpu.dot_dimension_numbers<[1], [0], [0], [1], [0, 0, 1, 1], [], []>} : vector<8x256xbf16>, vector<256x1024xbf16>, vector<8x1024xf32> -> vector<8x1024xf32>
    %479 = vector.extract_strided_slice %478 {offsets = [0, 512], sizes = [8, 512], strides = [1, 1]} : vector<8x1024xf32> to vector<8x512xf32>
    %480 = vector.broadcast %7 : vector<1x512xf32> to vector<8x512xf32>
    %481 = arith.addf %479, %480 : vector<8x512xf32>
    %482 = vector.extract_strided_slice %481 {offsets = [0, 0], sizes = [8, 128], strides = [1, 1]} : vector<8x512xf32> to vector<8x128xf32>
    %cst_158 = arith.constant 5.000000e-01 : f32
    %483 = vector.broadcast %cst_158 : f32 to vector<8x128xf32>
    %484 = arith.mulf %483, %482 : vector<8x128xf32>
    %485 = math.tanh %484 : vector<8x128xf32>
    %cst_159 = arith.constant 5.000000e-01 : f32
    %486 = vector.broadcast %cst_159 : f32 to vector<8x128xf32>
    %487 = arith.mulf %486, %485 : vector<8x128xf32>
    %cst_160 = arith.constant 5.000000e-01 : f32
    %488 = vector.broadcast %cst_160 : f32 to vector<8x128xf32>
    %489 = arith.addf %487, %488 : vector<8x128xf32>
    %490 = vector.extract_strided_slice %481 {offsets = [0, 128], sizes = [8, 128], strides = [1, 1]} : vector<8x512xf32> to vector<8x128xf32>
    %cst_161 = arith.constant 5.000000e-01 : f32
    %491 = vector.broadcast %cst_161 : f32 to vector<8x128xf32>
    %492 = arith.mulf %491, %490 : vector<8x128xf32>
    %493 = math.tanh %492 : vector<8x128xf32>
    %cst_162 = arith.constant 5.000000e-01 : f32
    %494 = vector.broadcast %cst_162 : f32 to vector<8x128xf32>
    %495 = arith.mulf %494, %493 : vector<8x128xf32>
    %cst_163 = arith.constant 5.000000e-01 : f32
    %496 = vector.broadcast %cst_163 : f32 to vector<8x128xf32>
    %497 = arith.addf %495, %496 : vector<8x128xf32>
    %498 = vector.extract_strided_slice %481 {offsets = [0, 256], sizes = [8, 128], strides = [1, 1]} : vector<8x512xf32> to vector<8x128xf32>
    %499 = math.tanh %498 : vector<8x128xf32>
    %500 = vector.extract_strided_slice %481 {offsets = [0, 384], sizes = [8, 128], strides = [1, 1]} : vector<8x512xf32> to vector<8x128xf32>
    %cst_164 = arith.constant 5.000000e-01 : f32
    %501 = vector.broadcast %cst_164 : f32 to vector<8x128xf32>
    %502 = arith.mulf %501, %500 : vector<8x128xf32>
    %503 = math.tanh %502 : vector<8x128xf32>
    %cst_165 = arith.constant 5.000000e-01 : f32
    %504 = vector.broadcast %cst_165 : f32 to vector<8x128xf32>
    %505 = arith.mulf %504, %503 : vector<8x128xf32>
    %cst_166 = arith.constant 5.000000e-01 : f32
    %506 = vector.broadcast %cst_166 : f32 to vector<8x128xf32>
    %507 = arith.addf %505, %506 : vector<8x128xf32>
    %508 = arith.mulf %497, %438 : vector<8x128xf32>
    %509 = arith.mulf %489, %499 : vector<8x128xf32>
    %510 = arith.addf %508, %509 : vector<8x128xf32>
    %511 = math.tanh %510 : vector<8x128xf32>
    %512 = arith.mulf %507, %511 : vector<8x128xf32>
    %c56 = arith.constant 56 : index
    %c0_167 = arith.constant 0 : index
    %513 = vector.load %arg9[%c56, %c0_167] : memref<64x512xf32, #tpu.memory_space<vmem>>, vector<8x512xf32>
    %514 = vector.extract_strided_slice %478 {offsets = [0, 0], sizes = [8, 512], strides = [1, 1]} : vector<8x1024xf32> to vector<8x512xf32>
    %515 = arith.addf %513, %514 : vector<8x512xf32>
    %516 = vector.extract_strided_slice %515 {offsets = [0, 0], sizes = [8, 128], strides = [1, 1]} : vector<8x512xf32> to vector<8x128xf32>
    %cst_168 = arith.constant 5.000000e-01 : f32
    %517 = vector.broadcast %cst_168 : f32 to vector<8x128xf32>
    %518 = arith.mulf %517, %516 : vector<8x128xf32>
    %519 = math.tanh %518 : vector<8x128xf32>
    %cst_169 = arith.constant 5.000000e-01 : f32
    %520 = vector.broadcast %cst_169 : f32 to vector<8x128xf32>
    %521 = arith.mulf %520, %519 : vector<8x128xf32>
    %cst_170 = arith.constant 5.000000e-01 : f32
    %522 = vector.broadcast %cst_170 : f32 to vector<8x128xf32>
    %523 = arith.addf %521, %522 : vector<8x128xf32>
    %524 = vector.extract_strided_slice %515 {offsets = [0, 128], sizes = [8, 128], strides = [1, 1]} : vector<8x512xf32> to vector<8x128xf32>
    %cst_171 = arith.constant 5.000000e-01 : f32
    %525 = vector.broadcast %cst_171 : f32 to vector<8x128xf32>
    %526 = arith.mulf %525, %524 : vector<8x128xf32>
    %527 = math.tanh %526 : vector<8x128xf32>
    %cst_172 = arith.constant 5.000000e-01 : f32
    %528 = vector.broadcast %cst_172 : f32 to vector<8x128xf32>
    %529 = arith.mulf %528, %527 : vector<8x128xf32>
    %cst_173 = arith.constant 5.000000e-01 : f32
    %530 = vector.broadcast %cst_173 : f32 to vector<8x128xf32>
    %531 = arith.addf %529, %530 : vector<8x128xf32>
    %532 = vector.extract_strided_slice %515 {offsets = [0, 256], sizes = [8, 128], strides = [1, 1]} : vector<8x512xf32> to vector<8x128xf32>
    %533 = math.tanh %532 : vector<8x128xf32>
    %534 = vector.extract_strided_slice %515 {offsets = [0, 384], sizes = [8, 128], strides = [1, 1]} : vector<8x512xf32> to vector<8x128xf32>
    %cst_174 = arith.constant 5.000000e-01 : f32
    %535 = vector.broadcast %cst_174 : f32 to vector<8x128xf32>
    %536 = arith.mulf %535, %534 : vector<8x128xf32>
    %537 = math.tanh %536 : vector<8x128xf32>
    %cst_175 = arith.constant 5.000000e-01 : f32
    %538 = vector.broadcast %cst_175 : f32 to vector<8x128xf32>
    %539 = arith.mulf %538, %537 : vector<8x128xf32>
    %cst_176 = arith.constant 5.000000e-01 : f32
    %540 = vector.broadcast %cst_176 : f32 to vector<8x128xf32>
    %541 = arith.addf %539, %540 : vector<8x128xf32>
    %542 = arith.mulf %531, %472 : vector<8x128xf32>
    %543 = arith.mulf %523, %533 : vector<8x128xf32>
    %544 = arith.addf %542, %543 : vector<8x128xf32>
    %545 = math.tanh %544 : vector<8x128xf32>
    %546 = arith.mulf %541, %545 : vector<8x128xf32>
    %547 = tpu.concatenate %546, %512 in 1 : vector<8x128xf32>, vector<8x128xf32> -> vector<8x256xf32>
    %548 = arith.truncf %547 : vector<8x256xf32> to vector<8x256xbf16>
    %c0_177 = arith.constant 0 : index
    %c0_178 = arith.constant 0 : index
    %549 = vector.load %arg3[%c0_177, %c0_178] : memref<256x1024xbf16, #tpu.memory_space<vmem>>, vector<256x1024xbf16>
    %cst_179 = arith.constant dense<0.000000e+00> : vector<8x1024xf32>
    %550 = tpu.matmul %548, %549, %cst_179 {dimension_numbers = #tpu.dot_dimension_numbers<[1], [0], [0], [1], [0, 0, 1, 1], [], []>} : vector<8x256xbf16>, vector<256x1024xbf16>, vector<8x1024xf32> -> vector<8x1024xf32>
    %551 = vector.extract_strided_slice %550 {offsets = [0, 512], sizes = [8, 512], strides = [1, 1]} : vector<8x1024xf32> to vector<8x512xf32>
    %552 = vector.broadcast %7 : vector<1x512xf32> to vector<8x512xf32>
    %553 = arith.addf %551, %552 : vector<8x512xf32>
    %554 = vector.extract_strided_slice %553 {offsets = [0, 0], sizes = [8, 128], strides = [1, 1]} : vector<8x512xf32> to vector<8x128xf32>
    %cst_180 = arith.constant 5.000000e-01 : f32
    %555 = vector.broadcast %cst_180 : f32 to vector<8x128xf32>
    %556 = arith.mulf %555, %554 : vector<8x128xf32>
    %557 = math.tanh %556 : vector<8x128xf32>
    %cst_181 = arith.constant 5.000000e-01 : f32
    %558 = vector.broadcast %cst_181 : f32 to vector<8x128xf32>
    %559 = arith.mulf %558, %557 : vector<8x128xf32>
    %cst_182 = arith.constant 5.000000e-01 : f32
    %560 = vector.broadcast %cst_182 : f32 to vector<8x128xf32>
    %561 = arith.addf %559, %560 : vector<8x128xf32>
    %562 = vector.extract_strided_slice %553 {offsets = [0, 128], sizes = [8, 128], strides = [1, 1]} : vector<8x512xf32> to vector<8x128xf32>
    %cst_183 = arith.constant 5.000000e-01 : f32
    %563 = vector.broadcast %cst_183 : f32 to vector<8x128xf32>
    %564 = arith.mulf %563, %562 : vector<8x128xf32>
    %565 = math.tanh %564 : vector<8x128xf32>
    %cst_184 = arith.constant 5.000000e-01 : f32
    %566 = vector.broadcast %cst_184 : f32 to vector<8x128xf32>
    %567 = arith.mulf %566, %565 : vector<8x128xf32>
    %cst_185 = arith.constant 5.000000e-01 : f32
    %568 = vector.broadcast %cst_185 : f32 to vector<8x128xf32>
    %569 = arith.addf %567, %568 : vector<8x128xf32>
    %570 = vector.extract_strided_slice %553 {offsets = [0, 256], sizes = [8, 128], strides = [1, 1]} : vector<8x512xf32> to vector<8x128xf32>
    %571 = math.tanh %570 : vector<8x128xf32>
    %572 = vector.extract_strided_slice %553 {offsets = [0, 384], sizes = [8, 128], strides = [1, 1]} : vector<8x512xf32> to vector<8x128xf32>
    %cst_186 = arith.constant 5.000000e-01 : f32
    %573 = vector.broadcast %cst_186 : f32 to vector<8x128xf32>
    %574 = arith.mulf %573, %572 : vector<8x128xf32>
    %575 = math.tanh %574 : vector<8x128xf32>
    %cst_187 = arith.constant 5.000000e-01 : f32
    %576 = vector.broadcast %cst_187 : f32 to vector<8x128xf32>
    %577 = arith.mulf %576, %575 : vector<8x128xf32>
    %cst_188 = arith.constant 5.000000e-01 : f32
    %578 = vector.broadcast %cst_188 : f32 to vector<8x128xf32>
    %579 = arith.addf %577, %578 : vector<8x128xf32>
    %580 = arith.mulf %569, %510 : vector<8x128xf32>
    %581 = arith.mulf %561, %571 : vector<8x128xf32>
    %582 = arith.addf %580, %581 : vector<8x128xf32>
    %583 = math.tanh %582 : vector<8x128xf32>
    %584 = arith.mulf %579, %583 : vector<8x128xf32>
    %c0_189 = arith.constant 0 : index
    %c0_190 = arith.constant 0 : index
    %585 = vector.load %arg7[%c0_189, %c0_190] : memref<8x128xf32, #tpu.memory_space<vmem>>, vector<8x128xf32>
    %586 = arith.mulf %584, %585 : vector<8x128xf32>
    %587 = arith.truncf %586 : vector<8x128xf32> to vector<8x128xbf16>
    %c0_191 = arith.constant 0 : index
    %c0_192 = arith.constant 0 : index
    %588 = vector.load %arg5[%c0_191, %c0_192] : memref<128x128xbf16, #tpu.memory_space<vmem>>, vector<128x128xbf16>
    %cst_193 = arith.constant dense<0.000000e+00> : vector<8x128xf32>
    %589 = tpu.matmul %587, %588, %cst_193 {dimension_numbers = #tpu.dot_dimension_numbers<[1], [0], [0], [1], [0, 0, 1, 1], [], []>} : vector<8x128xbf16>, vector<128x128xbf16>, vector<8x128xf32> -> vector<8x128xf32>
    %c0_194 = arith.constant 0 : index
    %c0_195 = arith.constant 0 : index
    %590 = vector.load %arg6[%c0_194, %c0_195] : memref<1x128xf32, #tpu.memory_space<vmem>>, vector<1x128xf32>
    %591 = vector.broadcast %590 : vector<1x128xf32> to vector<8x128xf32>
    %592 = arith.addf %589, %591 : vector<8x128xf32>
    %c0_196 = arith.constant 0 : index
    %c0_197 = arith.constant 0 : index
    %593 = vector.load %arg8[%c0_196, %c0_197] : memref<8x128xf32, #tpu.memory_space<vmem>>, vector<8x128xf32>
    tpu.vector_store %arg8[%c0_196, %c0_197], %592 {strides = array<i32>} : memref<8x128xf32, #tpu.memory_space<vmem>>, vector<8x128xf32>,
    return
  }
}

</mosaic_0001>

<bundles_post_ra>
// kernel: lstm_forward.1
= control target key start
LH: loop header
LB: loop body
LE: loop exit
PB: predicated region body
PF: predicated region fallthrough
CT: control target
= control target key end

     0   :  { %v3415_v1 = vmov 0   ;;  %vm3418_vm0 = vmmov 0   ;;  %s5498_s1 = inlined_call_operand.vmem [shape: bf16[128,512], index: 1, kind: input, shape index: {}]   ;;  %s5499_s0 = inlined_call_operand.vmem [shape: bf16[64,128], index: 0, kind: input, shape index: {}]   ;;  %s5500_s3 = inlined_call_operand.vmem [shape: bf16[256,1024], index: 3, kind: input, shape index: {}]   ;;  %s5501_s2 = inlined_call_operand.vmem [shape: f32[1,512], index: 2, kind: input, shape index: {}]   ;;  %s5502_s4 = inlined_call_operand.vmem [shape: f32[1,512], index: 4, kind: input, shape index: {}]   ;;  %s5503_s5 = inlined_call_operand.vmem [shape: bf16[128,128], index: 5, kind: input, shape index: {}]   ;;  %s5504_s7 = inlined_call_operand.vmem [shape: f32[8,128], index: 7, kind: input, shape index: {}]   ;;  %s5505_s6 = inlined_call_operand.vmem [shape: f32[1,128], index: 6, kind: input, shape index: {}]   ;;  %s5506_s8 = inlined_call_operand.vmem [shape: f32[8,128], index: 8, kind: output, shape index: {}]  }
   0x1   :  { %v3195_v0 = vld [vmem:[%s5498_s1 + $0xe4] ss:$16 sps:$4 sm:$0xff]   ;;  %308 = vmatprep.mubr.bf16.mxu0 %v3415_v1  ;;  %381 = vmatprep.mubr.bf16.mxu1 %v3415_v1  ;;  %v3197_v2 = vld [vmem:[%s5498_s1 + $0xe0] ss:$16 sps:$4 sm:$0xff]   ;;  %v3198_v3 = vld [vmem:[%s5498_s1 + $0xec] ss:$16 sps:$4 sm:$0xff]  }
   0x2   :  { %276 = vmatprep.subr.bf16.mxu0 %v3195_v0  ;;  %v3200_v4 = vld [vmem:[%s5498_s1 + $0xe8] ss:$16 sps:$4 sm:$0xff]   ;;  %v3201_v5 = vld [vmem:[%s5498_s1 + $0xc4] ss:$16 sps:$4 sm:$0xff]   ;;  %v3203_v6 = vld [vmem:[%s5498_s1 + $0xc0] ss:$16 sps:$4 sm:$0xff]   ;;  %349 = vmatprep.subr.bf16.mxu1 %v3198_v3 }
   0x3   :  { %277 = vmatpush1.bf16.msra.mxu0 %v3197_v2  ;;  %v3204_v7 = vld [vmem:[%s5498_s1 + $0xcc] ss:$16 sps:$4 sm:$0xff]   ;;  %350 = vmatpush1.bf16.msra.mxu1 %v3200_v4  ;;  %v3206_v8 = vld [vmem:[%s5498_s1 + $0xc8] ss:$16 sps:$4 sm:$0xff]   ;;  %v3207_v9 = vld [vmem:[%s5498_s1 + $0xa4] ss:$16 sps:$4 sm:$0xff]  }
   0x4   :  { %278 = vmatprep.subr.bf16.mxu0 %v3201_v5  ;;  %351 = vmatprep.subr.bf16.mxu1 %v3204_v7  ;;  %v3209_v10 = vld [vmem:[%s5498_s1 + $0xa0] ss:$16 sps:$4 sm:$0xff]   ;;  %v3210_v11 = vld [vmem:[%s5498_s1 + $0xac] ss:$16 sps:$4 sm:$0xff]   ;;  %v3213_v12 = vld [vmem:[%s5498_s1 + $0x84] ss:$16 sps:$4 sm:$0xff]  }
   0x5   :  { %v3212_v13 = vld [vmem:[%s5498_s1 + $0xa8] ss:$16 sps:$4 sm:$0xff]   ;;  %v3216_v14 = vld [vmem:[%s5498_s1 + $0x8c] ss:$16 sps:$4 sm:$0xff]   ;;  %v3215_v15 = vld [vmem:[%s5498_s1 + $0x80] ss:$16 sps:$4 sm:$0xff]  }
   0x6   :  { %v3219_v16 = vld [vmem:[%s5498_s1 + $0x64] ss:$16 sps:$4 sm:$0xff]   ;;  %v3218_v17 = vld [vmem:[%s5498_s1 + $0x88] ss:$16 sps:$4 sm:$0xff]   ;;  %v3222_v18 = vld [vmem:[%s5498_s1 + $0x6c] ss:$16 sps:$4 sm:$0xff]  }
   0x7   :  { %279 = vmatpush1.bf16.msra.mxu0 %v3203_v6  ;;  %352 = vmatpush1.bf16.msra.mxu1 %v3206_v8  ;;  %v3221_v19 = vld [vmem:[%s5498_s1 + $0x60] ss:$16 sps:$4 sm:$0xff]   ;;  %v3225_v20 = vld [vmem:[%s5498_s1 + $0x44] ss:$16 sps:$4 sm:$0xff]   ;;  %v3224_v21 = vld [vmem:[%s5498_s1 + $0x68] ss:$16 sps:$4 sm:$0xff]  }
   0x8   :  { %280 = vmatprep.subr.bf16.mxu0 %v3207_v9  ;;  %353 = vmatprep.subr.bf16.mxu1 %v3210_v11  ;;  %v3228_v22 = vld [vmem:[%s5498_s1 + $0x4c] ss:$16 sps:$4 sm:$0xff]   ;;  %v3227_v23 = vld [vmem:[%s5498_s1 + $0x40] ss:$16 sps:$4 sm:$0xff]   ;;  %v3231_v24 = vld [vmem:[%s5498_s1 + $0x24] ss:$16 sps:$4 sm:$0xff]  }
   0x9   :  { %v3230_v25 = vld [vmem:[%s5498_s1 + $0x48] ss:$16 sps:$4 sm:$0xff]   ;;  %v3234_v26 = vld [vmem:[%s5498_s1 + $0x2c] ss:$16 sps:$4 sm:$0xff]   ;;  %v3233_v27 = vld [vmem:[%s5498_s1 + $0x20] ss:$16 sps:$4 sm:$0xff]  }
   0xa   :  { %v3237_v28 = vld [vmem:[%s5498_s1 + $0x4] ss:$16 sps:$4 sm:$0xff]   ;;  %v3236_v29 = vld [vmem:[%s5498_s1 + $0x28] ss:$16 sps:$4 sm:$0xff]   ;;  %v3240_v32 = vld [vmem:[%s5498_s1 + $0xc] ss:$16 sps:$4 sm:$0xff]  }
   0xb   :  { %281 = vmatpush1.bf16.msra.mxu0 %v3209_v10  ;;  %354 = vmatpush1.bf16.msra.mxu1 %v3212_v13  ;;  %v535_v30 = vld [vmem:[%s5500_s3 + $0x1c0] sm:$0xff]  ;;  %v536_v34 = vld [vmem:[%s5500_s3 + $0x1c8] sm:$0xff] }
   0xc   :  { %282 = vmatprep.subr.bf16.mxu0 %v3213_v12  ;;  %355 = vmatprep.subr.bf16.mxu1 %v3216_v14  ;;  %v539_v31 = vld [vmem:[%s5500_s3 + $0x1e0] sm:$0xff]  ;;  %v540_v35 = vld [vmem:[%s5500_s3 + $0x1e8] sm:$0xff] }
   0xd   :  { %v3239_v33 = vld [vmem:[%s5498_s1] ss:$16 sps:$4 sm:$0xff]   ;;  %v3242_v36 = vld [vmem:[%s5498_s1 + $0x8] ss:$16 sps:$4 sm:$0xff]   ;;  %v3577_v38 = vcombine.high %v535_v30, %v539_v31  ;;  %v3585_v41 = vcombine.high %v536_v34, %v540_v35  ;;  %v3587_v42 = vcombine.low %v535_v30, %v539_v31  ;;  %v3598_v46 = vcombine.low %v536_v34, %v540_v35 }
   0xe   :  { %v3243_v37 = vld [vmem:[%s5499_s0] sm:$0xff]   ;;  %v528_v43 = vld [vmem:[%s5500_s3 + $0x188] sm:$0xff] }
   0xf   :  { %283 = vmatpush1.bf16.msra.mxu0 %v3215_v15  ;;  %356 = vmatpush1.bf16.msra.mxu1 %v3218_v17  ;;  %5808 = vst [vmem:[#allocation3_spill] sm:$0xff] %v3577_v38  ;;  %v527_v39 = vld [vmem:[%s5500_s3 + $0x180] sm:$0xff]  ;;  %5809 = vst [vmem:[#allocation4_spill] sm:$0xff] %v3585_v41  ;;  %v532_v44 = vld [vmem:[%s5500_s3 + $0x1a8] sm:$0xff] }
  0x10   :  { %284 = vmatprep.subr.bf16.mxu0 %v3219_v16  ;;  %357 = vmatprep.subr.bf16.mxu1 %v3222_v18  ;;  %v531_v40 = vld [vmem:[%s5500_s3 + $0x1a0] sm:$0xff]  ;;  %5810 = vst [vmem:[#allocation5_spill] sm:$0xff] %v3587_v42  ;;  %5812 = vst [vmem:[#allocation7_spill] sm:$0xff] %v3598_v46  ;;  %v3607_v49 = vcombine.high %v528_v43, %v532_v44  ;;  %v520_v51 = vld [vmem:[%s5500_s3 + $0x148] sm:$0xff]  ;;  %v3623_v54 = vcombine.low %v528_v43, %v532_v44 }
  0x11   :  { %v3596_v45 = vcombine.high %v527_v39, %v531_v40  ;;  %v519_v47 = vld [vmem:[%s5500_s3 + $0x140] sm:$0xff]  ;;  %v3610_v50 = vcombine.low %v527_v39, %v531_v40  ;;  %v524_v52 = vld [vmem:[%s5500_s3 + $0x168] sm:$0xff] }
  0x12   :  { %v523_v48 = vld [vmem:[%s5500_s3 + $0x160] sm:$0xff]  ;;  %5813 = vst [vmem:[#allocation8_spill] sm:$0xff] %v3607_v49  ;;  %5816 = vst [vmem:[#allocation11_spill] sm:$0xff] %v3623_v54  ;;  %v3633_v57 = vcombine.high %v520_v51, %v524_v52  ;;  %v512_v59 = vld [vmem:[%s5500_s3 + $0x108] sm:$0xff]  ;;  %v3648_v62 = vcombine.low %v520_v51, %v524_v52 }
  0x13   :  { %285 = vmatpush1.bf16.msra.mxu0 %v3221_v19  ;;  %358 = vmatpush1.bf16.msra.mxu1 %v3224_v21  ;;  %5811 = vst [vmem:[#allocation6_spill] sm:$0xff] %v3596_v45  ;;  %5814 = vst [vmem:[#allocation9_spill] sm:$0xff] %v3610_v50  ;;  %v3620_v53 = vcombine.high %v519_v47, %v523_v48  ;;  %v511_v55 = vld [vmem:[%s5500_s3 + $0x100] sm:$0xff]  ;;  %v3636_v58 = vcombine.low %v519_v47, %v523_v48  ;;  %v516_v60 = vld [vmem:[%s5500_s3 + $0x128] sm:$0xff] }
  0x14   :  { %286 = vmatprep.subr.bf16.mxu0 %v3225_v20  ;;  %359 = vmatprep.subr.bf16.mxu1 %v3228_v22  ;;  %v515_v56 = vld [vmem:[%s5500_s3 + $0x120] sm:$0xff]  ;;  %5817 = vst [vmem:[#allocation12_spill] sm:$0xff] %v3633_v57  ;;  %5820 = vst [vmem:[#allocation15_spill] sm:$0xff] %v3648_v62  ;;  %v3657_v2 = vcombine.high %v512_v59, %v516_v60  ;;  %v504_v4 = vld [vmem:[%s5500_s3 + $0xc8] sm:$0xff]  ;;  %v3672_v7 = vcombine.low %v512_v59, %v516_v60 }
  0x15   :  { %5815 = vst [vmem:[#allocation10_spill] sm:$0xff] %v3620_v53  ;;  %5818 = vst [vmem:[#allocation13_spill] sm:$0xff] %v3636_v58  ;;  %v3645_v61 = vcombine.high %v511_v55, %v515_v56  ;;  %v503_v63 = vld [vmem:[%s5500_s3 + $0xc0] sm:$0xff]  ;;  %v3660_v3 = vcombine.low %v511_v55, %v515_v56  ;;  %v508_v5 = vld [vmem:[%s5500_s3 + $0xe8] sm:$0xff] }
  0x16   :  { %v507_v0 = vld [vmem:[%s5500_s3 + $0xe0] sm:$0xff]  ;;  %5821 = vst [vmem:[#allocation16_spill] sm:$0xff] %v3657_v2  ;;  %5824 = vst [vmem:[#allocation19_spill] sm:$0xff] %v3672_v7  ;;  %v3675_v8 = vcombine.high %v504_v4, %v508_v5  ;;  %v3682_v10 = vcombine.low %v504_v4, %v508_v5  ;;  %v496_v13 = vld [vmem:[%s5500_s3 + $0x88] sm:$0xff] }
  0x17   :  { %287 = vmatpush1.bf16.msra.mxu0 %v3227_v23  ;;  %360 = vmatpush1.bf16.msra.mxu1 %v3230_v25  ;;  %5819 = vst [vmem:[#allocation14_spill] sm:$0xff] %v3645_v61  ;;  %5822 = vst [vmem:[#allocation17_spill] sm:$0xff] %v3660_v3  ;;  %v3669_v6 = vcombine.high %v503_v63, %v507_v0  ;;  %v3678_v9 = vcombine.low %v503_v63, %v507_v0  ;;  %v495_v11 = vld [vmem:[%s5500_s3 + $0x80] sm:$0xff]  ;;  %v500_v15 = vld [vmem:[%s5500_s3 + $0xa8] sm:$0xff] }
  0x18   :  { %288 = vmatprep.subr.bf16.mxu0 %v3231_v24  ;;  %361 = vmatprep.subr.bf16.mxu1 %v3234_v26  ;;  %5825 = vst [vmem:[#allocation20_spill] sm:$0xff] %v3675_v8  ;;  %5827 = vst [vmem:[#allocation22_spill] sm:$0xff] %v3682_v10  ;;  %v499_v12 = vld [vmem:[%s5500_s3 + $0xa0] sm:$0xff]  ;;  %v3701_v16 = vcombine.high %v496_v13, %v500_v15  ;;  %v3705_v18 = vcombine.low %v496_v13, %v500_v15  ;;  %v488_v21 = vld [vmem:[%s5500_s3 + $0x48] sm:$0xff] }
  0x19   :  { %5823 = vst [vmem:[#allocation18_spill] sm:$0xff] %v3669_v6  ;;  %5826 = vst [vmem:[#allocation21_spill] sm:$0xff] %v3678_v9  ;;  %v3696_v14 = vcombine.high %v495_v11, %v499_v12  ;;  %v3703_v17 = vcombine.low %v495_v11, %v499_v12  ;;  %v487_v19 = vld [vmem:[%s5500_s3 + $0x40] sm:$0xff]  ;;  %v492_v23 = vld [vmem:[%s5500_s3 + $0x68] sm:$0xff] }
  0x1a   :  { %5829 = vst [vmem:[#allocation24_spill] sm:$0xff] %v3701_v16  ;;  %5831 = vst [vmem:[#allocation26_spill] sm:$0xff] %v3705_v18  ;;  %v491_v20 = vld [vmem:[%s5500_s3 + $0x60] sm:$0xff]  ;;  %v3725_v24 = vcombine.high %v488_v21, %v492_v23  ;;  %v3730_v26 = vcombine.low %v488_v21, %v492_v23  ;;  %v484_v31 = vld [vmem:[%s5500_s3 + $0x28] sm:$0xff] }
  0x1b   :  { %289 = vmatpush1.bf16.msra.mxu0 %v3233_v27  ;;  %362 = vmatpush1.bf16.msra.mxu1 %v3236_v29  ;;  %5828 = vst [vmem:[#allocation23_spill] sm:$0xff] %v3696_v14  ;;  %5830 = vst [vmem:[#allocation25_spill] sm:$0xff] %v3703_v17  ;;  %v3720_v22 = vcombine.high %v487_v19, %v491_v20  ;;  %v3727_v25 = vcombine.low %v487_v19, %v491_v20  ;;  %v479_v27 = vld [vmem:[%s5500_s3] sm:$0xff]  ;;  %v480_v29 = vld [vmem:[%s5500_s3 + $0x8] sm:$0xff] }
  0x1c   :  { %290 = vmatprep.subr.bf16.mxu0 %v3237_v28  ;;  %363 = vmatprep.subr.bf16.mxu1 %v3240_v32  ;;  %5833 = vst [vmem:[#allocation28_spill] sm:$0xff] %v3725_v24  ;;  %5835 = vst [vmem:[#allocation30_spill] sm:$0xff] %v3730_v26  ;;  %v483_v28 = vld [vmem:[%s5500_s3 + $0x20] sm:$0xff]  ;;  %v3749_v32 = vcombine.high %v480_v29, %v484_v31  ;;  %v3753_v34 = vcombine.low %v480_v29, %v484_v31  ;;  %v604_v40 = vld [vmem:[%s5500_s3 + $0x3e8] sm:$0xff] }
  0x1d   :  { %5832 = vst [vmem:[#allocation27_spill] sm:$0xff] %v3720_v22  ;;  %5834 = vst [vmem:[#allocation29_spill] sm:$0xff] %v3727_v25  ;;  %v3744_v30 = vcombine.high %v479_v27, %v483_v28  ;;  %v599_v35 = vld [vmem:[%s5500_s3 + $0x3c0] sm:$0xff]  ;;  %v3244_v48 = vld [vmem:[%s5499_s0 + $0x8] sm:$0xff]  }
  0x1e   :  { %5837 = vst [vmem:[#allocation32_spill] sm:$0xff] %v3749_v32  ;;  %5839 = vst [vmem:[#allocation34_spill] sm:$0xff] %v3753_v34  ;;  %v591_v51 = vld [vmem:[%s5500_s3 + $0x380] sm:$0xff]  ;;  %v592_v56 = vld [vmem:[%s5500_s3 + $0x388] sm:$0xff] }
  0x1f   :  { %291 = vmatpush1.bf16.msra.mxu0 %v3239_v33  ;;  %364 = vmatpush1.bf16.msra.mxu1 %v3242_v36  ;;  %5836 = vst [vmem:[#allocation31_spill] sm:$0xff] %v3744_v30  ;;  %v3751_v33 = vcombine.low %v479_v27, %v483_v28  ;;  %v603_v36 = vld [vmem:[%s5500_s3 + $0x3e0] sm:$0xff]  ;;  %v596_v59 = vld [vmem:[%s5500_s3 + $0x3a8] sm:$0xff]  ;;  %v3245_v21 = vld [vmem:[%s5499_s0 + $0x10] sm:$0xff]  }
  0x20   :  { %1247 = vmatprep.subr.bf16.mxu0 %v3577_v38  ;;  %1288 = vmatprep.subr.bf16.mxu1 %v3585_v41  ;;  %v3768_v39 = vcombine.high %v599_v35, %v603_v36  ;;  %v3775_v44 = vcombine.low %v599_v35, %v603_v36  ;;  %v595_v52 = vld [vmem:[%s5500_s3 + $0x3a0] sm:$0xff]  ;;  %v3800_v60 = vcombine.high %v592_v56, %v596_v59  ;;  %v584_v11 = vld [vmem:[%s5500_s3 + $0x348] sm:$0xff] }
  0x21   :  { %5838 = vst [vmem:[#allocation33_spill] sm:$0xff] %v3751_v33  ;;  %v3792_v55 = vcombine.high %v591_v51, %v595_v52  ;;  %v3802_v63 = vcombine.low %v591_v51, %v595_v52  ;;  %v3804_v0 = vcombine.low %v592_v56, %v596_v59  ;;  %v583_v4 = vld [vmem:[%s5500_s3 + $0x340] sm:$0xff]  ;;  %v588_v13 = vld [vmem:[%s5500_s3 + $0x368] sm:$0xff] }
  0x22   :  { %309 = vmatmul.mubr.bf16.vlgmr.msra.gmra.mxu0 %v3243_v37  ;;  %382 = vmatmul.mubr.bf16.vlgmr.msra.gmra.mxu1 %v3243_v37  ;;  %v600_v37 = vld [vmem:[%s5500_s3 + $0x3c8] sm:$0xff]  ;;  %5840 = vst [vmem:[#allocation35_spill] sm:$0xff] %v3768_v39  ;;  %5842 = vst [vmem:[#allocation37_spill] sm:$0xff] %v3775_v44  ;;  %v587_v5 = vld [vmem:[%s5500_s3 + $0x360] sm:$0xff]  ;;  %v3826_v15 = vcombine.high %v584_v11, %v588_v13  ;;  %v3830_v20 = vcombine.low %v584_v11, %v588_v13 }
  0x23   :  { %1248 = vmatpush1.bf16.msra.mxu0 %v3587_v42  ;;  %318 = vmatprep.mubr.bf16.mxu0 %v3415_v1  ;;  %v3773_v43 = vcombine.high %v600_v37, %v604_v40  ;;  %v3777_v47 = vcombine.low %v600_v37, %v604_v40  ;;  %5844 = vst [vmem:[#allocation39_spill] sm:$0xff] %v3792_v55  ;;  %5845 = vst [vmem:[#allocation40_spill] sm:$0xff] %v3800_v60  ;;  %v575_v23 = vld [vmem:[%s5500_s3 + $0x300] sm:$0xff]  ;;  %v576_v29 = vld [vmem:[%s5500_s3 + $0x308] sm:$0xff] }
  0x24   :  { %1249 = vmatprep.subr.bf16.mxu0 %v3596_v45  ;;  %1289 = vmatpush1.bf16.msra.mxu1 %v3598_v46  ;;  %5846 = vst [vmem:[#allocation41_spill] sm:$0xff] %v3802_v63  ;;  %5847 = vst [vmem:[#allocation42_spill] sm:$0xff] %v3804_v0  ;;  %v3820_v12 = vcombine.high %v583_v4, %v587_v5  ;;  %v3828_v19 = vcombine.low %v583_v4, %v587_v5  ;;  %v579_v27 = vld [vmem:[%s5500_s3 + $0x320] sm:$0xff]  ;;  %v580_v31 = vld [vmem:[%s5500_s3 + $0x328] sm:$0xff] }
  0x25   :  { %391 = vmatprep.mubr.bf16.mxu1 %v3415_v1  ;;  %1290 = vmatprep.subr.bf16.mxu1 %v3607_v49  ;;  %5841 = vst [vmem:[#allocation36_spill] sm:$0xff] %v3773_v43  ;;  %5843 = vst [vmem:[#allocation38_spill] sm:$0xff] %v3777_v47  ;;  %v3845_v28 = vcombine.high %v575_v23, %v579_v27  ;;  %v3853_v35 = vcombine.high %v576_v29, %v580_v31  ;;  %v567_v40 = vld [vmem:[%s5500_s3 + $0x2c0] sm:$0xff]  ;;  %v568_v51 = vld [vmem:[%s5500_s3 + $0x2c8] sm:$0xff] }
  0x26   :  { %5848 = vst [vmem:[#allocation43_spill] sm:$0xff] %v3820_v12  ;;  %5849 = vst [vmem:[#allocation44_spill] sm:$0xff] %v3826_v15  ;;  %v3855_v36 = vcombine.low %v575_v23, %v579_v27  ;;  %v3857_v37 = vcombine.low %v576_v29, %v580_v31  ;;  %v572_v56 = vld [vmem:[%s5500_s3 + $0x2e8] sm:$0xff]  ;;  %v3246_v11 = vld [vmem:[%s5499_s0 + $0x18] sm:$0xff]  }
  0x27   :  { %1250 = vmatpush1.bf16.msra.mxu0 %v3610_v50  ;;  %5850 = vst [vmem:[#allocation45_spill] sm:$0xff] %v3828_v19  ;;  %5851 = vst [vmem:[#allocation46_spill] sm:$0xff] %v3830_v20  ;;  %v3879_v59 = vcombine.high %v568_v51, %v572_v56  ;;  %v3883_v5 = vcombine.low %v568_v51, %v572_v56  ;;  %v563_v13 = vld [vmem:[%s5500_s3 + $0x2a0] sm:$0xff]  ;;  %v560_v23 = vld [vmem:[%s5500_s3 + $0x288] sm:$0xff] }
  0x28   :  { %1251 = vmatprep.subr.bf16.mxu0 %v3620_v53  ;;  %1291 = vmatpush1.bf16.msra.mxu1 %v3623_v54  ;;  %5852 = vst [vmem:[#allocation47_spill] sm:$0xff] %v3845_v28  ;;  %5853 = vst [vmem:[#allocation48_spill] sm:$0xff] %v3853_v35  ;;  %v564_v27 = vld [vmem:[%s5500_s3 + $0x2a8] sm:$0xff]  ;;  %v555_v51 = vld [vmem:[%s5500_s3 + $0x260] sm:$0xff] }
  0x29   :  { %1292 = vmatprep.subr.bf16.mxu1 %v3633_v57  ;;  %5854 = vst [vmem:[#allocation49_spill] sm:$0xff] %v3855_v36  ;;  %5855 = vst [vmem:[#allocation50_spill] sm:$0xff] %v3857_v37  ;;  %v3906_v29 = vcombine.high %v560_v23, %v564_v27  ;;  %v552_v56 = vld [vmem:[%s5500_s3 + $0x248] sm:$0xff] }
  0x2a   :  { %319 = vmatmul.mubr.bf16.gmra.mxu0 %v3244_v48  ;;  %392 = vmatmul.mubr.bf16.gmra.mxu1 %v3244_v48  ;;  %v571_v48 = vld [vmem:[%s5500_s3 + $0x2e0] sm:$0xff]  ;;  %5857 = vst [vmem:[#allocation52_spill] sm:$0xff] %v3879_v59  ;;  %5859 = vst [vmem:[#allocation54_spill] sm:$0xff] %v3883_v5 }
  0x2b   :  { %1252 = vmatpush1.bf16.msra.mxu0 %v3636_v58  ;;  %328 = vmatprep.mubr.bf16.mxu0 %v3415_v1  ;;  %v3873_v52 = vcombine.high %v567_v40, %v571_v48  ;;  %v3881_v4 = vcombine.low %v567_v40, %v571_v48  ;;  %5861 = vst [vmem:[#allocation56_spill] sm:$0xff] %v3906_v29  ;;  %v551_v48 = vld [vmem:[%s5500_s3 + $0x240] sm:$0xff] }
  0x2c   :  { %1253 = vmatprep.subr.bf16.mxu0 %v3645_v61  ;;  %1293 = vmatpush1.bf16.msra.mxu1 %v3648_v62  ;;  %v3910_v40 = vcombine.low %v560_v23, %v564_v27  ;;  %v3932_v23 = vcombine.low %v551_v48, %v555_v51 }
  0x2d   :  { %1294 = vmatprep.subr.bf16.mxu1 %v3657_v2  ;;  %401 = vmatprep.mubr.bf16.mxu1 %v3415_v1  ;;  %5856 = vst [vmem:[#allocation51_spill] sm:$0xff] %v3873_v52  ;;  %5858 = vst [vmem:[#allocation53_spill] sm:$0xff] %v3881_v4 }
  0x2e   :  { %5863 = vst [vmem:[#allocation58_spill] sm:$0xff] %v3910_v40  ;;  %5866 = vst [vmem:[#allocation61_spill] sm:$0xff] %v3932_v23 }
  0x2f   :  { %1254 = vmatpush1.bf16.msra.mxu0 %v3660_v3 }
  0x30   :  { %1255 = vmatprep.subr.bf16.mxu0 %v3669_v6  ;;  %1295 = vmatpush1.bf16.msra.mxu1 %v3672_v7 }
  0x31   :  { %1296 = vmatprep.subr.bf16.mxu1 %v3675_v8 }
  0x32   :  { %329 = vmatmul.mubr.bf16.gmra.mxu0 %v3245_v21  ;;  %402 = vmatmul.mubr.bf16.gmra.mxu1 %v3245_v21 }
  0x33   :  { %1256 = vmatpush1.bf16.msra.mxu0 %v3678_v9  ;;  %338 = vmatprep.mubr.bf16.mxu0 %v3415_v1 }
  0x34   :  { %1297 = vmatpush1.bf16.msra.mxu1 %v3682_v10  ;;  %1257 = vmatprep.subr.bf16.mxu0 %v3696_v14 }
  0x35   :  { %1298 = vmatprep.subr.bf16.mxu1 %v3701_v16  ;;  %411 = vmatprep.mubr.bf16.mxu1 %v3415_v1  ;;  %v559_v1 = vld [vmem:[%s5500_s3 + $0x280] sm:$0xff] }
  0x36   :  { %v3898_v21 = vcombine.high %v559_v1, %v563_v13  ;;  %v3908_v31 = vcombine.low %v559_v1, %v563_v13  ;;  %v556_v1 = vld [vmem:[%s5500_s3 + $0x268] sm:$0xff] }
  0x37   :  { %1258 = vmatpush1.bf16.msra.mxu0 %v3703_v17  ;;  %v3930_v13 = vcombine.high %v552_v56, %v556_v1  ;;  %v3934_v27 = vcombine.low %v552_v56, %v556_v1  ;;  %v548_v56 = vld [vmem:[%s5500_s3 + $0x228] sm:$0xff] }
  0x38   :  { %1299 = vmatpush1.bf16.msra.mxu1 %v3705_v18  ;;  %1259 = vmatprep.subr.bf16.mxu0 %v3720_v22  ;;  %5860 = vst [vmem:[#allocation55_spill] sm:$0xff] %v3898_v21  ;;  %5862 = vst [vmem:[#allocation57_spill] sm:$0xff] %v3908_v31 }
  0x39   :  { %1300 = vmatprep.subr.bf16.mxu1 %v3725_v24  ;;  %5865 = vst [vmem:[#allocation60_spill] sm:$0xff] %v3930_v13  ;;  %5867 = vst [vmem:[#allocation62_spill] sm:$0xff] %v3934_v27 }
  0x3a   :  { %339 = vmatmul.mubr.bf16.gmra.mxu0 %v3246_v11  ;;  %412 = vmatmul.mubr.bf16.gmra.mxu1 %v3246_v11  ;;  %v3925_v11 = vcombine.high %v551_v48, %v555_v51  ;;  %v544_v48 = vld [vmem:[%s5500_s3 + $0x208] sm:$0xff] }
  0x3b   :  { %1260 = vmatpush1.bf16.msra.mxu0 %v3727_v25  ;;  %v3954_v1 = vcombine.high %v544_v48, %v548_v56 }
  0x3c   :  { %1301 = vmatpush1.bf16.msra.mxu1 %v3730_v26  ;;  %1261 = vmatprep.subr.bf16.mxu0 %v3744_v30  ;;  %5864 = vst [vmem:[#allocation59_spill] sm:$0xff] %v3925_v11 }
  0x3d   :  { %1302 = vmatprep.subr.bf16.mxu1 %v3749_v32  ;;  %5869 = vst [vmem:[#allocation64_spill] sm:$0xff] %v3954_v1 }
  0x3f   :  { %1262 = vmatpush1.bf16.msra.mxu0 %v3751_v33 }
  0x40   :  { %1303 = vmatpush1.bf16.msra.mxu1 %v3753_v34  ;;  %1263 = vmatprep.subr.bf16.mxu0 %v3768_v39 }
  0x41   :  { %1304 = vmatprep.subr.bf16.mxu1 %v3773_v43 }
  0x43   :  { %1264 = vmatpush2.bf16.msra.mxu0 %v3775_v44 }
  0x44   :  { %1305 = vmatpush2.bf16.msra.mxu1 %v3777_v47  ;;  %1265 = vmatprep.subr.bf16.mxu0 %v3792_v55 }
  0x45   :  { %1306 = vmatprep.subr.bf16.mxu1 %v3800_v60 }
  0x47   :  { %1266 = vmatpush2.bf16.msra.mxu0 %v3802_v63 }
  0x48   :  { %1307 = vmatpush2.bf16.msra.mxu1 %v3804_v0  ;;  %1267 = vmatprep.subr.bf16.mxu0 %v3820_v12 }
  0x49   :  { %1308 = vmatprep.subr.bf16.mxu1 %v3826_v15 }
  0x4b   :  { %1268 = vmatpush2.bf16.msra.mxu0 %v3828_v19 }
  0x4c   :  { %1309 = vmatpush2.bf16.msra.mxu1 %v3830_v20  ;;  %1269 = vmatprep.subr.bf16.mxu0 %v3845_v28 }
  0x4d   :  { %1310 = vmatprep.subr.bf16.mxu1 %v3853_v35 }
  0x4f   :  { %1270 = vmatpush2.bf16.msra.mxu0 %v3855_v36 }
  0x50   :  { %1311 = vmatpush2.bf16.msra.mxu1 %v3857_v37  ;;  %1271 = vmatprep.subr.bf16.mxu0 %v3873_v52 }
  0x51   :  { %1312 = vmatprep.subr.bf16.mxu1 %v3879_v59 }
  0x53   :  { %1272 = vmatpush2.bf16.msra.mxu0 %v3881_v4 }
  0x54   :  { %1313 = vmatpush2.bf16.msra.mxu1 %v3883_v5  ;;  %1273 = vmatprep.subr.bf16.mxu0 %v3898_v21 }
  0x55   :  { %1314 = vmatprep.subr.bf16.mxu1 %v3906_v29 }
  0x57   :  { %1274 = vmatpush2.bf16.msra.mxu0 %v3908_v31  ;;  %v547_v31 = vld [vmem:[%s5500_s3 + $0x220] sm:$0xff] }
  0x58   :  { %1315 = vmatpush2.bf16.msra.mxu1 %v3910_v40  ;;  %1275 = vmatprep.subr.bf16.mxu0 %v3925_v11  ;;  %v543_v40 = vld [vmem:[%s5500_s3 + $0x200] sm:$0xff]  ;;  %v541_v11 = vld [vmem:[%s5500_s3 + $0x1f0] sm:$0xff] }
  0x59   :  { %1316 = vmatprep.subr.bf16.mxu1 %v3930_v13  ;;  %v3949_v51 = vcombine.high %v543_v40, %v547_v31  ;;  %v3958_v13 = vcombine.low %v544_v48, %v548_v56  ;;  %v542_v48 = vld [vmem:[%s5500_s3 + $0x1f8] sm:$0xff] }
  0x5b   :  { %1276 = vmatpush2.bf16.msra.mxu0 %v3932_v23  ;;  %5868 = vst [vmem:[#allocation63_spill] sm:$0xff] %v3949_v51  ;;  %v3956_v23 = vcombine.low %v543_v40, %v547_v31  ;;  %5871 = vst [vmem:[#allocation66_spill] sm:$0xff] %v3958_v13  ;;  %v538_v31 = vld [vmem:[%s5500_s3 + $0x1d8] sm:$0xff] }
  0x5c   :  { %1317 = vmatpush2.bf16.msra.mxu1 %v3934_v27  ;;  %1277 = vmatprep.subr.bf16.mxu0 %v3949_v51  ;;  %v537_v27 = vld [vmem:[%s5500_s3 + $0x1d0] sm:$0xff]  ;;  %v3978_v56 = vcombine.high %v538_v31, %v542_v48  ;;  %v3984_v51 = vcombine.low %v538_v31, %v542_v48 }
  0x5d   :  { %5870 = vst [vmem:[#allocation65_spill] sm:$0xff] %v3956_v23  ;;  %1318 = vmatprep.subr.bf16.mxu1 %v3954_v1  ;;  %v3973_v40 = vcombine.high %v537_v27, %v541_v11  ;;  %v5531_v1 = vmov 0.0|0.0  }
  0x5e   :  { %5873 = vst [vmem:[#allocation68_spill] sm:$0xff] %v3978_v56  ;;  %1279 = vmatprep.mubr.bf16.mxu0 %v5531_v1  ;;  %1320 = vmatprep.mubr.bf16.mxu1 %v5531_v1  ;;  %5875 = vst [vmem:[#allocation70_spill] sm:$0xff] %v3984_v51 }
  0x5f   :  { %1278 = vmatpush2.bf16.msra.mxu0 %v3956_v23  ;;  %5872 = vst [vmem:[#allocation67_spill] sm:$0xff] %v3973_v40  ;;  %v3980_v23 = vcombine.low %v537_v27, %v541_v11  ;;  %v70_v11 = vld [vmem:[%s5501_s2] sm:$0xf] }
  0x60   :  { %1319 = vmatpush2.bf16.msra.mxu1 %v3958_v13  ;;  %1329 = vmatprep.subr.bf16.mxu0 %v3973_v40  ;;  %v72_v13 = vlaneseq }
  0x61   :  { %5874 = vst [vmem:[#allocation69_spill] sm:$0xff] %v3980_v23  ;;  %1370 = vmatprep.subr.bf16.mxu1 %v3978_v56 }
  0x62   :  { %v3988_v29 = vshrl.u32 %v72_v13, 7 }
  0x64   :  { %v5545_v21 = vsub.s32 0, %v3988_v29  ;;  %v5550_v27 = vsub.s32 1, %v3988_v29  ;;  %v5551_v31 = vsub.s32 2, %v3988_v29  ;;  %v5562_v36 = vsub.s32 3, %v3988_v29 }
  0x66   :  { %v3997_v1 = vrot.slane %v70_v11, %v5545_v21  ;;  %v4002_v48 = vrot.slane %v70_v11, %v5550_v27  ;;  %v4007_v40 = vrot.slane %v70_v11, %v5551_v31 }
  0x68   :  { %5876 = vst [vmem:[#allocation71_spill] sm:$0xff] %v3997_v1  ;;  %5877 = vst [vmem:[#allocation72_spill] sm:$0xff] %v4002_v48 }
  0x69   :  { %5878 = vst [vmem:[#allocation73_spill] sm:$0xff] %v4007_v40 }
  0xe2   :  { %v310_v13 = vpop.f32.mrf.mxu0  ;;  %v383_v52 = vpop.f32.mrf.mxu1 }
  0xe3   :  { %v311_v56 = vadd.f32 %v310_v13, %v3997_v1  ;;  %v384_v37 = vadd.f32 %v383_v52, %v4007_v40  ;;  %v4014_v13 = vrot.slane %v70_v11, %v5562_v36 }
  0xe4   :  { %v312_v5 = vpop.f32.mrf.mxu0  ;;  %v385_v27 = vpop.f32.mrf.mxu1 }
  0xe5   :  { %v459_v4 = vmul.f32 0.5, %v311_v56  ;;  %v313_v59 = vadd.f32 %v312_v5, %v4002_v48  ;;  %5879 = vst [vmem:[#allocation74_spill] sm:$0xff] %v4014_v13  ;;  %v386_v31 = vadd.f32 %v385_v27, %v4014_v13  ;;  %v529_v27 = vld [vmem:[%s5500_s3 + $0x190] sm:$0xff] }
  0xe6   :  { %v513_v13 = vld [vmem:[%s5500_s3 + $0x110] sm:$0xff] }
  0xe7   :  { %3255 = vtanh.f32 %v459_v4  ;;  %v463_v21 = vmul.f32 0.5, %v313_v59  ;;  %v468_v1 = vmul.f32 0.5, %v386_v31 }
  0xe9   :  { %3257 = vtanh.f32 %v463_v21 }
  0xea   :  { %3259 = vtanh.f32 %v384_v37 }
  0xeb   :  { %3261 = vtanh.f32 %v468_v1  ;;  %v530_v1 = vld [vmem:[%s5500_s3 + $0x198] sm:$0xff] }
  0xf4   :  { %v3256_v56 = vpop.eup %3255 }
  0xf5   :  { %v461_v35 = vmul.f32 0.5, %v3256_v56 }
  0xf6   :  { %v3258_v5 = vpop.eup %3257 }
  0xf7   :  { %v462_v48 = vadd.f32 0.5, %v461_v35  ;;  %v465_v4 = vmul.f32 0.5, %v3258_v5  ;;  %v3260_v59 = vpop.eup %3259  ;;  %v533_v35 = vld [vmem:[%s5500_s3 + $0x1b0] sm:$0xff] }
  0xf8   :  { %v3262_v37 = vpop.eup %3261  ;;  %v4034_v56 = vcombine.high %v529_v27, %v533_v35 }
  0xf9   :  { %v466_v52 = vadd.f32 0.5, %v465_v4  ;;  %v473_v28 = vmul.f32 %v3260_v59, %v462_v48  ;;  %v470_v11 = vmul.f32 0.5, %v3262_v37  ;;  %v521_v4 = vld [vmem:[%s5500_s3 + $0x150] sm:$0xff]  ;;  %v4054_v37 = vcombine.low %v529_v27, %v533_v35  ;;  %v514_v27 = vld [vmem:[%s5500_s3 + $0x118] sm:$0xff] }
  0xfa   :  { %5880 = vst [vmem:[#allocation75_spill] sm:$0xff] %v4034_v56  ;;  %v525_v59 = vld [vmem:[%s5500_s3 + $0x170] sm:$0xff]  ;;  %v518_v35 = vld [vmem:[%s5500_s3 + $0x138] sm:$0xff] }
  0xfb   :  { %v472_v40 = vmul.f32 0.0, %v466_v52  ;;  %v471_v36 = vadd.f32 0.5, %v470_v11  ;;  %v522_v52 = vld [vmem:[%s5500_s3 + $0x158] sm:$0xff]  ;;  %5882 = vst [vmem:[#allocation77_spill] sm:$0xff] %v4054_v37 }
  0xfd   :  { %v4017_v21 = vadd.f32 %v473_v28, %v472_v40  ;;  %v534_v28 = vld [vmem:[%s5500_s3 + $0x1b8] sm:$0xff] }
  0xfe   :  { %v4036_v5 = vcombine.high %v530_v1, %v534_v28  ;;  %v4056_v11 = vcombine.low %v530_v1, %v534_v28  ;;  %v5886_v1 = vmov 0.0|0.0   ;;  %v4080_v28 = vcombine.low %v521_v4, %v525_v59 }
  0xff   :  { %3263 = vtanh.f32 %v4017_v21 }
 0x100   :  { %5881 = vst [vmem:[#allocation76_spill] sm:$0xff] %v4036_v5  ;;  %5883 = vst [vmem:[#allocation78_spill] sm:$0xff] %v4056_v11 }
 0x101   :  { %5887 = vst [vmem:[#allocation81_spill] sm:$0xff] %v4080_v28 }
 0x10c   :  { %v3264_v31 = vpop.eup %3263 }
 0x10d   :  { %v476_v40 = vmul.f32 %v3264_v31, %v471_v36  ;;  %v526_v36 = vld [vmem:[%s5500_s3 + $0x178] sm:$0xff]  ;;  %v4060_v31 = vcombine.high %v521_v4, %v525_v59 }
 0x10e   :  { %v506_v4 = vld [vmem:[%s5500_s3 + $0xd8] sm:$0xff] }
 0x10f   :  { %v4032_v48 = vpack.c.bf16 %v476_v40, %v476_v40  ;;  %5884 = vst [vmem:[#allocation79_spill] sm:$0xff] %v4060_v31  ;;  %v4062_v40 = vcombine.high %v522_v52, %v526_v36  ;;  %v510_v59 = vld [vmem:[%s5500_s3 + $0xf8] sm:$0xff] }
 0x111   :  { %1280 = vmatmul.mubr.bf16.vlgmr.msra.gmra.mxu0 %v4032_v48  ;;  %1321 = vmatmul.mubr.bf16.vlgmr.msra.gmra.mxu1 %v4032_v48  ;;  %5885 = vst [vmem:[#allocation80_spill] sm:$0xff] %v4062_v40 }
 0x112   :  { %1330 = vmatpush1.bf16.msra.mxu0 %v3980_v23  ;;  %1371 = vmatpush1.bf16.msra.mxu1 %v3984_v51  ;;  %v517_v51 = vld [vmem:[%s5500_s3 + $0x130] sm:$0xff]  ;;  %v4088_v23 = vcombine.high %v514_v27, %v518_v35 }
 0x113   :  { %1331 = vmatprep.subr.bf16.mxu0 %v4034_v56  ;;  %1372 = vmatprep.subr.bf16.mxu1 %v4036_v5  ;;  %v4082_v5 = vcombine.low %v522_v52, %v526_v36  ;;  %v4086_v56 = vcombine.high %v513_v13, %v517_v51  ;;  %v4104_v52 = vcombine.low %v513_v13, %v517_v51  ;;  %v498_v51 = vld [vmem:[%s5500_s3 + $0x98] sm:$0xff] }
 0x114   :  { %1361 = vmatprep.mubr.bf16.mxu0 %v5886_v1  ;;  %1402 = vmatprep.mubr.bf16.mxu1 %v5886_v1  ;;  %5890 = vst [vmem:[#allocation84_spill] sm:$0xff] %v4088_v23  ;;  %v505_v1 = vld [vmem:[%s5500_s3 + $0xd0] sm:$0xff]  ;;  %v4106_v36 = vcombine.low %v514_v27, %v518_v35  ;;  %v502_v13 = vld [vmem:[%s5500_s3 + $0xb8] sm:$0xff]  ;;  %v4130_v35 = vcombine.low %v506_v4, %v510_v59 }
 0x115   :  { %5888 = vst [vmem:[#allocation82_spill] sm:$0xff] %v4082_v5  ;;  %5889 = vst [vmem:[#allocation83_spill] sm:$0xff] %v4086_v56 }
 0x116   :  { %1332 = vmatpush1.bf16.msra.mxu0 %v4054_v37  ;;  %1373 = vmatpush1.bf16.msra.mxu1 %v4056_v11  ;;  %v509_v11 = vld [vmem:[%s5500_s3 + $0xf0] sm:$0xff]  ;;  %5891 = vst [vmem:[#allocation85_spill] sm:$0xff] %v4104_v52  ;;  %5892 = vst [vmem:[#allocation86_spill] sm:$0xff] %v4106_v36 }
 0x117   :  { %1333 = vmatprep.subr.bf16.mxu0 %v4060_v31  ;;  %1374 = vmatprep.subr.bf16.mxu1 %v4062_v40  ;;  %v4110_v40 = vcombine.high %v505_v1, %v509_v11  ;;  %v4112_v31 = vcombine.high %v506_v4, %v510_v59  ;;  %v497_v37 = vld [vmem:[%s5500_s3 + $0x90] sm:$0xff]  ;;  %v4128_v27 = vcombine.low %v505_v1, %v509_v11  ;;  %v490_v11 = vld [vmem:[%s5500_s3 + $0x58] sm:$0xff] }
 0x118   :  { %5896 = vst [vmem:[#allocation90_spill] sm:$0xff] %v4130_v35  ;;  %v494_v1 = vld [vmem:[%s5500_s3 + $0x78] sm:$0xff]  ;;  %v4154_v59 = vcombine.low %v498_v51, %v502_v13 }
 0x119   :  { %5893 = vst [vmem:[#allocation87_spill] sm:$0xff] %v4110_v40  ;;  %5894 = vst [vmem:[#allocation88_spill] sm:$0xff] %v4112_v31 }
 0x11a   :  { %1334 = vmatpush1.bf16.msra.mxu0 %v4080_v28  ;;  %1375 = vmatpush1.bf16.msra.mxu1 %v4082_v5  ;;  %v501_v5 = vld [vmem:[%s5500_s3 + $0xb0] sm:$0xff]  ;;  %5895 = vst [vmem:[#allocation89_spill] sm:$0xff] %v4128_v27  ;;  %5900 = vst [vmem:[#allocation94_spill] sm:$0xff] %v4154_v59 }
 0x11b   :  { %1335 = vmatprep.subr.bf16.mxu0 %v4086_v56  ;;  %1376 = vmatprep.subr.bf16.mxu1 %v4088_v23  ;;  %v4134_v23 = vcombine.high %v497_v37, %v501_v5  ;;  %v4136_v56 = vcombine.high %v498_v51, %v502_v13  ;;  %v489_v28 = vld [vmem:[%s5500_s3 + $0x50] sm:$0xff]  ;;  %v4152_v4 = vcombine.low %v497_v37, %v501_v5  ;;  %v482_v5 = vld [vmem:[%s5500_s3 + $0x18] sm:$0xff] }
 0x11c   :  { %v486_v37 = vld [vmem:[%s5500_s3 + $0x38] sm:$0xff]  ;;  %v4178_v13 = vcombine.low %v490_v11, %v494_v1 }
 0x11d   :  { %5897 = vst [vmem:[#allocation91_spill] sm:$0xff] %v4134_v23  ;;  %5898 = vst [vmem:[#allocation92_spill] sm:$0xff] %v4136_v56 }
 0x11e   :  { %1336 = vmatpush1.bf16.msra.mxu0 %v4104_v52  ;;  %1377 = vmatpush1.bf16.msra.mxu1 %v4106_v36  ;;  %v493_v36 = vld [vmem:[%s5500_s3 + $0x70] sm:$0xff]  ;;  %5899 = vst [vmem:[#allocation93_spill] sm:$0xff] %v4152_v4  ;;  %5904 = vst [vmem:[#allocation98_spill] sm:$0xff] %v4178_v13 }
 0x11f   :  { %1337 = vmatprep.subr.bf16.mxu0 %v4110_v40  ;;  %1378 = vmatprep.subr.bf16.mxu1 %v4112_v31  ;;  %v4158_v31 = vcombine.high %v489_v28, %v493_v36  ;;  %v4160_v40 = vcombine.high %v490_v11, %v494_v1  ;;  %v481_v52 = vld [vmem:[%s5500_s3 + $0x10] sm:$0xff]  ;;  %v4176_v51 = vcombine.low %v489_v28, %v493_v36  ;;  %v602_v28 = vld [vmem:[%s5500_s3 + $0x3d8] sm:$0xff] }
 0x120   :  { %v606_v36 = vld [vmem:[%s5500_s3 + $0x3f8] sm:$0xff]  ;;  %v4202_v1 = vcombine.low %v482_v5, %v486_v37 }
 0x121   :  { %5901 = vst [vmem:[#allocation95_spill] sm:$0xff] %v4158_v31  ;;  %5902 = vst [vmem:[#allocation96_spill] sm:$0xff] %v4160_v40 }
 0x122   :  { %1338 = vmatpush1.bf16.msra.mxu0 %v4128_v27  ;;  %1379 = vmatpush1.bf16.msra.mxu1 %v4130_v35  ;;  %v485_v35 = vld [vmem:[%s5500_s3 + $0x30] sm:$0xff]  ;;  %5903 = vst [vmem:[#allocation97_spill] sm:$0xff] %v4176_v51  ;;  %5908 = vst [vmem:[#allocation102_spill] sm:$0xff] %v4202_v1 }
 0x123   :  { %1339 = vmatprep.subr.bf16.mxu0 %v4134_v23  ;;  %1380 = vmatprep.subr.bf16.mxu1 %v4136_v56  ;;  %v4182_v56 = vcombine.high %v481_v52, %v485_v35  ;;  %v4184_v23 = vcombine.high %v482_v5, %v486_v37  ;;  %v601_v27 = vld [vmem:[%s5500_s3 + $0x3d0] sm:$0xff]  ;;  %v4200_v11 = vcombine.low %v481_v52, %v485_v35  ;;  %v594_v52 = vld [vmem:[%s5500_s3 + $0x398] sm:$0xff] }
 0x124   :  { %v598_v35 = vld [vmem:[%s5500_s3 + $0x3b8] sm:$0xff]  ;;  %v4226_v37 = vcombine.low %v602_v28, %v606_v36 }
 0x125   :  { %5905 = vst [vmem:[#allocation99_spill] sm:$0xff] %v4182_v56  ;;  %5906 = vst [vmem:[#allocation100_spill] sm:$0xff] %v4184_v23 }
 0x126   :  { %1340 = vmatpush1.bf16.msra.mxu0 %v4152_v4  ;;  %1381 = vmatpush1.bf16.msra.mxu1 %v4154_v59  ;;  %v605_v59 = vld [vmem:[%s5500_s3 + $0x3f0] sm:$0xff]  ;;  %5907 = vst [vmem:[#allocation101_spill] sm:$0xff] %v4200_v11  ;;  %5912 = vst [vmem:[#allocation106_spill] sm:$0xff] %v4226_v37 }
 0x127   :  { %1341 = vmatprep.subr.bf16.mxu0 %v4158_v31  ;;  %1382 = vmatprep.subr.bf16.mxu1 %v4160_v40  ;;  %v4206_v40 = vcombine.high %v601_v27, %v605_v59  ;;  %v4208_v31 = vcombine.high %v602_v28, %v606_v36  ;;  %v593_v4 = vld [vmem:[%s5500_s3 + $0x390] sm:$0xff]  ;;  %v4224_v5 = vcombine.low %v601_v27, %v605_v59  ;;  %v586_v27 = vld [vmem:[%s5500_s3 + $0x358] sm:$0xff] }
 0x128   :  { %v590_v59 = vld [vmem:[%s5500_s3 + $0x378] sm:$0xff]  ;;  %v4250_v36 = vcombine.low %v594_v52, %v598_v35 }
 0x129   :  { %5909 = vst [vmem:[#allocation103_spill] sm:$0xff] %v4206_v40  ;;  %5910 = vst [vmem:[#allocation104_spill] sm:$0xff] %v4208_v31 }
 0x12a   :  { %1342 = vmatpush1.bf16.msra.mxu0 %v4176_v51  ;;  %1383 = vmatpush1.bf16.msra.mxu1 %v4178_v13  ;;  %v597_v13 = vld [vmem:[%s5500_s3 + $0x3b0] sm:$0xff]  ;;  %5911 = vst [vmem:[#allocation105_spill] sm:$0xff] %v4224_v5  ;;  %5916 = vst [vmem:[#allocation110_spill] sm:$0xff] %v4250_v36 }
 0x12b   :  { %1343 = vmatprep.subr.bf16.mxu0 %v4182_v56  ;;  %1384 = vmatprep.subr.bf16.mxu1 %v4184_v23  ;;  %v4230_v23 = vcombine.high %v593_v4, %v597_v13  ;;  %v4232_v56 = vcombine.high %v594_v52, %v598_v35  ;;  %v585_v51 = vld [vmem:[%s5500_s3 + $0x350] sm:$0xff]  ;;  %v4248_v28 = vcombine.low %v593_v4, %v597_v13  ;;  %v578_v4 = vld [vmem:[%s5500_s3 + $0x318] sm:$0xff] }
 0x12c   :  { %v582_v13 = vld [vmem:[%s5500_s3 + $0x338] sm:$0xff]  ;;  %v4274_v35 = vcombine.low %v586_v27, %v590_v59 }
 0x12d   :  { %5913 = vst [vmem:[#allocation107_spill] sm:$0xff] %v4230_v23  ;;  %5914 = vst [vmem:[#allocation108_spill] sm:$0xff] %v4232_v56 }
 0x12e   :  { %1344 = vmatpush1.bf16.msra.mxu0 %v4200_v11  ;;  %1385 = vmatpush1.bf16.msra.mxu1 %v4202_v1  ;;  %v589_v1 = vld [vmem:[%s5500_s3 + $0x370] sm:$0xff]  ;;  %5915 = vst [vmem:[#allocation109_spill] sm:$0xff] %v4248_v28  ;;  %5920 = vst [vmem:[#allocation114_spill] sm:$0xff] %v4274_v35 }
 0x12f   :  { %1345 = vmatprep.subr.bf16.mxu0 %v4206_v40  ;;  %1386 = vmatprep.subr.bf16.mxu1 %v4208_v31  ;;  %v4254_v31 = vcombine.high %v585_v51, %v589_v1  ;;  %v4256_v40 = vcombine.high %v586_v27, %v590_v59  ;;  %v577_v11 = vld [vmem:[%s5500_s3 + $0x310] sm:$0xff]  ;;  %v4272_v52 = vcombine.low %v585_v51, %v589_v1  ;;  %v570_v51 = vld [vmem:[%s5500_s3 + $0x2d8] sm:$0xff] }
 0x130   :  { %v574_v1 = vld [vmem:[%s5500_s3 + $0x2f8] sm:$0xff]  ;;  %v4298_v59 = vcombine.low %v578_v4, %v582_v13 }
 0x131   :  { %5917 = vst [vmem:[#allocation111_spill] sm:$0xff] %v4254_v31  ;;  %5918 = vst [vmem:[#allocation112_spill] sm:$0xff] %v4256_v40 }
 0x132   :  { %1346 = vmatpush2.bf16.msra.mxu0 %v4224_v5  ;;  %1387 = vmatpush2.bf16.msra.mxu1 %v4226_v37  ;;  %v581_v37 = vld [vmem:[%s5500_s3 + $0x330] sm:$0xff]  ;;  %5919 = vst [vmem:[#allocation113_spill] sm:$0xff] %v4272_v52  ;;  %5924 = vst [vmem:[#allocation118_spill] sm:$0xff] %v4298_v59 }
 0x133   :  { %1347 = vmatprep.subr.bf16.mxu0 %v4230_v23  ;;  %1388 = vmatprep.subr.bf16.mxu1 %v4232_v56  ;;  %v4278_v56 = vcombine.high %v577_v11, %v581_v37  ;;  %v4280_v23 = vcombine.high %v578_v4, %v582_v13  ;;  %v569_v5 = vld [vmem:[%s5500_s3 + $0x2d0] sm:$0xff]  ;;  %v4296_v27 = vcombine.low %v577_v11, %v581_v37  ;;  %v562_v11 = vld [vmem:[%s5500_s3 + $0x298] sm:$0xff] }
 0x134   :  { %v566_v37 = vld [vmem:[%s5500_s3 + $0x2b8] sm:$0xff]  ;;  %v4322_v13 = vcombine.low %v570_v51, %v574_v1 }
 0x135   :  { %5921 = vst [vmem:[#allocation115_spill] sm:$0xff] %v4278_v56  ;;  %5922 = vst [vmem:[#allocation116_spill] sm:$0xff] %v4280_v23 }
 0x136   :  { %1348 = vmatpush2.bf16.msra.mxu0 %v4248_v28  ;;  %1389 = vmatpush2.bf16.msra.mxu1 %v4250_v36  ;;  %v573_v36 = vld [vmem:[%s5500_s3 + $0x2f0] sm:$0xff]  ;;  %5923 = vst [vmem:[#allocation117_spill] sm:$0xff] %v4296_v27  ;;  %5928 = vst [vmem:[#allocation122_spill] sm:$0xff] %v4322_v13 }
 0x137   :  { %1349 = vmatprep.subr.bf16.mxu0 %v4254_v31  ;;  %1390 = vmatprep.subr.bf16.mxu1 %v4256_v40  ;;  %v4302_v40 = vcombine.high %v569_v5, %v573_v36  ;;  %v4304_v31 = vcombine.high %v570_v51, %v574_v1  ;;  %v561_v28 = vld [vmem:[%s5500_s3 + $0x290] sm:$0xff]  ;;  %v4320_v4 = vcombine.low %v569_v5, %v573_v36  ;;  %v554_v5 = vld [vmem:[%s5500_s3 + $0x258] sm:$0xff] }
 0x138   :  { %v558_v36 = vld [vmem:[%s5500_s3 + $0x278] sm:$0xff]  ;;  %v4346_v1 = vcombine.low %v562_v11, %v566_v37 }
 0x139   :  { %5925 = vst [vmem:[#allocation119_spill] sm:$0xff] %v4302_v40  ;;  %5926 = vst [vmem:[#allocation120_spill] sm:$0xff] %v4304_v31 }
 0x13a   :  { %1350 = vmatpush2.bf16.msra.mxu0 %v4272_v52  ;;  %1391 = vmatpush2.bf16.msra.mxu1 %v4274_v35  ;;  %v565_v35 = vld [vmem:[%s5500_s3 + $0x2b0] sm:$0xff]  ;;  %5927 = vst [vmem:[#allocation121_spill] sm:$0xff] %v4320_v4  ;;  %5932 = vst [vmem:[#allocation126_spill] sm:$0xff] %v4346_v1 }
 0x13b   :  { %1351 = vmatprep.subr.bf16.mxu0 %v4278_v56  ;;  %1392 = vmatprep.subr.bf16.mxu1 %v4280_v23  ;;  %v4326_v23 = vcombine.high %v561_v28, %v565_v35  ;;  %v4328_v56 = vcombine.high %v562_v11, %v566_v37  ;;  %v553_v52 = vld [vmem:[%s5500_s3 + $0x250] sm:$0xff]  ;;  %v4344_v51 = vcombine.low %v561_v28, %v565_v35  ;;  %v546_v28 = vld [vmem:[%s5500_s3 + $0x218] sm:$0xff] }
 0x13c   :  { %v550_v35 = vld [vmem:[%s5500_s3 + $0x238] sm:$0xff]  ;;  %v4370_v37 = vcombine.low %v554_v5, %v558_v36 }
 0x13d   :  { %5929 = vst [vmem:[#allocation123_spill] sm:$0xff] %v4326_v23  ;;  %5930 = vst [vmem:[#allocation124_spill] sm:$0xff] %v4328_v56 }
 0x13e   :  { %1352 = vmatpush2.bf16.msra.mxu0 %v4296_v27  ;;  %1393 = vmatpush2.bf16.msra.mxu1 %v4298_v59  ;;  %v557_v59 = vld [vmem:[%s5500_s3 + $0x270] sm:$0xff]  ;;  %5931 = vst [vmem:[#allocation125_spill] sm:$0xff] %v4344_v51  ;;  %5936 = vst [vmem:[#allocation130_spill] sm:$0xff] %v4370_v37 }
 0x13f   :  { %1353 = vmatprep.subr.bf16.mxu0 %v4302_v40  ;;  %1394 = vmatprep.subr.bf16.mxu1 %v4304_v31  ;;  %v4350_v31 = vcombine.high %v553_v52, %v557_v59  ;;  %v4352_v40 = vcombine.high %v554_v5, %v558_v36  ;;  %v545_v27 = vld [vmem:[%s5500_s3 + $0x210] sm:$0xff]  ;;  %v4368_v11 = vcombine.low %v553_v52, %v557_v59  ;;  %v5942_v52 = vld [vmem:[#allocation48_spill] sm:$0xff]  ;;  %v5944_v59 = vld [vmem:[#allocation50_spill] sm:$0xff] }
 0x140   :  { %v5946_v5 = vld [vmem:[#allocation52_spill] sm:$0xff]  ;;  %v5947_v36 = vld [vmem:[#allocation53_spill] sm:$0xff] }
 0x141   :  { %5933 = vst [vmem:[#allocation127_spill] sm:$0xff] %v4350_v31  ;;  %5934 = vst [vmem:[#allocation128_spill] sm:$0xff] %v4352_v40 }
 0x142   :  { %1354 = vmatpush2.bf16.msra.mxu0 %v4320_v4  ;;  %1395 = vmatpush2.bf16.msra.mxu1 %v4322_v13  ;;  %v549_v13 = vld [vmem:[%s5500_s3 + $0x230] sm:$0xff]  ;;  %5935 = vst [vmem:[#allocation129_spill] sm:$0xff] %v4368_v11 }
 0x143   :  { %1355 = vmatprep.subr.bf16.mxu0 %v4326_v23  ;;  %1396 = vmatprep.subr.bf16.mxu1 %v4328_v56  ;;  %v4374_v56 = vcombine.high %v545_v27, %v549_v13  ;;  %v4376_v23 = vcombine.high %v546_v28, %v550_v35  ;;  %v4380_v4 = vcombine.low %v545_v27, %v549_v13  ;;  %v5943_v27 = vld [vmem:[#allocation49_spill] sm:$0xff]  ;;  %v5945_v13 = vld [vmem:[#allocation51_spill] sm:$0xff] }
 0x145   :  { %5937 = vst [vmem:[#allocation131_spill] sm:$0xff] %v4374_v56  ;;  %5938 = vst [vmem:[#allocation132_spill] sm:$0xff] %v4376_v23 }
 0x146   :  { %1356 = vmatpush2.bf16.msra.mxu0 %v4344_v51  ;;  %1397 = vmatpush2.bf16.msra.mxu1 %v4346_v1  ;;  %5939 = vst [vmem:[#allocation133_spill] sm:$0xff] %v4380_v4  ;;  %v4382_v51 = vcombine.low %v546_v28, %v550_v35  ;;  %v5948_v28 = vld [vmem:[#allocation54_spill] sm:$0xff]  ;;  %v5949_v35 = vld [vmem:[#allocation55_spill] sm:$0xff] }
 0x147   :  { %1357 = vmatprep.subr.bf16.mxu0 %v4350_v31  ;;  %1398 = vmatprep.subr.bf16.mxu1 %v4352_v40 }
 0x148   :  { %5940 = vst [vmem:[#allocation134_spill] sm:$0xff] %v4382_v51 }
 0x14a   :  { %1358 = vmatpush2.bf16.msra.mxu0 %v4368_v11  ;;  %1399 = vmatpush2.bf16.msra.mxu1 %v4370_v37 }
 0x14b   :  { %1359 = vmatprep.subr.bf16.mxu0 %v4374_v56  ;;  %1400 = vmatprep.subr.bf16.mxu1 %v4376_v23 }
 0x14e   :  { %1360 = vmatpush2.bf16.msra.mxu0 %v4380_v4  ;;  %1401 = vmatpush2.bf16.msra.mxu1 %v4382_v51 }
 0x14f   :  { %1482 = vmatprep.subr.bf16.mxu0 %v3577_v38  ;;  %1523 = vmatprep.subr.bf16.mxu1 %v3585_v41 }
 0x151   :  { %1362 = vmatmul.mubr.bf16.vlgmr.msra.gmra.mxu0 %v4032_v48  ;;  %1403 = vmatmul.mubr.bf16.vlgmr.msra.gmra.mxu1 %v4032_v48  ;;  %v5941_v48 = vld [vmem:[#allocation47_spill] sm:$0xff] }
 0x152   :  { %1483 = vmatpush1.bf16.msra.mxu0 %v3587_v42  ;;  %1524 = vmatpush1.bf16.msra.mxu1 %v3598_v46 }
 0x153   :  { %1484 = vmatprep.subr.bf16.mxu0 %v3596_v45  ;;  %1525 = vmatprep.subr.bf16.mxu1 %v3607_v49 }
 0x156   :  { %1485 = vmatpush1.bf16.msra.mxu0 %v3610_v50  ;;  %1526 = vmatpush1.bf16.msra.mxu1 %v3623_v54 }
 0x157   :  { %1486 = vmatprep.subr.bf16.mxu0 %v3620_v53  ;;  %1527 = vmatprep.subr.bf16.mxu1 %v3633_v57 }
 0x15a   :  { %1487 = vmatpush1.bf16.msra.mxu0 %v3636_v58  ;;  %1528 = vmatpush1.bf16.msra.mxu1 %v3648_v62 }
 0x15b   :  { %1488 = vmatprep.subr.bf16.mxu0 %v3645_v61  ;;  %1529 = vmatprep.subr.bf16.mxu1 %v3657_v2 }
 0x15e   :  { %1489 = vmatpush1.bf16.msra.mxu0 %v3660_v3  ;;  %1530 = vmatpush1.bf16.msra.mxu1 %v3672_v7 }
 0x15f   :  { %1490 = vmatprep.subr.bf16.mxu0 %v3669_v6  ;;  %1531 = vmatprep.subr.bf16.mxu1 %v3675_v8 }
 0x162   :  { %1491 = vmatpush1.bf16.msra.mxu0 %v3678_v9  ;;  %1532 = vmatpush1.bf16.msra.mxu1 %v3682_v10 }
 0x163   :  { %1492 = vmatprep.subr.bf16.mxu0 %v3696_v14  ;;  %1533 = vmatprep.subr.bf16.mxu1 %v3701_v16 }
 0x166   :  { %1493 = vmatpush1.bf16.msra.mxu0 %v3703_v17  ;;  %1534 = vmatpush1.bf16.msra.mxu1 %v3705_v18 }
 0x167   :  { %1494 = vmatprep.subr.bf16.mxu0 %v3720_v22  ;;  %1535 = vmatprep.subr.bf16.mxu1 %v3725_v24 }
 0x16a   :  { %1495 = vmatpush1.bf16.msra.mxu0 %v3727_v25  ;;  %1536 = vmatpush1.bf16.msra.mxu1 %v3730_v26 }
 0x16b   :  { %1496 = vmatprep.subr.bf16.mxu0 %v3744_v30  ;;  %1537 = vmatprep.subr.bf16.mxu1 %v3749_v32 }
 0x16e   :  { %1497 = vmatpush1.bf16.msra.mxu0 %v3751_v33  ;;  %1538 = vmatpush1.bf16.msra.mxu1 %v3753_v34 }
 0x16f   :  { %1498 = vmatprep.subr.bf16.mxu0 %v3768_v39  ;;  %1539 = vmatprep.subr.bf16.mxu1 %v3773_v43 }
 0x172   :  { %1499 = vmatpush2.bf16.msra.mxu0 %v3775_v44  ;;  %1540 = vmatpush2.bf16.msra.mxu1 %v3777_v47  ;;  %v5989_v47 = vld [vmem:[#allocation72_spill] sm:$0xff] }
 0x173   :  { %1500 = vmatprep.subr.bf16.mxu0 %v3792_v55  ;;  %1541 = vmatprep.subr.bf16.mxu1 %v3800_v60  ;;  %v5988_v60 = vld [vmem:[#allocation73_spill] sm:$0xff] }
 0x176   :  { %1501 = vmatpush2.bf16.msra.mxu0 %v3802_v63  ;;  %1542 = vmatpush2.bf16.msra.mxu1 %v3804_v0 }
 0x177   :  { %1502 = vmatprep.subr.bf16.mxu0 %v3820_v12  ;;  %1543 = vmatprep.subr.bf16.mxu1 %v3826_v15 }
 0x17a   :  { %1503 = vmatpush2.bf16.msra.mxu0 %v3828_v19  ;;  %1544 = vmatpush2.bf16.msra.mxu1 %v3830_v20  ;;  %v5950_v19 = vld [vmem:[#allocation56_spill] sm:$0xff]  ;;  %v5951_v20 = vld [vmem:[#allocation57_spill] sm:$0xff] }
 0x17b   :  { %1504 = vmatprep.subr.bf16.mxu0 %v5941_v48  ;;  %1545 = vmatprep.subr.bf16.mxu1 %v5942_v52  ;;  %v5952_v48 = vld [vmem:[#allocation58_spill] sm:$0xff]  ;;  %v5953_v52 = vld [vmem:[#allocation59_spill] sm:$0xff] }
 0x17e   :  { %1505 = vmatpush2.bf16.msra.mxu0 %v5943_v27  ;;  %1546 = vmatpush2.bf16.msra.mxu1 %v5944_v59  ;;  %v5954_v27 = vld [vmem:[#allocation60_spill] sm:$0xff]  ;;  %v5955_v59 = vld [vmem:[#allocation61_spill] sm:$0xff] }
 0x17f   :  { %1506 = vmatprep.subr.bf16.mxu0 %v5945_v13  ;;  %1547 = vmatprep.subr.bf16.mxu1 %v5946_v5  ;;  %v5956_v13 = vld [vmem:[#allocation62_spill] sm:$0xff]  ;;  %v5957_v5 = vld [vmem:[#allocation63_spill] sm:$0xff] }
 0x182   :  { %1507 = vmatpush2.bf16.msra.mxu0 %v5947_v36  ;;  %1548 = vmatpush2.bf16.msra.mxu1 %v5948_v28  ;;  %v5958_v36 = vld [vmem:[#allocation64_spill] sm:$0xff]  ;;  %v5959_v28 = vld [vmem:[#allocation65_spill] sm:$0xff] }
 0x183   :  { %1508 = vmatprep.subr.bf16.mxu0 %v5949_v35  ;;  %1549 = vmatprep.subr.bf16.mxu1 %v5950_v19  ;;  %v5960_v35 = vld [vmem:[#allocation66_spill] sm:$0xff]  ;;  %v5961_v19 = vld [vmem:[#allocation67_spill] sm:$0xff] }
 0x186   :  { %1509 = vmatpush2.bf16.msra.mxu0 %v5951_v20  ;;  %1550 = vmatpush2.bf16.msra.mxu1 %v5952_v48  ;;  %v5962_v20 = vld [vmem:[#allocation68_spill] sm:$0xff]  ;;  %v387_v48 = vpop.f32.mrf.mxu1 }
 0x187   :  { %1510 = vmatprep.subr.bf16.mxu0 %v5953_v52  ;;  %1551 = vmatprep.subr.bf16.mxu1 %v5954_v27  ;;  %v314_v52 = vpop.f32.mrf.mxu0 }
 0x188   :  { %v4456_v15 = vpop.f32.mrf.mxu1 }
 0x189   :  { %v316_v27 = vpop.f32.mrf.mxu0 }
 0x18a   :  { %1511 = vmatpush2.bf16.msra.mxu0 %v5955_v59  ;;  %1552 = vmatpush2.bf16.msra.mxu1 %v5956_v13  ;;  %v4458_v59 = vpop.f32.mrf.mxu1 }
 0x18b   :  { %1512 = vmatprep.subr.bf16.mxu0 %v5957_v5  ;;  %1553 = vmatprep.subr.bf16.mxu1 %v5958_v36  ;;  %5963 = vst [vmem:[#allocation135_spill] sm:$0xff] %v4458_v59  ;;  %v4460_v13 = vpop.f32.mrf.mxu0 }
 0x18c   :  { %5964 = vst [vmem:[#allocation136_spill] sm:$0xff] %v4460_v13  ;;  %v4462_v5 = vpop.f32.mrf.mxu1 }
 0x18d   :  { %5965 = vst [vmem:[#allocation137_spill] sm:$0xff] %v4462_v5  ;;  %v4464_v36 = vpop.f32.mrf.mxu0 }
 0x18e   :  { %1513 = vmatpush2.bf16.msra.mxu0 %v5959_v28  ;;  %1554 = vmatpush2.bf16.msra.mxu1 %v5960_v35  ;;  %5966 = vst [vmem:[#allocation138_spill] sm:$0xff] %v4464_v36  ;;  %v4466_v28 = vpop.f32.mrf.mxu1 }
 0x18f   :  { %1564 = vmatprep.subr.bf16.mxu0 %v5961_v19  ;;  %1605 = vmatprep.subr.bf16.mxu1 %v5962_v20  ;;  %5967 = vst [vmem:[#allocation139_spill] sm:$0xff] %v4466_v28  ;;  %v4468_v35 = vpop.f32.mrf.mxu0 }
 0x190   :  { %5968 = vst [vmem:[#allocation140_spill] sm:$0xff] %v4468_v35  ;;  %v4470_v19 = vpop.f32.mrf.mxu1 }
 0x191   :  { %5969 = vst [vmem:[#allocation141_spill] sm:$0xff] %v4470_v19  ;;  %v4472_v20 = vpop.f32.mrf.mxu0 }
 0x192   :  { %5970 = vst [vmem:[#allocation142_spill] sm:$0xff] %v4472_v20  ;;  %v4474_v12 = vpop.f32.mrf.mxu1 }
 0x193   :  { %5971 = vst [vmem:[#allocation143_spill] sm:$0xff] %v4474_v12  ;;  %v4476_v0 = vpop.f32.mrf.mxu0 }
 0x194   :  { %5972 = vst [vmem:[#allocation144_spill] sm:$0xff] %v4476_v0  ;;  %v4478_v63 = vpop.f32.mrf.mxu1 }
 0x195   :  { %5973 = vst [vmem:[#allocation145_spill] sm:$0xff] %v4478_v63  ;;  %v4480_v59 = vpop.f32.mrf.mxu0 }
 0x196   :  { %5974 = vst [vmem:[#allocation146_spill] sm:$0xff] %v4480_v59  ;;  %v4482_v13 = vpop.f32.mrf.mxu1 }
 0x197   :  { %5975 = vst [vmem:[#allocation147_spill] sm:$0xff] %v4482_v13  ;;  %v4484_v5 = vpop.f32.mrf.mxu0 }
 0x198   :  { %5976 = vst [vmem:[#allocation148_spill] sm:$0xff] %v4484_v5  ;;  %v4486_v36 = vpop.f32.mrf.mxu1  ;;  %v5987_v5 = vld [vmem:[#allocation71_spill] sm:$0xff] }
 0x199   :  { %5977 = vst [vmem:[#allocation149_spill] sm:$0xff] %v4486_v36  ;;  %v4488_v28 = vpop.f32.mrf.mxu0  ;;  %v315_v36 = vadd.f32 %v314_v52, %v5987_v5 }
 0x19a   :  { %5978 = vst [vmem:[#allocation150_spill] sm:$0xff] %v4488_v28  ;;  %v4490_v35 = vpop.f32.mrf.mxu1  ;;  %v388_v28 = vadd.f32 %v387_v48, %v5988_v60 }
 0x19b   :  { %5979 = vst [vmem:[#allocation151_spill] sm:$0xff] %v4490_v35  ;;  %v4492_v19 = vpop.f32.mrf.mxu0 }
 0x19c   :  { %5980 = vst [vmem:[#allocation152_spill] sm:$0xff] %v4492_v19  ;;  %v4494_v20 = vpop.f32.mrf.mxu1  ;;  %v317_v19 = vadd.f32 %v316_v27, %v5989_v47 }
 0x19d   :  { %5981 = vst [vmem:[#allocation153_spill] sm:$0xff] %v4494_v20  ;;  %v4496_v12 = vpop.f32.mrf.mxu0 }
 0x19e   :  { %5982 = vst [vmem:[#allocation154_spill] sm:$0xff] %v4496_v12  ;;  %v4498_v0 = vpop.f32.mrf.mxu1 }
 0x19f   :  { %5983 = vst [vmem:[#allocation155_spill] sm:$0xff] %v4498_v0  ;;  %v4500_v63 = vpop.f32.mrf.mxu0 }
 0x1a0   :  { %5984 = vst [vmem:[#allocation156_spill] sm:$0xff] %v4500_v63  ;;  %v4502_v59 = vpop.f32.mrf.mxu1 }
 0x1a1   :  { %5985 = vst [vmem:[#allocation157_spill] sm:$0xff] %v4502_v59  ;;  %v4504_v13 = vpop.f32.mrf.mxu0 }
 0x1a2   :  { %5986 = vst [vmem:[#allocation158_spill] sm:$0xff] %v4504_v13 }
 0x1d1   :  { %v1281_v55 = vpop.f32.mrf.mxu0  ;;  %v1322_v35 = vpop.f32.mrf.mxu1 }
 0x1d2   :  { %v1458_v44 = vadd.f32 %v1281_v55, %v315_v36  ;;  %v1460_v20 = vadd.f32 %v1322_v35, %v388_v28 }
 0x1d3   :  { %v1283_v43 = vpop.f32.mrf.mxu0  ;;  %v1324_v12 = vpop.f32.mrf.mxu1 }
 0x1d4   :  { %v1462_v39 = vmul.f32 0.5, %v1458_v44  ;;  %v1459_v0 = vadd.f32 %v1283_v43, %v317_v19  ;;  %v5992_v43 = vsub.s32 1, %v3988_v29 }
 0x1d5   :  { %v1285_v34 = vpop.f32.mrf.mxu0  ;;  %v1326_v63 = vpop.f32.mrf.mxu1 }
 0x1d6   :  { %3265 = vtanh.f32 %v1462_v39  ;;  %v1466_v59 = vmul.f32 0.5, %v1459_v0  ;;  %v454_v34 = vld [vmem:[%s5502_s4] sm:$0xf] }
 0x1d7   :  { %v1286_v33 = vpop.f32.mrf.mxu0  ;;  %v1327_v13 = vpop.f32.mrf.mxu1  ;;  %v4521_v63 = vrot.slane %v454_v34, %v5992_v43  ;;  %v5998_v43 = vld [vmem:[#allocation74_spill] sm:$0xff] }
 0x1d8   :  { %3267 = vtanh.f32 %v1466_v59  ;;  %v5990_v33 = vsub.s32 0, %v3988_v29  ;;  %v5994_v59 = vsub.s32 2, %v3988_v29 }
 0x1d9   :  { %3269 = vtanh.f32 %v1460_v20  ;;  %5993 = vst [vmem:[#allocation160_spill] sm:$0xff] %v4521_v63 }
 0x1da   :  { %v4517_v39 = vrot.slane %v454_v34, %v5990_v33  ;;  %v4526_v13 = vrot.slane %v454_v34, %v5994_v59 }
 0x1dc   :  { %5991 = vst [vmem:[#allocation159_spill] sm:$0xff] %v4517_v39  ;;  %5995 = vst [vmem:[#allocation161_spill] sm:$0xff] %v4526_v13 }
 0x1e3   :  { %v3266_v52 = vpop.eup %3265 }
 0x1e4   :  { %v1464_v48 = vmul.f32 0.5, %v3266_v52 }
 0x1e5   :  { %v3268_v60 = vpop.eup %3267 }
 0x1e6   :  { %v1465_v5 = vadd.f32 0.5, %v1464_v48  ;;  %v1468_v32 = vmul.f32 0.5, %v3268_v60  ;;  %v3270_v27 = vpop.eup %3269 }
 0x1e8   :  { %v1469_v55 = vadd.f32 0.5, %v1468_v32  ;;  %v1476_v36 = vmul.f32 %v3270_v27, %v1465_v5 }
 0x1ea   :  { %v1475_v28 = vmul.f32 %v1469_v55, %v4017_v21 }
 0x1ec   :  { %v4510_v44 = vadd.f32 %v1476_v36, %v1475_v28  ;;  %v5996_v28 = vsub.s32 3, %v3988_v29 }
 0x1ee   :  { %v4532_v33 = vrot.slane %v454_v34, %v5996_v28 }
 0x1f0   :  { %5997 = vst [vmem:[#allocation162_spill] sm:$0xff] %v4532_v33 }
 0x211   :  { %v1363_v60 = vpop.f32.mrf.mxu0  ;;  %v1404_v0 = vpop.f32.mrf.mxu1 }
 0x212   :  { %v1432_v32 = vadd.f32 %v4517_v39, %v1363_v60  ;;  %v1434_v36 = vadd.f32 %v4526_v13, %v1404_v0  ;;  %v390_v60 = vadd.f32 %v4456_v15, %v5998_v43 }
 0x213   :  { %v1365_v19 = vpop.f32.mrf.mxu0  ;;  %v1406_v20 = vpop.f32.mrf.mxu1 }
 0x214   :  { %v1436_v21 = vmul.f32 0.5, %v1432_v32  ;;  %v1433_v5 = vadd.f32 %v4521_v63, %v1365_v19  ;;  %v1461_v32 = vadd.f32 %v1324_v12, %v390_v60  ;;  %v1435_v19 = vadd.f32 %v4532_v33, %v1406_v20 }
 0x215   :  { %v1367_v35 = vpop.f32.mrf.mxu0  ;;  %v1408_v52 = vpop.f32.mrf.mxu1 }
 0x216   :  { %3271 = vtanh.f32 %v1436_v21  ;;  %v1440_v48 = vmul.f32 0.5, %v1433_v5  ;;  %v1471_v59 = vmul.f32 0.5, %v1461_v32  ;;  %v1445_v35 = vmul.f32 0.5, %v1435_v19 }
 0x217   :  { %v1368_v27 = vpop.f32.mrf.mxu0  ;;  %v1409_v55 = vpop.f32.mrf.mxu1 }
 0x218   :  { %3273 = vtanh.f32 %v1440_v48 }
 0x219   :  { %3275 = vtanh.f32 %v1434_v36 }
 0x21a   :  { %3277 = vtanh.f32 %v1471_v59 }
 0x21b   :  { %3279 = vtanh.f32 %v1445_v35 }
 0x21c   :  { %3281 = vtanh.f32 %v4510_v44 }
 0x223   :  { %v3272_v21 = vpop.eup %3271 }
 0x224   :  { %v1438_v5 = vmul.f32 0.5, %v3272_v21 }
 0x225   :  { %v3274_v52 = vpop.eup %3273 }
 0x226   :  { %v1439_v27 = vadd.f32 0.5, %v1438_v5  ;;  %v1442_v0 = vmul.f32 0.5, %v3274_v52  ;;  %v3276_v29 = vpop.eup %3275 }
 0x227   :  { %v3278_v12 = vpop.eup %3277 }
 0x228   :  { %v1443_v48 = vadd.f32 0.5, %v1442_v0  ;;  %v1450_v55 = vmul.f32 %v3276_v29, %v1439_v27  ;;  %v3280_v20 = vpop.eup %3279  ;;  %v1473_v36 = vmul.f32 0.5, %v3278_v12  ;;  %v5999_v27 = vld [vmem:[#allocation69_spill] sm:$0xff]  ;;  %v6000_v0 = vld [vmem:[#allocation70_spill] sm:$0xff]  ;;  %v6002_v29 = vld [vmem:[#allocation76_spill] sm:$0xff] }
 0x229   :  { %v1447_v28 = vmul.f32 0.5, %v3280_v20  ;;  %v3282_v60 = vpop.eup %3281  ;;  %v6005_v12 = vld [vmem:[#allocation79_spill] sm:$0xff]  ;;  %v6006_v20 = vld [vmem:[#allocation80_spill] sm:$0xff] }
 0x22a   :  { %v1449_v34 = vmul.f32 0.0, %v1443_v48  ;;  %v1474_v32 = vadd.f32 0.5, %v1473_v36  ;;  %v6001_v48 = vld [vmem:[#allocation75_spill] sm:$0xff]  ;;  %v6007_v36 = vld [vmem:[#allocation81_spill] sm:$0xff] }
 0x22b   :  { %v1448_v19 = vadd.f32 0.5, %v1447_v28  ;;  %v6008_v28 = vld [vmem:[#allocation82_spill] sm:$0xff] }
 0x22c   :  { %v4538_v15 = vadd.f32 %v1450_v55, %v1449_v34  ;;  %v1479_v21 = vmul.f32 %v3282_v60, %v1474_v32  ;;  %v6003_v34 = vld [vmem:[#allocation77_spill] sm:$0xff]  ;;  %v6004_v55 = vld [vmem:[#allocation78_spill] sm:$0xff]  ;;  %v6009_v60 = vld [vmem:[#allocation83_spill] sm:$0xff] }
 0x22d   :  { %v6010_v32 = vld [vmem:[#allocation84_spill] sm:$0xff] }
 0x22e   :  { %3283 = vtanh.f32 %v4538_v15  ;;  %v4541_v52 = vpack.c.bf16 %v1479_v21, %v1479_v21  ;;  %v6013_v21 = vld [vmem:[#allocation87_spill] sm:$0xff] }
 0x23b   :  { %v3284_v59 = vpop.eup %3283 }
 0x23c   :  { %v1453_v35 = vmul.f32 %v3284_v59, %v1448_v19  ;;  %v6011_v19 = vld [vmem:[#allocation85_spill] sm:$0xff]  ;;  %v6012_v59 = vld [vmem:[#allocation86_spill] sm:$0xff] }
 0x23e   :  { %v1481_v5 = vpack.c.bf16 %v1453_v35, %v1453_v35  ;;  %v6014_v35 = vld [vmem:[#allocation88_spill] sm:$0xff] }
 0x240   :  { %1514 = vmatprep.mubr.bf16.mxu0 %v1481_v5  ;;  %1555 = vmatprep.mubr.bf16.mxu1 %v1481_v5 }
 0x241   :  { %1515 = vmatmul.mubr.bf16.vlgmr.msra.gmra.mxu0 %v4541_v52  ;;  %1556 = vmatmul.mubr.bf16.vlgmr.msra.gmra.mxu1 %v4541_v52 }
 0x242   :  { %1565 = vmatpush1.bf16.msra.mxu0 %v5999_v27  ;;  %1606 = vmatpush1.bf16.msra.mxu1 %v6000_v0 }
 0x243   :  { %1596 = vmatprep.mubr.bf16.mxu0 %v1481_v5  ;;  %1637 = vmatprep.mubr.bf16.mxu1 %v1481_v5  ;;  %v6015_v5 = vld [vmem:[#allocation89_spill] sm:$0xff] }
 0x244   :  { %1566 = vmatprep.subr.bf16.mxu0 %v6001_v48  ;;  %1607 = vmatprep.subr.bf16.mxu1 %v6002_v29 }
 0x246   :  { %1567 = vmatpush1.bf16.msra.mxu0 %v6003_v34  ;;  %1608 = vmatpush1.bf16.msra.mxu1 %v6004_v55 }
 0x247   :  { %1568 = vmatprep.subr.bf16.mxu0 %v6005_v12  ;;  %1609 = vmatprep.subr.bf16.mxu1 %v6006_v20  ;;  %v6016_v12 = vld [vmem:[#allocation90_spill] sm:$0xff]  ;;  %v6017_v20 = vld [vmem:[#allocation91_spill] sm:$0xff] }
 0x24a   :  { %1569 = vmatpush1.bf16.msra.mxu0 %v6007_v36  ;;  %1610 = vmatpush1.bf16.msra.mxu1 %v6008_v28  ;;  %v6018_v36 = vld [vmem:[#allocation92_spill] sm:$0xff]  ;;  %v6019_v28 = vld [vmem:[#allocation93_spill] sm:$0xff] }
 0x24b   :  { %1570 = vmatprep.subr.bf16.mxu0 %v6009_v60  ;;  %1611 = vmatprep.subr.bf16.mxu1 %v6010_v32  ;;  %v6020_v60 = vld [vmem:[#allocation94_spill] sm:$0xff]  ;;  %v6021_v32 = vld [vmem:[#allocation95_spill] sm:$0xff] }
 0x24e   :  { %1571 = vmatpush1.bf16.msra.mxu0 %v6011_v19  ;;  %1612 = vmatpush1.bf16.msra.mxu1 %v6012_v59  ;;  %v6022_v19 = vld [vmem:[#allocation96_spill] sm:$0xff]  ;;  %v6023_v59 = vld [vmem:[#allocation97_spill] sm:$0xff] }
 0x24f   :  { %1572 = vmatprep.subr.bf16.mxu0 %v6013_v21  ;;  %1613 = vmatprep.subr.bf16.mxu1 %v6014_v35  ;;  %v6024_v21 = vld [vmem:[#allocation98_spill] sm:$0xff]  ;;  %v6025_v35 = vld [vmem:[#allocation99_spill] sm:$0xff] }
 0x252   :  { %1573 = vmatpush1.bf16.msra.mxu0 %v6015_v5  ;;  %1614 = vmatpush1.bf16.msra.mxu1 %v6016_v12  ;;  %v6026_v5 = vld [vmem:[#allocation100_spill] sm:$0xff]  ;;  %v6027_v12 = vld [vmem:[#allocation101_spill] sm:$0xff] }
 0x253   :  { %1574 = vmatprep.subr.bf16.mxu0 %v6017_v20  ;;  %1615 = vmatprep.subr.bf16.mxu1 %v6018_v36  ;;  %v6028_v20 = vld [vmem:[#allocation102_spill] sm:$0xff]  ;;  %v6029_v36 = vld [vmem:[#allocation103_spill] sm:$0xff] }
 0x256   :  { %1575 = vmatpush1.bf16.msra.mxu0 %v6019_v28  ;;  %1616 = vmatpush1.bf16.msra.mxu1 %v6020_v60  ;;  %v6030_v28 = vld [vmem:[#allocation104_spill] sm:$0xff]  ;;  %v6031_v60 = vld [vmem:[#allocation105_spill] sm:$0xff] }
 0x257   :  { %1576 = vmatprep.subr.bf16.mxu0 %v6021_v32  ;;  %1617 = vmatprep.subr.bf16.mxu1 %v6022_v19  ;;  %v6032_v32 = vld [vmem:[#allocation106_spill] sm:$0xff]  ;;  %v6033_v19 = vld [vmem:[#allocation107_spill] sm:$0xff] }
 0x25a   :  { %1577 = vmatpush1.bf16.msra.mxu0 %v6023_v59  ;;  %1618 = vmatpush1.bf16.msra.mxu1 %v6024_v21  ;;  %v6034_v59 = vld [vmem:[#allocation108_spill] sm:$0xff]  ;;  %v6035_v21 = vld [vmem:[#allocation109_spill] sm:$0xff] }
 0x25b   :  { %1578 = vmatprep.subr.bf16.mxu0 %v6025_v35  ;;  %1619 = vmatprep.subr.bf16.mxu1 %v6026_v5  ;;  %v6036_v35 = vld [vmem:[#allocation110_spill] sm:$0xff]  ;;  %v6037_v5 = vld [vmem:[#allocation111_spill] sm:$0xff] }
 0x25e   :  { %1579 = vmatpush1.bf16.msra.mxu0 %v6027_v12  ;;  %1620 = vmatpush1.bf16.msra.mxu1 %v6028_v20  ;;  %v6038_v12 = vld [vmem:[#allocation112_spill] sm:$0xff]  ;;  %v6039_v20 = vld [vmem:[#allocation113_spill] sm:$0xff] }
 0x25f   :  { %1580 = vmatprep.subr.bf16.mxu0 %v6029_v36  ;;  %1621 = vmatprep.subr.bf16.mxu1 %v6030_v28  ;;  %v6040_v36 = vld [vmem:[#allocation114_spill] sm:$0xff]  ;;  %v6041_v28 = vld [vmem:[#allocation115_spill] sm:$0xff] }
 0x262   :  { %1581 = vmatpush2.bf16.msra.mxu0 %v6031_v60  ;;  %1622 = vmatpush2.bf16.msra.mxu1 %v6032_v32  ;;  %v6042_v60 = vld [vmem:[#allocation116_spill] sm:$0xff]  ;;  %v6043_v32 = vld [vmem:[#allocation117_spill] sm:$0xff] }
 0x263   :  { %1582 = vmatprep.subr.bf16.mxu0 %v6033_v19  ;;  %1623 = vmatprep.subr.bf16.mxu1 %v6034_v59  ;;  %v6044_v19 = vld [vmem:[#allocation118_spill] sm:$0xff]  ;;  %v6045_v59 = vld [vmem:[#allocation119_spill] sm:$0xff] }
 0x266   :  { %1583 = vmatpush2.bf16.msra.mxu0 %v6035_v21  ;;  %1624 = vmatpush2.bf16.msra.mxu1 %v6036_v35  ;;  %v6046_v21 = vld [vmem:[#allocation120_spill] sm:$0xff]  ;;  %v6047_v35 = vld [vmem:[#allocation121_spill] sm:$0xff] }
 0x267   :  { %1584 = vmatprep.subr.bf16.mxu0 %v6037_v5  ;;  %1625 = vmatprep.subr.bf16.mxu1 %v6038_v12  ;;  %v6048_v5 = vld [vmem:[#allocation122_spill] sm:$0xff]  ;;  %v6049_v12 = vld [vmem:[#allocation123_spill] sm:$0xff] }
 0x26a   :  { %1585 = vmatpush2.bf16.msra.mxu0 %v6039_v20  ;;  %1626 = vmatpush2.bf16.msra.mxu1 %v6040_v36  ;;  %v6050_v20 = vld [vmem:[#allocation124_spill] sm:$0xff]  ;;  %v6051_v36 = vld [vmem:[#allocation125_spill] sm:$0xff] }
 0x26b   :  { %1586 = vmatprep.subr.bf16.mxu0 %v6041_v28  ;;  %1627 = vmatprep.subr.bf16.mxu1 %v6042_v60 }
 0x26e   :  { %1587 = vmatpush2.bf16.msra.mxu0 %v6043_v32  ;;  %1628 = vmatpush2.bf16.msra.mxu1 %v6044_v19 }
 0x26f   :  { %1588 = vmatprep.subr.bf16.mxu0 %v6045_v59  ;;  %1629 = vmatprep.subr.bf16.mxu1 %v6046_v21 }
 0x272   :  { %1589 = vmatpush2.bf16.msra.mxu0 %v6047_v35  ;;  %1630 = vmatpush2.bf16.msra.mxu1 %v6048_v5 }
 0x273   :  { %1590 = vmatprep.subr.bf16.mxu0 %v6049_v12  ;;  %1631 = vmatprep.subr.bf16.mxu1 %v6050_v20 }
 0x276   :  { %1591 = vmatpush2.bf16.msra.mxu0 %v6051_v36  ;;  %1632 = vmatpush2.bf16.msra.mxu1 %v4346_v1 }
 0x277   :  { %1592 = vmatprep.subr.bf16.mxu0 %v4350_v31  ;;  %1633 = vmatprep.subr.bf16.mxu1 %v4352_v40 }
 0x27a   :  { %1593 = vmatpush2.bf16.msra.mxu0 %v4368_v11  ;;  %1634 = vmatpush2.bf16.msra.mxu1 %v4370_v37 }
 0x27b   :  { %1594 = vmatprep.subr.bf16.mxu0 %v4374_v56  ;;  %1635 = vmatprep.subr.bf16.mxu1 %v4376_v23 }
 0x27e   :  { %1595 = vmatpush2.bf16.msra.mxu0 %v4380_v4  ;;  %1636 = vmatpush2.bf16.msra.mxu1 %v4382_v51 }
 0x27f   :  { %1696 = vmatprep.subr.bf16.mxu0 %v3577_v38  ;;  %1737 = vmatprep.subr.bf16.mxu1 %v3585_v41 }
 0x281   :  { %1597 = vmatmul.mubr.bf16.vlgmr.msra.gmra.mxu0 %v4541_v52  ;;  %1638 = vmatmul.mubr.bf16.vlgmr.msra.gmra.mxu1 %v4541_v52  ;;  %v6052_v52 = vld [vmem:[#allocation32_spill] sm:$0xff] }
 0x282   :  { %1697 = vmatpush1.bf16.msra.mxu0 %v3587_v42  ;;  %1738 = vmatpush1.bf16.msra.mxu1 %v3598_v46 }
 0x283   :  { %1698 = vmatprep.subr.bf16.mxu0 %v3596_v45  ;;  %1739 = vmatprep.subr.bf16.mxu1 %v3607_v49 }
 0x286   :  { %1699 = vmatpush1.bf16.msra.mxu0 %v3610_v50  ;;  %1740 = vmatpush1.bf16.msra.mxu1 %v3623_v54 }
 0x287   :  { %1700 = vmatprep.subr.bf16.mxu0 %v3620_v53  ;;  %1741 = vmatprep.subr.bf16.mxu1 %v3633_v57 }
 0x28a   :  { %1701 = vmatpush1.bf16.msra.mxu0 %v3636_v58  ;;  %1742 = vmatpush1.bf16.msra.mxu1 %v3648_v62 }
 0x28b   :  { %1702 = vmatprep.subr.bf16.mxu0 %v3645_v61  ;;  %1743 = vmatprep.subr.bf16.mxu1 %v3657_v2 }
 0x28e   :  { %1703 = vmatpush1.bf16.msra.mxu0 %v3660_v3  ;;  %1744 = vmatpush1.bf16.msra.mxu1 %v3672_v7 }
 0x28f   :  { %1704 = vmatprep.subr.bf16.mxu0 %v3669_v6  ;;  %1745 = vmatprep.subr.bf16.mxu1 %v3675_v8  ;;  %v6092_v8 = vld [vmem:[#allocation135_spill] sm:$0xff] }
 0x292   :  { %1705 = vmatpush1.bf16.msra.mxu0 %v3678_v9  ;;  %1746 = vmatpush1.bf16.msra.mxu1 %v3682_v10  ;;  %v6053_v10 = vld [vmem:[#allocation33_spill] sm:$0xff] }
 0x293   :  { %1706 = vmatprep.subr.bf16.mxu0 %v3696_v14  ;;  %1747 = vmatprep.subr.bf16.mxu1 %v3701_v16  ;;  %v6054_v14 = vld [vmem:[#allocation34_spill] sm:$0xff]  ;;  %v6055_v16 = vld [vmem:[#allocation35_spill] sm:$0xff] }
 0x296   :  { %1707 = vmatpush1.bf16.msra.mxu0 %v3703_v17  ;;  %1748 = vmatpush1.bf16.msra.mxu1 %v3705_v18  ;;  %v6056_v17 = vld [vmem:[#allocation36_spill] sm:$0xff]  ;;  %v6057_v18 = vld [vmem:[#allocation37_spill] sm:$0xff] }
 0x297   :  { %1708 = vmatprep.subr.bf16.mxu0 %v3720_v22  ;;  %1749 = vmatprep.subr.bf16.mxu1 %v3725_v24  ;;  %v6058_v22 = vld [vmem:[#allocation38_spill] sm:$0xff]  ;;  %v6059_v24 = vld [vmem:[#allocation39_spill] sm:$0xff] }
 0x29a   :  { %1709 = vmatpush1.bf16.msra.mxu0 %v3727_v25  ;;  %1750 = vmatpush1.bf16.msra.mxu1 %v3730_v26  ;;  %v6060_v25 = vld [vmem:[#allocation40_spill] sm:$0xff]  ;;  %v6061_v26 = vld [vmem:[#allocation41_spill] sm:$0xff] }
 0x29b   :  { %1710 = vmatprep.subr.bf16.mxu0 %v3744_v30  ;;  %1751 = vmatprep.subr.bf16.mxu1 %v6052_v52  ;;  %v6062_v30 = vld [vmem:[#allocation42_spill] sm:$0xff]  ;;  %v6063_v52 = vld [vmem:[#allocation43_spill] sm:$0xff] }
 0x29e   :  { %1711 = vmatpush1.bf16.msra.mxu0 %v6053_v10  ;;  %1752 = vmatpush1.bf16.msra.mxu1 %v6054_v14  ;;  %v6064_v10 = vld [vmem:[#allocation44_spill] sm:$0xff]  ;;  %v6065_v14 = vld [vmem:[#allocation45_spill] sm:$0xff] }
 0x29f   :  { %1712 = vmatprep.subr.bf16.mxu0 %v6055_v16  ;;  %1753 = vmatprep.subr.bf16.mxu1 %v6056_v17  ;;  %v6066_v16 = vld [vmem:[#allocation46_spill] sm:$0xff]  ;;  %v6067_v17 = vld [vmem:[#allocation47_spill] sm:$0xff] }
 0x2a2   :  { %1713 = vmatpush2.bf16.msra.mxu0 %v6057_v18  ;;  %1754 = vmatpush2.bf16.msra.mxu1 %v6058_v22  ;;  %v6068_v18 = vld [vmem:[#allocation48_spill] sm:$0xff]  ;;  %v6069_v22 = vld [vmem:[#allocation49_spill] sm:$0xff] }
 0x2a3   :  { %1714 = vmatprep.subr.bf16.mxu0 %v6059_v24  ;;  %1755 = vmatprep.subr.bf16.mxu1 %v6060_v25  ;;  %v6070_v24 = vld [vmem:[#allocation50_spill] sm:$0xff]  ;;  %v6071_v25 = vld [vmem:[#allocation51_spill] sm:$0xff] }
 0x2a6   :  { %1715 = vmatpush2.bf16.msra.mxu0 %v6061_v26  ;;  %1756 = vmatpush2.bf16.msra.mxu1 %v6062_v30  ;;  %v6072_v26 = vld [vmem:[#allocation52_spill] sm:$0xff]  ;;  %v6073_v30 = vld [vmem:[#allocation53_spill] sm:$0xff] }
 0x2a7   :  { %1716 = vmatprep.subr.bf16.mxu0 %v6063_v52  ;;  %1757 = vmatprep.subr.bf16.mxu1 %v6064_v10  ;;  %v6074_v52 = vld [vmem:[#allocation54_spill] sm:$0xff]  ;;  %v6075_v10 = vld [vmem:[#allocation55_spill] sm:$0xff] }
 0x2aa   :  { %1717 = vmatpush2.bf16.msra.mxu0 %v6065_v14  ;;  %1758 = vmatpush2.bf16.msra.mxu1 %v6066_v16  ;;  %v6076_v14 = vld [vmem:[#allocation56_spill] sm:$0xff]  ;;  %v6077_v16 = vld [vmem:[#allocation57_spill] sm:$0xff] }
 0x2ab   :  { %1718 = vmatprep.subr.bf16.mxu0 %v6067_v17  ;;  %1759 = vmatprep.subr.bf16.mxu1 %v6068_v18  ;;  %v6078_v17 = vld [vmem:[#allocation58_spill] sm:$0xff]  ;;  %v6079_v18 = vld [vmem:[#allocation59_spill] sm:$0xff] }
 0x2ae   :  { %1719 = vmatpush2.bf16.msra.mxu0 %v6069_v22  ;;  %1760 = vmatpush2.bf16.msra.mxu1 %v6070_v24  ;;  %v6080_v22 = vld [vmem:[#allocation60_spill] sm:$0xff]  ;;  %v6081_v24 = vld [vmem:[#allocation61_spill] sm:$0xff] }
 0x2af   :  { %1720 = vmatprep.subr.bf16.mxu0 %v6071_v25  ;;  %1761 = vmatprep.subr.bf16.mxu1 %v6072_v26  ;;  %v6082_v25 = vld [vmem:[#allocation62_spill] sm:$0xff]  ;;  %v6083_v26 = vld [vmem:[#allocation63_spill] sm:$0xff] }
 0x2b2   :  { %1721 = vmatpush2.bf16.msra.mxu0 %v6073_v30  ;;  %1762 = vmatpush2.bf16.msra.mxu1 %v6074_v52  ;;  %v6084_v30 = vld [vmem:[#allocation64_spill] sm:$0xff]  ;;  %v6085_v52 = vld [vmem:[#allocation65_spill] sm:$0xff] }
 0x2b3   :  { %1722 = vmatprep.subr.bf16.mxu0 %v6075_v10  ;;  %1763 = vmatprep.subr.bf16.mxu1 %v6076_v14  ;;  %v6086_v10 = vld [vmem:[#allocation66_spill] sm:$0xff]  ;;  %v6087_v14 = vld [vmem:[#allocation67_spill] sm:$0xff] }
 0x2b6   :  { %1723 = vmatpush2.bf16.msra.mxu0 %v6077_v16  ;;  %1764 = vmatpush2.bf16.msra.mxu1 %v6078_v17  ;;  %v6088_v16 = vld [vmem:[#allocation68_spill] sm:$0xff]  ;;  %v6089_v17 = vld [vmem:[#allocation71_spill] sm:$0xff] }
 0x2b7   :  { %1724 = vmatprep.subr.bf16.mxu0 %v6079_v18  ;;  %1765 = vmatprep.subr.bf16.mxu1 %v6080_v22  ;;  %v6090_v18 = vld [vmem:[#allocation136_spill] sm:$0xff]  ;;  %v6091_v22 = vld [vmem:[#allocation73_spill] sm:$0xff] }
 0x2b8   :  { %v321_v9 = vadd.f32 %v6090_v18, %v6089_v17 }
 0x2ba   :  { %1725 = vmatpush2.bf16.msra.mxu0 %v6081_v24  ;;  %1766 = vmatpush2.bf16.msra.mxu1 %v6082_v25  ;;  %v394_v24 = vadd.f32 %v6092_v8, %v6091_v22 }
 0x2bb   :  { %1726 = vmatprep.subr.bf16.mxu0 %v6083_v26  ;;  %1767 = vmatprep.subr.bf16.mxu1 %v6084_v30  ;;  %v6093_v26 = vld [vmem:[#allocation138_spill] sm:$0xff]  ;;  %v6094_v30 = vld [vmem:[#allocation137_spill] sm:$0xff] }
 0x2bc   :  { %v323_v7 = vadd.f32 %v6093_v26, %v5989_v47 }
 0x2be   :  { %1727 = vmatpush2.bf16.msra.mxu0 %v6085_v52  ;;  %1768 = vmatpush2.bf16.msra.mxu1 %v6086_v10  ;;  %v396_v52 = vadd.f32 %v6094_v30, %v5998_v43 }
 0x2bf   :  { %1778 = vmatprep.subr.bf16.mxu0 %v6087_v14  ;;  %1819 = vmatprep.subr.bf16.mxu1 %v6088_v16 }
 0x301   :  { %v1516_v6 = vpop.f32.mrf.mxu0  ;;  %v1557_v25 = vpop.f32.mrf.mxu1 }
 0x302   :  { %v1672_v3 = vadd.f32 %v1516_v6, %v321_v9  ;;  %v1674_v10 = vadd.f32 %v1557_v25, %v394_v24 }
 0x303   :  { %v1518_v2 = vpop.f32.mrf.mxu0  ;;  %v1559_v14 = vpop.f32.mrf.mxu1 }
 0x304   :  { %v1676_v61 = vmul.f32 0.5, %v1672_v3  ;;  %v1673_v16 = vadd.f32 %v1518_v2, %v323_v7  ;;  %v1675_v62 = vadd.f32 %v1559_v14, %v396_v52 }
 0x305   :  { %v1520_v58 = vpop.f32.mrf.mxu0  ;;  %v1561_v18 = vpop.f32.mrf.mxu1 }
 0x306   :  { %3285 = vtanh.f32 %v1676_v61  ;;  %v1680_v17 = vmul.f32 0.5, %v1673_v16  ;;  %v1685_v18 = vmul.f32 0.5, %v1675_v62 }
 0x307   :  { %v1521_v8 = vpop.f32.mrf.mxu0  ;;  %v1562_v22 = vpop.f32.mrf.mxu1 }
 0x308   :  { %3287 = vtanh.f32 %v1680_v17 }
 0x309   :  { %3289 = vtanh.f32 %v1674_v10 }
 0x313   :  { %v3286_v57 = vpop.eup %3285 }
 0x314   :  { %v1678_v26 = vmul.f32 0.5, %v3286_v57 }
 0x315   :  { %v3288_v47 = vpop.eup %3287 }
 0x316   :  { %v1679_v53 = vadd.f32 0.5, %v1678_v26  ;;  %v1682_v30 = vmul.f32 0.5, %v3288_v47  ;;  %v3290_v6 = vpop.eup %3289 }
 0x318   :  { %v1683_v9 = vadd.f32 0.5, %v1682_v30  ;;  %v1690_v24 = vmul.f32 %v3290_v6, %v1679_v53 }
 0x31a   :  { %v1689_v3 = vmul.f32 %v1683_v9, %v4510_v44 }
 0x31c   :  { %v4684_v2 = vadd.f32 %v1690_v24, %v1689_v3 }
 0x341   :  { %v1598_v58 = vpop.f32.mrf.mxu0  ;;  %v1639_v7 = vpop.f32.mrf.mxu1 }
 0x342   :  { %v1646_v61 = vadd.f32 %v1598_v58, %v4517_v39  ;;  %v1648_v53 = vadd.f32 %v1639_v7, %v4526_v13 }
 0x343   :  { %v1600_v14 = vpop.f32.mrf.mxu0  ;;  %v1641_v16 = vpop.f32.mrf.mxu1 }
 0x344   :  { %v1650_v17 = vmul.f32 0.5, %v1646_v61  ;;  %v1647_v10 = vadd.f32 %v1600_v14, %v4521_v63  ;;  %v1649_v44 = vadd.f32 %v1641_v16, %v4532_v33 }
 0x345   :  { %v1602_v57 = vpop.f32.mrf.mxu0  ;;  %v1643_v22 = vpop.f32.mrf.mxu1 }
 0x346   :  { %3291 = vtanh.f32 %v1650_v17  ;;  %v1654_v25 = vmul.f32 0.5, %v1647_v10  ;;  %v1659_v8 = vmul.f32 0.5, %v1649_v44 }
 0x347   :  { %v1603_v47 = vpop.f32.mrf.mxu0  ;;  %v1644_v52 = vpop.f32.mrf.mxu1 }
 0x348   :  { %3293 = vtanh.f32 %v1654_v25 }
 0x349   :  { %3295 = vtanh.f32 %v1648_v53 }
 0x34a   :  { %3297 = vtanh.f32 %v1685_v18 }
 0x34b   :  { %3299 = vtanh.f32 %v1659_v8  ;;  %v6096_v8 = vld [vmem:[#allocation80_spill] sm:$0xff] }
 0x34c   :  { %3301 = vtanh.f32 %v4684_v2 }
 0x353   :  { %v3292_v26 = vpop.eup %3291 }
 0x354   :  { %v1652_v30 = vmul.f32 0.5, %v3292_v26  ;;  %v6097_v26 = vld [vmem:[#allocation81_spill] sm:$0xff] }
 0x355   :  { %v3294_v6 = vpop.eup %3293 }
 0x356   :  { %v1653_v9 = vadd.f32 0.5, %v1652_v30  ;;  %v1656_v24 = vmul.f32 0.5, %v3294_v6  ;;  %v3296_v58 = vpop.eup %3295  ;;  %v6098_v30 = vld [vmem:[#allocation82_spill] sm:$0xff]  ;;  %v6099_v6 = vld [vmem:[#allocation83_spill] sm:$0xff] }
 0x357   :  { %v3298_v62 = vpop.eup %3297 }
 0x358   :  { %v1657_v3 = vadd.f32 0.5, %v1656_v24  ;;  %v1664_v14 = vmul.f32 %v3296_v58, %v1653_v9  ;;  %v3300_v16 = vpop.eup %3299  ;;  %v1687_v17 = vmul.f32 0.5, %v3298_v62  ;;  %v6100_v9 = vld [vmem:[#allocation84_spill] sm:$0xff]  ;;  %v6101_v24 = vld [vmem:[#allocation85_spill] sm:$0xff]  ;;  %v6103_v58 = vld [vmem:[#allocation87_spill] sm:$0xff] }
 0x359   :  { %v1661_v10 = vmul.f32 0.5, %v3300_v16  ;;  %v3302_v57 = vpop.eup %3301  ;;  %v6106_v62 = vld [vmem:[#allocation90_spill] sm:$0xff]  ;;  %v6107_v16 = vld [vmem:[#allocation91_spill] sm:$0xff] }
 0x35a   :  { %v1663_v61 = vmul.f32 %v1657_v3, %v4538_v15  ;;  %v1688_v22 = vadd.f32 0.5, %v1687_v17  ;;  %v6095_v15 = vld [vmem:[#allocation79_spill] sm:$0xff]  ;;  %v6102_v3 = vld [vmem:[#allocation86_spill] sm:$0xff]  ;;  %v6108_v17 = vld [vmem:[#allocation92_spill] sm:$0xff] }
 0x35b   :  { %v1662_v25 = vadd.f32 0.5, %v1661_v10  ;;  %v6109_v10 = vld [vmem:[#allocation93_spill] sm:$0xff] }
 0x35c   :  { %v4692_v7 = vadd.f32 %v1664_v14, %v1663_v61  ;;  %v1693_v52 = vmul.f32 %v3302_v57, %v1688_v22  ;;  %v6104_v61 = vld [vmem:[#allocation88_spill] sm:$0xff]  ;;  %v6105_v14 = vld [vmem:[#allocation89_spill] sm:$0xff]  ;;  %v6110_v57 = vld [vmem:[#allocation94_spill] sm:$0xff] }
 0x35d   :  { %v6111_v22 = vld [vmem:[#allocation95_spill] sm:$0xff] }
 0x35e   :  { %3303 = vtanh.f32 %v4692_v7  ;;  %v4695_v18 = vpack.c.bf16 %v1693_v52, %v1693_v52  ;;  %v6114_v52 = vld [vmem:[#allocation98_spill] sm:$0xff] }
 0x36b   :  { %v3304_v47 = vpop.eup %3303 }
 0x36c   :  { %v1667_v53 = vmul.f32 %v3304_v47, %v1662_v25  ;;  %v6112_v25 = vld [vmem:[#allocation96_spill] sm:$0xff]  ;;  %v6113_v47 = vld [vmem:[#allocation97_spill] sm:$0xff] }
 0x36e   :  { %v1695_v44 = vpack.c.bf16 %v1667_v53, %v1667_v53  ;;  %v6115_v53 = vld [vmem:[#allocation99_spill] sm:$0xff] }
 0x370   :  { %1728 = vmatprep.mubr.bf16.mxu0 %v1695_v44  ;;  %1769 = vmatprep.mubr.bf16.mxu1 %v1695_v44 }
 0x371   :  { %1729 = vmatmul.mubr.bf16.vlgmr.msra.gmra.mxu0 %v4695_v18  ;;  %1770 = vmatmul.mubr.bf16.vlgmr.msra.gmra.mxu1 %v4695_v18 }
 0x372   :  { %1779 = vmatpush1.bf16.msra.mxu0 %v5999_v27  ;;  %1820 = vmatpush1.bf16.msra.mxu1 %v6000_v0 }
 0x373   :  { %1810 = vmatprep.mubr.bf16.mxu0 %v1695_v44  ;;  %1851 = vmatprep.mubr.bf16.mxu1 %v1695_v44  ;;  %v6116_v44 = vld [vmem:[#allocation100_spill] sm:$0xff] }
 0x374   :  { %1780 = vmatprep.subr.bf16.mxu0 %v6001_v48  ;;  %1821 = vmatprep.subr.bf16.mxu1 %v6002_v29 }
 0x376   :  { %1781 = vmatpush1.bf16.msra.mxu0 %v6003_v34  ;;  %1822 = vmatpush1.bf16.msra.mxu1 %v6004_v55 }
 0x377   :  { %1782 = vmatprep.subr.bf16.mxu0 %v6095_v15  ;;  %1823 = vmatprep.subr.bf16.mxu1 %v6096_v8 }
 0x37a   :  { %1783 = vmatpush1.bf16.msra.mxu0 %v6097_v26  ;;  %1824 = vmatpush1.bf16.msra.mxu1 %v6098_v30 }
 0x37b   :  { %1784 = vmatprep.subr.bf16.mxu0 %v6099_v6  ;;  %1825 = vmatprep.subr.bf16.mxu1 %v6100_v9 }
 0x37e   :  { %1785 = vmatpush1.bf16.msra.mxu0 %v6101_v24  ;;  %1826 = vmatpush1.bf16.msra.mxu1 %v6102_v3 }
 0x37f   :  { %1786 = vmatprep.subr.bf16.mxu0 %v6103_v58  ;;  %1827 = vmatprep.subr.bf16.mxu1 %v6104_v61 }
 0x382   :  { %1787 = vmatpush1.bf16.msra.mxu0 %v6105_v14  ;;  %1828 = vmatpush1.bf16.msra.mxu1 %v6106_v62  ;;  %v6117_v62 = vld [vmem:[#allocation101_spill] sm:$0xff] }
 0x383   :  { %1788 = vmatprep.subr.bf16.mxu0 %v6107_v16  ;;  %1829 = vmatprep.subr.bf16.mxu1 %v6108_v17  ;;  %v6118_v16 = vld [vmem:[#allocation102_spill] sm:$0xff]  ;;  %v6119_v17 = vld [vmem:[#allocation103_spill] sm:$0xff] }
 0x386   :  { %1789 = vmatpush1.bf16.msra.mxu0 %v6109_v10  ;;  %1830 = vmatpush1.bf16.msra.mxu1 %v6110_v57  ;;  %v6120_v10 = vld [vmem:[#allocation104_spill] sm:$0xff]  ;;  %v6121_v57 = vld [vmem:[#allocation105_spill] sm:$0xff] }
 0x387   :  { %1790 = vmatprep.subr.bf16.mxu0 %v6111_v22  ;;  %1831 = vmatprep.subr.bf16.mxu1 %v6112_v25  ;;  %v6122_v22 = vld [vmem:[#allocation106_spill] sm:$0xff]  ;;  %v6123_v25 = vld [vmem:[#allocation107_spill] sm:$0xff] }
 0x38a   :  { %1791 = vmatpush1.bf16.msra.mxu0 %v6113_v47  ;;  %1832 = vmatpush1.bf16.msra.mxu1 %v6114_v52  ;;  %v6124_v47 = vld [vmem:[#allocation108_spill] sm:$0xff]  ;;  %v6125_v52 = vld [vmem:[#allocation109_spill] sm:$0xff] }
 0x38b   :  { %1792 = vmatprep.subr.bf16.mxu0 %v6115_v53  ;;  %1833 = vmatprep.subr.bf16.mxu1 %v6116_v44  ;;  %v6126_v53 = vld [vmem:[#allocation110_spill] sm:$0xff]  ;;  %v6127_v44 = vld [vmem:[#allocation111_spill] sm:$0xff] }
 0x38e   :  { %1793 = vmatpush1.bf16.msra.mxu0 %v6117_v62  ;;  %1834 = vmatpush1.bf16.msra.mxu1 %v6118_v16  ;;  %v6128_v62 = vld [vmem:[#allocation112_spill] sm:$0xff]  ;;  %v6129_v16 = vld [vmem:[#allocation113_spill] sm:$0xff] }
 0x38f   :  { %1794 = vmatprep.subr.bf16.mxu0 %v6119_v17  ;;  %1835 = vmatprep.subr.bf16.mxu1 %v6120_v10  ;;  %v6130_v17 = vld [vmem:[#allocation114_spill] sm:$0xff] }
 0x392   :  { %1795 = vmatpush2.bf16.msra.mxu0 %v6121_v57  ;;  %1836 = vmatpush2.bf16.msra.mxu1 %v6122_v22 }
 0x393   :  { %1796 = vmatprep.subr.bf16.mxu0 %v6123_v25  ;;  %1837 = vmatprep.subr.bf16.mxu1 %v6124_v47 }
 0x396   :  { %1797 = vmatpush2.bf16.msra.mxu0 %v6125_v52  ;;  %1838 = vmatpush2.bf16.msra.mxu1 %v6126_v53 }
 0x397   :  { %1798 = vmatprep.subr.bf16.mxu0 %v6127_v44  ;;  %1839 = vmatprep.subr.bf16.mxu1 %v6128_v62 }
 0x39a   :  { %1799 = vmatpush2.bf16.msra.mxu0 %v6129_v16  ;;  %1840 = vmatpush2.bf16.msra.mxu1 %v6130_v17 }
 0x39b   :  { %1800 = vmatprep.subr.bf16.mxu0 %v6041_v28  ;;  %1841 = vmatprep.subr.bf16.mxu1 %v6042_v60 }
 0x39e   :  { %1801 = vmatpush2.bf16.msra.mxu0 %v6043_v32  ;;  %1842 = vmatpush2.bf16.msra.mxu1 %v6044_v19 }
 0x39f   :  { %1802 = vmatprep.subr.bf16.mxu0 %v6045_v59  ;;  %1843 = vmatprep.subr.bf16.mxu1 %v6046_v21 }
 0x3a2   :  { %1803 = vmatpush2.bf16.msra.mxu0 %v6047_v35  ;;  %1844 = vmatpush2.bf16.msra.mxu1 %v6048_v5 }
 0x3a3   :  { %1804 = vmatprep.subr.bf16.mxu0 %v6049_v12  ;;  %1845 = vmatprep.subr.bf16.mxu1 %v6050_v20 }
 0x3a6   :  { %1805 = vmatpush2.bf16.msra.mxu0 %v6051_v36  ;;  %1846 = vmatpush2.bf16.msra.mxu1 %v4346_v1 }
 0x3a7   :  { %1806 = vmatprep.subr.bf16.mxu0 %v4350_v31  ;;  %1847 = vmatprep.subr.bf16.mxu1 %v4352_v40 }
 0x3aa   :  { %1807 = vmatpush2.bf16.msra.mxu0 %v4368_v11  ;;  %1848 = vmatpush2.bf16.msra.mxu1 %v4370_v37  ;;  %v6193_v11 = vld [vmem:[#allocation72_spill] sm:$0xff] }
 0x3ab   :  { %1808 = vmatprep.subr.bf16.mxu0 %v4374_v56  ;;  %1849 = vmatprep.subr.bf16.mxu1 %v4376_v23  ;;  %v6192_v56 = vld [vmem:[#allocation139_spill] sm:$0xff] }
 0x3ae   :  { %1809 = vmatpush2.bf16.msra.mxu0 %v4380_v4  ;;  %1850 = vmatpush2.bf16.msra.mxu1 %v4382_v51  ;;  %v6131_v51 = vld [vmem:[#allocation10_spill] sm:$0xff]  ;;  %v6134_v4 = vld [vmem:[#allocation15_spill] sm:$0xff] }
 0x3af   :  { %1910 = vmatprep.subr.bf16.mxu0 %v3577_v38  ;;  %1951 = vmatprep.subr.bf16.mxu1 %v3585_v41  ;;  %v6132_v38 = vld [vmem:[#allocation12_spill] sm:$0xff]  ;;  %v6133_v41 = vld [vmem:[#allocation13_spill] sm:$0xff] }
 0x3b1   :  { %1811 = vmatmul.mubr.bf16.vlgmr.msra.gmra.mxu0 %v4695_v18  ;;  %1852 = vmatmul.mubr.bf16.vlgmr.msra.gmra.mxu1 %v4695_v18  ;;  %v6135_v18 = vld [vmem:[#allocation14_spill] sm:$0xff] }
 0x3b2   :  { %1911 = vmatpush1.bf16.msra.mxu0 %v3587_v42  ;;  %1952 = vmatpush1.bf16.msra.mxu1 %v3598_v46  ;;  %v6136_v42 = vld [vmem:[#allocation16_spill] sm:$0xff]  ;;  %v6137_v46 = vld [vmem:[#allocation17_spill] sm:$0xff] }
 0x3b3   :  { %1912 = vmatprep.subr.bf16.mxu0 %v3596_v45  ;;  %1953 = vmatprep.subr.bf16.mxu1 %v3607_v49  ;;  %v6138_v45 = vld [vmem:[#allocation19_spill] sm:$0xff]  ;;  %v6139_v49 = vld [vmem:[#allocation18_spill] sm:$0xff] }
 0x3b6   :  { %1913 = vmatpush1.bf16.msra.mxu0 %v3610_v50  ;;  %1954 = vmatpush1.bf16.msra.mxu1 %v3623_v54  ;;  %v6140_v50 = vld [vmem:[#allocation20_spill] sm:$0xff]  ;;  %v6141_v54 = vld [vmem:[#allocation21_spill] sm:$0xff] }
 0x3b7   :  { %1914 = vmatprep.subr.bf16.mxu0 %v6131_v51  ;;  %1955 = vmatprep.subr.bf16.mxu1 %v6132_v38  ;;  %v6142_v51 = vld [vmem:[#allocation22_spill] sm:$0xff]  ;;  %v6143_v38 = vld [vmem:[#allocation23_spill] sm:$0xff] }
 0x3ba   :  { %1915 = vmatpush1.bf16.msra.mxu0 %v6133_v41  ;;  %1956 = vmatpush1.bf16.msra.mxu1 %v6134_v4  ;;  %v6144_v41 = vld [vmem:[#allocation24_spill] sm:$0xff]  ;;  %v6145_v4 = vld [vmem:[#allocation25_spill] sm:$0xff] }
 0x3bb   :  { %1916 = vmatprep.subr.bf16.mxu0 %v6135_v18  ;;  %1957 = vmatprep.subr.bf16.mxu1 %v6136_v42  ;;  %v6146_v18 = vld [vmem:[#allocation26_spill] sm:$0xff]  ;;  %v6147_v42 = vld [vmem:[#allocation27_spill] sm:$0xff] }
 0x3be   :  { %1917 = vmatpush1.bf16.msra.mxu0 %v6137_v46  ;;  %1958 = vmatpush1.bf16.msra.mxu1 %v6138_v45  ;;  %v6148_v46 = vld [vmem:[#allocation28_spill] sm:$0xff]  ;;  %v6149_v45 = vld [vmem:[#allocation29_spill] sm:$0xff] }
 0x3bf   :  { %1918 = vmatprep.subr.bf16.mxu0 %v6139_v49  ;;  %1959 = vmatprep.subr.bf16.mxu1 %v6140_v50  ;;  %v6150_v49 = vld [vmem:[#allocation30_spill] sm:$0xff]  ;;  %v6151_v50 = vld [vmem:[#allocation31_spill] sm:$0xff] }
 0x3c2   :  { %1919 = vmatpush1.bf16.msra.mxu0 %v6141_v54  ;;  %1960 = vmatpush1.bf16.msra.mxu1 %v6142_v51  ;;  %v6152_v54 = vld [vmem:[#allocation32_spill] sm:$0xff]  ;;  %v6153_v51 = vld [vmem:[#allocation33_spill] sm:$0xff] }
 0x3c3   :  { %1920 = vmatprep.subr.bf16.mxu0 %v6143_v38  ;;  %1961 = vmatprep.subr.bf16.mxu1 %v6144_v41  ;;  %v6154_v38 = vld [vmem:[#allocation34_spill] sm:$0xff]  ;;  %v6155_v41 = vld [vmem:[#allocation35_spill] sm:$0xff] }
 0x3c6   :  { %1921 = vmatpush1.bf16.msra.mxu0 %v6145_v4  ;;  %1962 = vmatpush1.bf16.msra.mxu1 %v6146_v18  ;;  %v6156_v4 = vld [vmem:[#allocation36_spill] sm:$0xff]  ;;  %v6157_v18 = vld [vmem:[#allocation37_spill] sm:$0xff] }
 0x3c7   :  { %1922 = vmatprep.subr.bf16.mxu0 %v6147_v42  ;;  %1963 = vmatprep.subr.bf16.mxu1 %v6148_v46  ;;  %v6158_v42 = vld [vmem:[#allocation38_spill] sm:$0xff]  ;;  %v6159_v46 = vld [vmem:[#allocation39_spill] sm:$0xff] }
 0x3ca   :  { %1923 = vmatpush1.bf16.msra.mxu0 %v6149_v45  ;;  %1964 = vmatpush1.bf16.msra.mxu1 %v6150_v49  ;;  %v6160_v45 = vld [vmem:[#allocation40_spill] sm:$0xff]  ;;  %v6161_v49 = vld [vmem:[#allocation41_spill] sm:$0xff] }
 0x3cb   :  { %1924 = vmatprep.subr.bf16.mxu0 %v6151_v50  ;;  %1965 = vmatprep.subr.bf16.mxu1 %v6152_v54  ;;  %v6162_v50 = vld [vmem:[#allocation42_spill] sm:$0xff]  ;;  %v6163_v54 = vld [vmem:[#allocation43_spill] sm:$0xff] }
 0x3ce   :  { %1925 = vmatpush1.bf16.msra.mxu0 %v6153_v51  ;;  %1966 = vmatpush1.bf16.msra.mxu1 %v6154_v38  ;;  %v6164_v51 = vld [vmem:[#allocation44_spill] sm:$0xff]  ;;  %v6165_v38 = vld [vmem:[#allocation45_spill] sm:$0xff] }
 0x3cf   :  { %1926 = vmatprep.subr.bf16.mxu0 %v6155_v41  ;;  %1967 = vmatprep.subr.bf16.mxu1 %v6156_v4  ;;  %v6166_v41 = vld [vmem:[#allocation46_spill] sm:$0xff]  ;;  %v6167_v4 = vld [vmem:[#allocation47_spill] sm:$0xff] }
 0x3d2   :  { %1927 = vmatpush2.bf16.msra.mxu0 %v6157_v18  ;;  %1968 = vmatpush2.bf16.msra.mxu1 %v6158_v42  ;;  %v6168_v18 = vld [vmem:[#allocation48_spill] sm:$0xff]  ;;  %v6169_v42 = vld [vmem:[#allocation49_spill] sm:$0xff] }
 0x3d3   :  { %1928 = vmatprep.subr.bf16.mxu0 %v6159_v46  ;;  %1969 = vmatprep.subr.bf16.mxu1 %v6160_v45  ;;  %v6170_v46 = vld [vmem:[#allocation50_spill] sm:$0xff]  ;;  %v6171_v45 = vld [vmem:[#allocation51_spill] sm:$0xff] }
 0x3d6   :  { %1929 = vmatpush2.bf16.msra.mxu0 %v6161_v49  ;;  %1970 = vmatpush2.bf16.msra.mxu1 %v6162_v50  ;;  %v6172_v49 = vld [vmem:[#allocation52_spill] sm:$0xff]  ;;  %v6173_v50 = vld [vmem:[#allocation53_spill] sm:$0xff] }
 0x3d7   :  { %1930 = vmatprep.subr.bf16.mxu0 %v6163_v54  ;;  %1971 = vmatprep.subr.bf16.mxu1 %v6164_v51  ;;  %v6174_v54 = vld [vmem:[#allocation54_spill] sm:$0xff]  ;;  %v6175_v51 = vld [vmem:[#allocation55_spill] sm:$0xff] }
 0x3da   :  { %1931 = vmatpush2.bf16.msra.mxu0 %v6165_v38  ;;  %1972 = vmatpush2.bf16.msra.mxu1 %v6166_v41  ;;  %v6176_v38 = vld [vmem:[#allocation56_spill] sm:$0xff]  ;;  %v6177_v41 = vld [vmem:[#allocation57_spill] sm:$0xff] }
 0x3db   :  { %1932 = vmatprep.subr.bf16.mxu0 %v6167_v4  ;;  %1973 = vmatprep.subr.bf16.mxu1 %v6168_v18  ;;  %v6178_v4 = vld [vmem:[#allocation58_spill] sm:$0xff]  ;;  %v6179_v18 = vld [vmem:[#allocation59_spill] sm:$0xff] }
 0x3de   :  { %1933 = vmatpush2.bf16.msra.mxu0 %v6169_v42  ;;  %1974 = vmatpush2.bf16.msra.mxu1 %v6170_v46  ;;  %v6180_v42 = vld [vmem:[#allocation60_spill] sm:$0xff]  ;;  %v6181_v46 = vld [vmem:[#allocation61_spill] sm:$0xff] }
 0x3df   :  { %1934 = vmatprep.subr.bf16.mxu0 %v6171_v45  ;;  %1975 = vmatprep.subr.bf16.mxu1 %v6172_v49  ;;  %v6182_v45 = vld [vmem:[#allocation62_spill] sm:$0xff]  ;;  %v6183_v49 = vld [vmem:[#allocation63_spill] sm:$0xff] }
 0x3e2   :  { %1935 = vmatpush2.bf16.msra.mxu0 %v6173_v50  ;;  %1976 = vmatpush2.bf16.msra.mxu1 %v6174_v54  ;;  %v6184_v50 = vld [vmem:[#allocation64_spill] sm:$0xff]  ;;  %v6185_v54 = vld [vmem:[#allocation65_spill] sm:$0xff] }
 0x3e3   :  { %1936 = vmatprep.subr.bf16.mxu0 %v6175_v51  ;;  %1977 = vmatprep.subr.bf16.mxu1 %v6176_v38  ;;  %v6186_v51 = vld [vmem:[#allocation66_spill] sm:$0xff]  ;;  %v6187_v38 = vld [vmem:[#allocation67_spill] sm:$0xff] }
 0x3e6   :  { %1937 = vmatpush2.bf16.msra.mxu0 %v6177_v41  ;;  %1978 = vmatpush2.bf16.msra.mxu1 %v6178_v4  ;;  %v6188_v41 = vld [vmem:[#allocation68_spill] sm:$0xff]  ;;  %v6189_v4 = vld [vmem:[#allocation71_spill] sm:$0xff] }
 0x3e7   :  { %1938 = vmatprep.subr.bf16.mxu0 %v6179_v18  ;;  %1979 = vmatprep.subr.bf16.mxu1 %v6180_v42  ;;  %v6190_v18 = vld [vmem:[#allocation140_spill] sm:$0xff]  ;;  %v6191_v42 = vld [vmem:[#allocation73_spill] sm:$0xff] }
 0x3e8   :  { %v325_v23 = vadd.f32 %v6190_v18, %v6189_v4 }
 0x3ea   :  { %1939 = vmatpush2.bf16.msra.mxu0 %v6181_v46  ;;  %1980 = vmatpush2.bf16.msra.mxu1 %v6182_v45  ;;  %v398_v46 = vadd.f32 %v6192_v56, %v6191_v42 }
 0x3eb   :  { %1940 = vmatprep.subr.bf16.mxu0 %v6183_v49  ;;  %1981 = vmatprep.subr.bf16.mxu1 %v6184_v50  ;;  %v6194_v49 = vld [vmem:[#allocation142_spill] sm:$0xff]  ;;  %v6195_v50 = vld [vmem:[#allocation141_spill] sm:$0xff] }
 0x3ec   :  { %v327_v40 = vadd.f32 %v6194_v49, %v6193_v11 }
 0x3ee   :  { %1941 = vmatpush2.bf16.msra.mxu0 %v6185_v54  ;;  %1982 = vmatpush2.bf16.msra.mxu1 %v6186_v51  ;;  %v400_v54 = vadd.f32 %v6195_v50, %v5998_v43 }
 0x3ef   :  { %1992 = vmatprep.subr.bf16.mxu0 %v6187_v38  ;;  %2033 = vmatprep.subr.bf16.mxu1 %v6188_v41 }
 0x431   :  { %v1730_v37 = vpop.f32.mrf.mxu0  ;;  %v1771_v45 = vpop.f32.mrf.mxu1 }
 0x432   :  { %v1886_v31 = vadd.f32 %v1730_v37, %v325_v23  ;;  %v1888_v51 = vadd.f32 %v1771_v45, %v398_v46 }
 0x433   :  { %v1732_v1 = vpop.f32.mrf.mxu0  ;;  %v1773_v38 = vpop.f32.mrf.mxu1 }
 0x434   :  { %v1890_v36 = vmul.f32 0.5, %v1886_v31  ;;  %v1887_v41 = vadd.f32 %v1732_v1, %v327_v40  ;;  %v1889_v20 = vadd.f32 %v1773_v38, %v400_v54 }
 0x435   :  { %v1734_v12 = vpop.f32.mrf.mxu0  ;;  %v1775_v18 = vpop.f32.mrf.mxu1 }
 0x436   :  { %3305 = vtanh.f32 %v1890_v36  ;;  %v1894_v4 = vmul.f32 0.5, %v1887_v41  ;;  %v1899_v18 = vmul.f32 0.5, %v1889_v20 }
 0x437   :  { %v1735_v56 = vpop.f32.mrf.mxu0  ;;  %v1776_v42 = vpop.f32.mrf.mxu1 }
 0x438   :  { %3307 = vtanh.f32 %v1894_v4 }
 0x439   :  { %3309 = vtanh.f32 %v1888_v51 }
 0x443   :  { %v3306_v5 = vpop.eup %3305 }
 0x444   :  { %v1892_v49 = vmul.f32 0.5, %v3306_v5 }
 0x445   :  { %v3308_v11 = vpop.eup %3307 }
 0x446   :  { %v1893_v35 = vadd.f32 0.5, %v1892_v49  ;;  %v1896_v50 = vmul.f32 0.5, %v3308_v11  ;;  %v3310_v23 = vpop.eup %3309 }
 0x448   :  { %v1897_v45 = vadd.f32 0.5, %v1896_v50  ;;  %v1904_v46 = vmul.f32 %v3310_v23, %v1893_v35 }
 0x44a   :  { %v1903_v31 = vmul.f32 %v1897_v45, %v4684_v2 }
 0x44c   :  { %v4838_v40 = vadd.f32 %v1904_v46, %v1903_v31 }
 0x471   :  { %v1812_v38 = vpop.f32.mrf.mxu0  ;;  %v1853_v54 = vpop.f32.mrf.mxu1 }
 0x472   :  { %v1860_v41 = vadd.f32 %v1812_v38, %v4517_v39  ;;  %v1862_v35 = vadd.f32 %v1853_v54, %v4526_v13 }
 0x473   :  { %v1814_v1 = vpop.f32.mrf.mxu0  ;;  %v1855_v42 = vpop.f32.mrf.mxu1 }
 0x474   :  { %v1864_v4 = vmul.f32 0.5, %v1860_v41  ;;  %v1861_v51 = vadd.f32 %v1814_v1, %v4521_v63  ;;  %v1863_v2 = vadd.f32 %v1855_v42, %v4532_v33 }
 0x475   :  { %v1816_v37 = vpop.f32.mrf.mxu0  ;;  %v1857_v12 = vpop.f32.mrf.mxu1 }
 0x476   :  { %3311 = vtanh.f32 %v1864_v4  ;;  %v1868_v11 = vmul.f32 0.5, %v1861_v51  ;;  %v1873_v56 = vmul.f32 0.5, %v1863_v2 }
 0x477   :  { %v1817_v36 = vpop.f32.mrf.mxu0  ;;  %v1858_v5 = vpop.f32.mrf.mxu1 }
 0x478   :  { %3313 = vtanh.f32 %v1868_v11 }
 0x479   :  { %3315 = vtanh.f32 %v1862_v35 }
 0x47a   :  { %3317 = vtanh.f32 %v1899_v18 }
 0x47b   :  { %3319 = vtanh.f32 %v1873_v56  ;;  %v6197_v56 = vld [vmem:[#allocation91_spill] sm:$0xff] }
 0x47c   :  { %3321 = vtanh.f32 %v4838_v40 }
 0x483   :  { %v3312_v49 = vpop.eup %3311 }
 0x484   :  { %v1866_v50 = vmul.f32 0.5, %v3312_v49  ;;  %v6198_v49 = vld [vmem:[#allocation92_spill] sm:$0xff] }
 0x485   :  { %v3314_v23 = vpop.eup %3313 }
 0x486   :  { %v1867_v45 = vadd.f32 0.5, %v1866_v50  ;;  %v1870_v46 = vmul.f32 0.5, %v3314_v23  ;;  %v3316_v38 = vpop.eup %3315  ;;  %v6199_v50 = vld [vmem:[#allocation93_spill] sm:$0xff]  ;;  %v6200_v23 = vld [vmem:[#allocation94_spill] sm:$0xff] }
 0x487   :  { %v3318_v20 = vpop.eup %3317 }
 0x488   :  { %v1871_v31 = vadd.f32 0.5, %v1870_v46  ;;  %v1878_v1 = vmul.f32 %v3316_v38, %v1867_v45  ;;  %v3320_v42 = vpop.eup %3319  ;;  %v1901_v4 = vmul.f32 0.5, %v3318_v20  ;;  %v6201_v45 = vld [vmem:[#allocation95_spill] sm:$0xff]  ;;  %v6202_v46 = vld [vmem:[#allocation96_spill] sm:$0xff]  ;;  %v6204_v38 = vld [vmem:[#allocation98_spill] sm:$0xff] }
 0x489   :  { %v1875_v51 = vmul.f32 0.5, %v3320_v42  ;;  %v3322_v37 = vpop.eup %3321  ;;  %v6207_v20 = vld [vmem:[#allocation101_spill] sm:$0xff]  ;;  %v6208_v42 = vld [vmem:[#allocation102_spill] sm:$0xff] }
 0x48a   :  { %v1877_v41 = vmul.f32 %v1871_v31, %v4692_v7  ;;  %v1902_v12 = vadd.f32 0.5, %v1901_v4  ;;  %v6196_v7 = vld [vmem:[#allocation90_spill] sm:$0xff]  ;;  %v6203_v31 = vld [vmem:[#allocation97_spill] sm:$0xff]  ;;  %v6209_v4 = vld [vmem:[#allocation103_spill] sm:$0xff] }
 0x48b   :  { %v1876_v11 = vadd.f32 0.5, %v1875_v51  ;;  %v6210_v51 = vld [vmem:[#allocation121_spill] sm:$0xff] }
 0x48c   :  { %v4846_v54 = vadd.f32 %v1878_v1, %v1877_v41  ;;  %v1907_v5 = vmul.f32 %v3322_v37, %v1902_v12  ;;  %v6205_v41 = vld [vmem:[#allocation99_spill] sm:$0xff]  ;;  %v6206_v1 = vld [vmem:[#allocation100_spill] sm:$0xff]  ;;  %v6211_v37 = vld [vmem:[#allocation122_spill] sm:$0xff] }
 0x48d   :  { %v6212_v12 = vld [vmem:[#allocation123_spill] sm:$0xff] }
 0x48e   :  { %3323 = vtanh.f32 %v4846_v54  ;;  %v4849_v18 = vpack.c.bf16 %v1907_v5, %v1907_v5  ;;  %v6215_v5 = vld [vmem:[#allocation126_spill] sm:$0xff] }
 0x49b   :  { %v3324_v36 = vpop.eup %3323 }
 0x49c   :  { %v1881_v35 = vmul.f32 %v3324_v36, %v1876_v11  ;;  %v6213_v11 = vld [vmem:[#allocation124_spill] sm:$0xff]  ;;  %v6214_v36 = vld [vmem:[#allocation125_spill] sm:$0xff] }
 0x49e   :  { %v1909_v2 = vpack.c.bf16 %v1881_v35, %v1881_v35  ;;  %v6216_v35 = vld [vmem:[#allocation127_spill] sm:$0xff] }
 0x4a0   :  { %1942 = vmatprep.mubr.bf16.mxu0 %v1909_v2  ;;  %1983 = vmatprep.mubr.bf16.mxu1 %v1909_v2 }
 0x4a1   :  { %1943 = vmatmul.mubr.bf16.vlgmr.msra.gmra.mxu0 %v4849_v18  ;;  %1984 = vmatmul.mubr.bf16.vlgmr.msra.gmra.mxu1 %v4849_v18 }
 0x4a2   :  { %1993 = vmatpush1.bf16.msra.mxu0 %v5999_v27  ;;  %2034 = vmatpush1.bf16.msra.mxu1 %v6000_v0 }
 0x4a3   :  { %2024 = vmatprep.mubr.bf16.mxu0 %v1909_v2  ;;  %2065 = vmatprep.mubr.bf16.mxu1 %v1909_v2  ;;  %v6217_v2 = vld [vmem:[#allocation128_spill] sm:$0xff] }
 0x4a4   :  { %1994 = vmatprep.subr.bf16.mxu0 %v6001_v48  ;;  %2035 = vmatprep.subr.bf16.mxu1 %v6002_v29 }
 0x4a6   :  { %1995 = vmatpush1.bf16.msra.mxu0 %v6003_v34  ;;  %2036 = vmatpush1.bf16.msra.mxu1 %v6004_v55 }
 0x4a7   :  { %1996 = vmatprep.subr.bf16.mxu0 %v6095_v15  ;;  %2037 = vmatprep.subr.bf16.mxu1 %v6096_v8 }
 0x4aa   :  { %1997 = vmatpush1.bf16.msra.mxu0 %v6097_v26  ;;  %2038 = vmatpush1.bf16.msra.mxu1 %v6098_v30 }
 0x4ab   :  { %1998 = vmatprep.subr.bf16.mxu0 %v6099_v6  ;;  %2039 = vmatprep.subr.bf16.mxu1 %v6100_v9 }
 0x4ae   :  { %1999 = vmatpush1.bf16.msra.mxu0 %v6101_v24  ;;  %2040 = vmatpush1.bf16.msra.mxu1 %v6102_v3 }
 0x4af   :  { %2000 = vmatprep.subr.bf16.mxu0 %v6103_v58  ;;  %2041 = vmatprep.subr.bf16.mxu1 %v6104_v61 }
 0x4b2   :  { %2001 = vmatpush1.bf16.msra.mxu0 %v6105_v14  ;;  %2042 = vmatpush1.bf16.msra.mxu1 %v6196_v7 }
 0x4b3   :  { %2002 = vmatprep.subr.bf16.mxu0 %v6197_v56  ;;  %2043 = vmatprep.subr.bf16.mxu1 %v6198_v49 }
 0x4b6   :  { %2003 = vmatpush1.bf16.msra.mxu0 %v6199_v50  ;;  %2044 = vmatpush1.bf16.msra.mxu1 %v6200_v23 }
 0x4b7   :  { %2004 = vmatprep.subr.bf16.mxu0 %v6201_v45  ;;  %2045 = vmatprep.subr.bf16.mxu1 %v6202_v46 }
 0x4ba   :  { %2005 = vmatpush1.bf16.msra.mxu0 %v6203_v31  ;;  %2046 = vmatpush1.bf16.msra.mxu1 %v6204_v38 }
 0x4bb   :  { %2006 = vmatprep.subr.bf16.mxu0 %v6205_v41  ;;  %2047 = vmatprep.subr.bf16.mxu1 %v6206_v1 }
 0x4be   :  { %2007 = vmatpush1.bf16.msra.mxu0 %v6207_v20  ;;  %2048 = vmatpush1.bf16.msra.mxu1 %v6208_v42 }
 0x4bf   :  { %2008 = vmatprep.subr.bf16.mxu0 %v6209_v4  ;;  %2049 = vmatprep.subr.bf16.mxu1 %v6120_v10 }
 0x4c2   :  { %2009 = vmatpush2.bf16.msra.mxu0 %v6121_v57  ;;  %2050 = vmatpush2.bf16.msra.mxu1 %v6122_v22 }
 0x4c3   :  { %2010 = vmatprep.subr.bf16.mxu0 %v6123_v25  ;;  %2051 = vmatprep.subr.bf16.mxu1 %v6124_v47 }
 0x4c6   :  { %2011 = vmatpush2.bf16.msra.mxu0 %v6125_v52  ;;  %2052 = vmatpush2.bf16.msra.mxu1 %v6126_v53 }
 0x4c7   :  { %2012 = vmatprep.subr.bf16.mxu0 %v6127_v44  ;;  %2053 = vmatprep.subr.bf16.mxu1 %v6128_v62 }
 0x4ca   :  { %2013 = vmatpush2.bf16.msra.mxu0 %v6129_v16  ;;  %2054 = vmatpush2.bf16.msra.mxu1 %v6130_v17 }
 0x4cb   :  { %2014 = vmatprep.subr.bf16.mxu0 %v6041_v28  ;;  %2055 = vmatprep.subr.bf16.mxu1 %v6042_v60  ;;  %v6294_v28 = vld [vmem:[#allocation72_spill] sm:$0xff] }
 0x4ce   :  { %2015 = vmatpush2.bf16.msra.mxu0 %v6043_v32  ;;  %2056 = vmatpush2.bf16.msra.mxu1 %v6044_v19  ;;  %v6218_v19 = vld [vmem:[#allocation129_spill] sm:$0xff]  ;;  %v6293_v32 = vld [vmem:[#allocation143_spill] sm:$0xff] }
 0x4cf   :  { %2016 = vmatprep.subr.bf16.mxu0 %v6045_v59  ;;  %2057 = vmatprep.subr.bf16.mxu1 %v6046_v21  ;;  %v6219_v59 = vld [vmem:[#allocation130_spill] sm:$0xff]  ;;  %v6220_v21 = vld [vmem:[#allocation131_spill] sm:$0xff] }
 0x4d2   :  { %2017 = vmatpush2.bf16.msra.mxu0 %v6210_v51  ;;  %2058 = vmatpush2.bf16.msra.mxu1 %v6211_v37  ;;  %v6221_v51 = vld [vmem:[#allocation132_spill] sm:$0xff]  ;;  %v6222_v37 = vld [vmem:[#allocation133_spill] sm:$0xff] }
 0x4d3   :  { %2018 = vmatprep.subr.bf16.mxu0 %v6212_v12  ;;  %2059 = vmatprep.subr.bf16.mxu1 %v6213_v11  ;;  %v6223_v12 = vld [vmem:[#allocation134_spill] sm:$0xff]  ;;  %v6224_v11 = vld [vmem:[#allocation3_spill] sm:$0xff] }
 0x4d6   :  { %2019 = vmatpush2.bf16.msra.mxu0 %v6214_v36  ;;  %2060 = vmatpush2.bf16.msra.mxu1 %v6215_v5  ;;  %v6225_v36 = vld [vmem:[#allocation4_spill] sm:$0xff] }
 0x4d7   :  { %2020 = vmatprep.subr.bf16.mxu0 %v6216_v35  ;;  %2061 = vmatprep.subr.bf16.mxu1 %v6217_v2  ;;  %v6226_v2 = vld [vmem:[#allocation5_spill] sm:$0xff]  ;;  %v6235_v35 = vld [vmem:[#allocation15_spill] sm:$0xff] }
 0x4da   :  { %2021 = vmatpush2.bf16.msra.mxu0 %v6218_v19  ;;  %2062 = vmatpush2.bf16.msra.mxu1 %v6219_v59  ;;  %v6227_v19 = vld [vmem:[#allocation7_spill] sm:$0xff]  ;;  %v6228_v59 = vld [vmem:[#allocation6_spill] sm:$0xff] }
 0x4db   :  { %2022 = vmatprep.subr.bf16.mxu0 %v6220_v21  ;;  %2063 = vmatprep.subr.bf16.mxu1 %v6221_v51  ;;  %v6229_v21 = vld [vmem:[#allocation8_spill] sm:$0xff]  ;;  %v6230_v51 = vld [vmem:[#allocation9_spill] sm:$0xff] }
 0x4de   :  { %2023 = vmatpush2.bf16.msra.mxu0 %v6222_v37  ;;  %2064 = vmatpush2.bf16.msra.mxu1 %v6223_v12  ;;  %v6231_v37 = vld [vmem:[#allocation11_spill] sm:$0xff]  ;;  %v6232_v12 = vld [vmem:[#allocation10_spill] sm:$0xff] }
 0x4df   :  { %2124 = vmatprep.subr.bf16.mxu0 %v6224_v11  ;;  %2165 = vmatprep.subr.bf16.mxu1 %v6225_v36  ;;  %v6233_v11 = vld [vmem:[#allocation12_spill] sm:$0xff]  ;;  %v6234_v36 = vld [vmem:[#allocation13_spill] sm:$0xff] }
 0x4e1   :  { %2025 = vmatmul.mubr.bf16.vlgmr.msra.gmra.mxu0 %v4849_v18  ;;  %2066 = vmatmul.mubr.bf16.vlgmr.msra.gmra.mxu1 %v4849_v18  ;;  %v6236_v18 = vld [vmem:[#allocation14_spill] sm:$0xff] }
 0x4e2   :  { %2125 = vmatpush1.bf16.msra.mxu0 %v6226_v2  ;;  %2166 = vmatpush1.bf16.msra.mxu1 %v6227_v19  ;;  %v6237_v2 = vld [vmem:[#allocation16_spill] sm:$0xff]  ;;  %v6238_v19 = vld [vmem:[#allocation17_spill] sm:$0xff] }
 0x4e3   :  { %2126 = vmatprep.subr.bf16.mxu0 %v6228_v59  ;;  %2167 = vmatprep.subr.bf16.mxu1 %v6229_v21  ;;  %v6239_v59 = vld [vmem:[#allocation19_spill] sm:$0xff]  ;;  %v6240_v21 = vld [vmem:[#allocation18_spill] sm:$0xff] }
 0x4e6   :  { %2127 = vmatpush1.bf16.msra.mxu0 %v6230_v51  ;;  %2168 = vmatpush1.bf16.msra.mxu1 %v6231_v37  ;;  %v6241_v51 = vld [vmem:[#allocation20_spill] sm:$0xff]  ;;  %v6242_v37 = vld [vmem:[#allocation21_spill] sm:$0xff] }
 0x4e7   :  { %2128 = vmatprep.subr.bf16.mxu0 %v6232_v12  ;;  %2169 = vmatprep.subr.bf16.mxu1 %v6233_v11  ;;  %v6243_v12 = vld [vmem:[#allocation22_spill] sm:$0xff]  ;;  %v6244_v11 = vld [vmem:[#allocation23_spill] sm:$0xff] }
 0x4ea   :  { %2129 = vmatpush1.bf16.msra.mxu0 %v6234_v36  ;;  %2170 = vmatpush1.bf16.msra.mxu1 %v6235_v35  ;;  %v6245_v36 = vld [vmem:[#allocation24_spill] sm:$0xff]  ;;  %v6246_v35 = vld [vmem:[#allocation25_spill] sm:$0xff] }
 0x4eb   :  { %2130 = vmatprep.subr.bf16.mxu0 %v6236_v18  ;;  %2171 = vmatprep.subr.bf16.mxu1 %v6237_v2  ;;  %v6247_v18 = vld [vmem:[#allocation26_spill] sm:$0xff]  ;;  %v6248_v2 = vld [vmem:[#allocation27_spill] sm:$0xff] }
 0x4ee   :  { %2131 = vmatpush1.bf16.msra.mxu0 %v6238_v19  ;;  %2172 = vmatpush1.bf16.msra.mxu1 %v6239_v59  ;;  %v6249_v19 = vld [vmem:[#allocation28_spill] sm:$0xff]  ;;  %v6250_v59 = vld [vmem:[#allocation29_spill] sm:$0xff] }
 0x4ef   :  { %2132 = vmatprep.subr.bf16.mxu0 %v6240_v21  ;;  %2173 = vmatprep.subr.bf16.mxu1 %v6241_v51  ;;  %v6251_v21 = vld [vmem:[#allocation30_spill] sm:$0xff]  ;;  %v6252_v51 = vld [vmem:[#allocation31_spill] sm:$0xff] }
 0x4f2   :  { %2133 = vmatpush1.bf16.msra.mxu0 %v6242_v37  ;;  %2174 = vmatpush1.bf16.msra.mxu1 %v6243_v12  ;;  %v6253_v37 = vld [vmem:[#allocation32_spill] sm:$0xff]  ;;  %v6254_v12 = vld [vmem:[#allocation33_spill] sm:$0xff] }
 0x4f3   :  { %2134 = vmatprep.subr.bf16.mxu0 %v6244_v11  ;;  %2175 = vmatprep.subr.bf16.mxu1 %v6245_v36  ;;  %v6255_v11 = vld [vmem:[#allocation34_spill] sm:$0xff]  ;;  %v6256_v36 = vld [vmem:[#allocation35_spill] sm:$0xff] }
 0x4f6   :  { %2135 = vmatpush1.bf16.msra.mxu0 %v6246_v35  ;;  %2176 = vmatpush1.bf16.msra.mxu1 %v6247_v18  ;;  %v6257_v35 = vld [vmem:[#allocation36_spill] sm:$0xff]  ;;  %v6258_v18 = vld [vmem:[#allocation37_spill] sm:$0xff] }
 0x4f7   :  { %2136 = vmatprep.subr.bf16.mxu0 %v6248_v2  ;;  %2177 = vmatprep.subr.bf16.mxu1 %v6249_v19  ;;  %v6259_v2 = vld [vmem:[#allocation38_spill] sm:$0xff]  ;;  %v6260_v19 = vld [vmem:[#allocation39_spill] sm:$0xff] }
 0x4fa   :  { %2137 = vmatpush1.bf16.msra.mxu0 %v6250_v59  ;;  %2178 = vmatpush1.bf16.msra.mxu1 %v6251_v21  ;;  %v6261_v59 = vld [vmem:[#allocation40_spill] sm:$0xff]  ;;  %v6262_v21 = vld [vmem:[#allocation41_spill] sm:$0xff] }
 0x4fb   :  { %2138 = vmatprep.subr.bf16.mxu0 %v6252_v51  ;;  %2179 = vmatprep.subr.bf16.mxu1 %v6253_v37  ;;  %v6263_v51 = vld [vmem:[#allocation42_spill] sm:$0xff]  ;;  %v6264_v37 = vld [vmem:[#allocation43_spill] sm:$0xff] }
 0x4fe   :  { %2139 = vmatpush1.bf16.msra.mxu0 %v6254_v12  ;;  %2180 = vmatpush1.bf16.msra.mxu1 %v6255_v11  ;;  %v6265_v12 = vld [vmem:[#allocation44_spill] sm:$0xff]  ;;  %v6266_v11 = vld [vmem:[#allocation45_spill] sm:$0xff] }
 0x4ff   :  { %2140 = vmatprep.subr.bf16.mxu0 %v6256_v36  ;;  %2181 = vmatprep.subr.bf16.mxu1 %v6257_v35  ;;  %v6267_v36 = vld [vmem:[#allocation46_spill] sm:$0xff]  ;;  %v6268_v35 = vld [vmem:[#allocation47_spill] sm:$0xff] }
 0x502   :  { %2141 = vmatpush2.bf16.msra.mxu0 %v6258_v18  ;;  %2182 = vmatpush2.bf16.msra.mxu1 %v6259_v2  ;;  %v6269_v18 = vld [vmem:[#allocation48_spill] sm:$0xff]  ;;  %v6270_v2 = vld [vmem:[#allocation49_spill] sm:$0xff] }
 0x503   :  { %2142 = vmatprep.subr.bf16.mxu0 %v6260_v19  ;;  %2183 = vmatprep.subr.bf16.mxu1 %v6261_v59  ;;  %v6271_v19 = vld [vmem:[#allocation50_spill] sm:$0xff]  ;;  %v6272_v59 = vld [vmem:[#allocation51_spill] sm:$0xff] }
 0x506   :  { %2143 = vmatpush2.bf16.msra.mxu0 %v6262_v21  ;;  %2184 = vmatpush2.bf16.msra.mxu1 %v6263_v51  ;;  %v6273_v21 = vld [vmem:[#allocation52_spill] sm:$0xff]  ;;  %v6274_v51 = vld [vmem:[#allocation53_spill] sm:$0xff] }
 0x507   :  { %2144 = vmatprep.subr.bf16.mxu0 %v6264_v37  ;;  %2185 = vmatprep.subr.bf16.mxu1 %v6265_v12  ;;  %v6275_v37 = vld [vmem:[#allocation54_spill] sm:$0xff]  ;;  %v6276_v12 = vld [vmem:[#allocation55_spill] sm:$0xff] }
 0x50a   :  { %2145 = vmatpush2.bf16.msra.mxu0 %v6266_v11  ;;  %2186 = vmatpush2.bf16.msra.mxu1 %v6267_v36  ;;  %v6277_v11 = vld [vmem:[#allocation56_spill] sm:$0xff]  ;;  %v6278_v36 = vld [vmem:[#allocation57_spill] sm:$0xff] }
 0x50b   :  { %2146 = vmatprep.subr.bf16.mxu0 %v6268_v35  ;;  %2187 = vmatprep.subr.bf16.mxu1 %v6269_v18  ;;  %v6279_v35 = vld [vmem:[#allocation58_spill] sm:$0xff]  ;;  %v6280_v18 = vld [vmem:[#allocation59_spill] sm:$0xff] }
 0x50e   :  { %2147 = vmatpush2.bf16.msra.mxu0 %v6270_v2  ;;  %2188 = vmatpush2.bf16.msra.mxu1 %v6271_v19  ;;  %v6281_v2 = vld [vmem:[#allocation60_spill] sm:$0xff]  ;;  %v6282_v19 = vld [vmem:[#allocation61_spill] sm:$0xff] }
 0x50f   :  { %2148 = vmatprep.subr.bf16.mxu0 %v6272_v59  ;;  %2189 = vmatprep.subr.bf16.mxu1 %v6273_v21  ;;  %v6283_v59 = vld [vmem:[#allocation62_spill] sm:$0xff]  ;;  %v6284_v21 = vld [vmem:[#allocation63_spill] sm:$0xff] }
 0x512   :  { %2149 = vmatpush2.bf16.msra.mxu0 %v6274_v51  ;;  %2190 = vmatpush2.bf16.msra.mxu1 %v6275_v37  ;;  %v6285_v51 = vld [vmem:[#allocation64_spill] sm:$0xff]  ;;  %v6286_v37 = vld [vmem:[#allocation65_spill] sm:$0xff] }
 0x513   :  { %2150 = vmatprep.subr.bf16.mxu0 %v6276_v12  ;;  %2191 = vmatprep.subr.bf16.mxu1 %v6277_v11  ;;  %v6287_v12 = vld [vmem:[#allocation66_spill] sm:$0xff]  ;;  %v6288_v11 = vld [vmem:[#allocation67_spill] sm:$0xff] }
 0x516   :  { %2151 = vmatpush2.bf16.msra.mxu0 %v6278_v36  ;;  %2192 = vmatpush2.bf16.msra.mxu1 %v6279_v35  ;;  %v6289_v36 = vld [vmem:[#allocation68_spill] sm:$0xff]  ;;  %v6290_v35 = vld [vmem:[#allocation71_spill] sm:$0xff] }
 0x517   :  { %2152 = vmatprep.subr.bf16.mxu0 %v6280_v18  ;;  %2193 = vmatprep.subr.bf16.mxu1 %v6281_v2  ;;  %v6291_v18 = vld [vmem:[#allocation144_spill] sm:$0xff]  ;;  %v6292_v2 = vld [vmem:[#allocation73_spill] sm:$0xff] }
 0x518   :  { %v331_v5 = vadd.f32 %v6291_v18, %v6290_v35 }
 0x51a   :  { %2153 = vmatpush2.bf16.msra.mxu0 %v6282_v19  ;;  %2194 = vmatpush2.bf16.msra.mxu1 %v6283_v59  ;;  %v404_v19 = vadd.f32 %v6293_v32, %v6292_v2 }
 0x51b   :  { %2154 = vmatprep.subr.bf16.mxu0 %v6284_v21  ;;  %2195 = vmatprep.subr.bf16.mxu1 %v6285_v51  ;;  %v6295_v21 = vld [vmem:[#allocation146_spill] sm:$0xff]  ;;  %v6296_v51 = vld [vmem:[#allocation145_spill] sm:$0xff] }
 0x51c   :  { %v333_v17 = vadd.f32 %v6295_v21, %v6294_v28 }
 0x51e   :  { %2155 = vmatpush2.bf16.msra.mxu0 %v6286_v37  ;;  %2196 = vmatpush2.bf16.msra.mxu1 %v6287_v12  ;;  %v406_v37 = vadd.f32 %v6296_v51, %v5998_v43 }
 0x51f   :  { %2206 = vmatprep.subr.bf16.mxu0 %v6288_v11  ;;  %2247 = vmatprep.subr.bf16.mxu1 %v6289_v36 }
 0x561   :  { %v1944_v60 = vpop.f32.mrf.mxu0  ;;  %v1985_v59 = vpop.f32.mrf.mxu1 }
 0x562   :  { %v2100_v16 = vadd.f32 %v1944_v60, %v331_v5  ;;  %v2102_v12 = vadd.f32 %v1985_v59, %v404_v19 }
 0x563   :  { %v1946_v62 = vpop.f32.mrf.mxu0  ;;  %v1987_v11 = vpop.f32.mrf.mxu1 }
 0x564   :  { %v2104_v44 = vmul.f32 0.5, %v2100_v16  ;;  %v2101_v36 = vadd.f32 %v1946_v62, %v333_v17  ;;  %v2103_v53 = vadd.f32 %v1987_v11, %v406_v37 }
 0x565   :  { %v1948_v52 = vpop.f32.mrf.mxu0  ;;  %v1989_v18 = vpop.f32.mrf.mxu1 }
 0x566   :  { %3325 = vtanh.f32 %v2104_v44  ;;  %v2108_v35 = vmul.f32 0.5, %v2101_v36  ;;  %v2113_v18 = vmul.f32 0.5, %v2103_v53 }
 0x567   :  { %v1949_v32 = vpop.f32.mrf.mxu0  ;;  %v1990_v2 = vpop.f32.mrf.mxu1 }
 0x568   :  { %3327 = vtanh.f32 %v2108_v35 }
 0x569   :  { %3329 = vtanh.f32 %v2102_v12 }
 0x573   :  { %v3326_v47 = vpop.eup %3325 }
 0x574   :  { %v2106_v21 = vmul.f32 0.5, %v3326_v47 }
 0x575   :  { %v3328_v28 = vpop.eup %3327 }
 0x576   :  { %v2107_v25 = vadd.f32 0.5, %v2106_v21  ;;  %v2110_v51 = vmul.f32 0.5, %v3328_v28  ;;  %v3330_v60 = vpop.eup %3329 }
 0x578   :  { %v2111_v19 = vadd.f32 0.5, %v2110_v51  ;;  %v2118_v59 = vmul.f32 %v3330_v60, %v2107_v25 }
 0x57a   :  { %v2117_v16 = vmul.f32 %v2111_v19, %v4838_v40 }
 0x57c   :  { %v4992_v62 = vadd.f32 %v2118_v59, %v2117_v16 }
 0x5a1   :  { %v2026_v17 = vpop.f32.mrf.mxu0  ;;  %v2067_v52 = vpop.f32.mrf.mxu1 }
 0x5a2   :  { %v2074_v44 = vadd.f32 %v2026_v17, %v4517_v39  ;;  %v2076_v25 = vadd.f32 %v2067_v52, %v4526_v13 }
 0x5a3   :  { %v2028_v37 = vpop.f32.mrf.mxu0  ;;  %v2069_v11 = vpop.f32.mrf.mxu1 }
 0x5a4   :  { %v2078_v36 = vmul.f32 0.5, %v2074_v44  ;;  %v2075_v12 = vadd.f32 %v2028_v37, %v4521_v63  ;;  %v2077_v40 = vadd.f32 %v2069_v11, %v4532_v33 }
 0x5a5   :  { %v2030_v47 = vpop.f32.mrf.mxu0  ;;  %v2071_v5 = vpop.f32.mrf.mxu1 }
 0x5a6   :  { %3331 = vtanh.f32 %v2078_v36  ;;  %v2082_v28 = vmul.f32 0.5, %v2075_v12  ;;  %v2087_v32 = vmul.f32 0.5, %v2077_v40 }
 0x5a7   :  { %v2031_v35 = vpop.f32.mrf.mxu0  ;;  %v2072_v2 = vpop.f32.mrf.mxu1 }
 0x5a8   :  { %3333 = vtanh.f32 %v2082_v28 }
 0x5a9   :  { %3335 = vtanh.f32 %v2076_v25 }
 0x5aa   :  { %3337 = vtanh.f32 %v2113_v18 }
 0x5ab   :  { %3339 = vtanh.f32 %v2087_v32  ;;  %v6298_v32 = vld [vmem:[#allocation108_spill] sm:$0xff] }
 0x5ac   :  { %3341 = vtanh.f32 %v4992_v62 }
 0x5b3   :  { %v3332_v21 = vpop.eup %3331 }
 0x5b4   :  { %v2080_v51 = vmul.f32 0.5, %v3332_v21  ;;  %v6299_v21 = vld [vmem:[#allocation109_spill] sm:$0xff] }
 0x5b5   :  { %v3334_v60 = vpop.eup %3333 }
 0x5b6   :  { %v2081_v19 = vadd.f32 0.5, %v2080_v51  ;;  %v2084_v59 = vmul.f32 0.5, %v3334_v60  ;;  %v3336_v17 = vpop.eup %3335  ;;  %v6300_v51 = vld [vmem:[#allocation110_spill] sm:$0xff]  ;;  %v6301_v60 = vld [vmem:[#allocation111_spill] sm:$0xff] }
 0x5b7   :  { %v3338_v53 = vpop.eup %3337 }
 0x5b8   :  { %v2085_v16 = vadd.f32 0.5, %v2084_v59  ;;  %v2092_v37 = vmul.f32 %v3336_v17, %v2081_v19  ;;  %v3340_v11 = vpop.eup %3339  ;;  %v2115_v36 = vmul.f32 0.5, %v3338_v53  ;;  %v6302_v19 = vld [vmem:[#allocation112_spill] sm:$0xff]  ;;  %v6303_v59 = vld [vmem:[#allocation113_spill] sm:$0xff]  ;;  %v6305_v17 = vld [vmem:[#allocation115_spill] sm:$0xff] }
 0x5b9   :  { %v2089_v12 = vmul.f32 0.5, %v3340_v11  ;;  %v3342_v47 = vpop.eup %3341  ;;  %v6308_v53 = vld [vmem:[#allocation118_spill] sm:$0xff]  ;;  %v6309_v11 = vld [vmem:[#allocation119_spill] sm:$0xff] }
 0x5ba   :  { %v2091_v44 = vmul.f32 %v2085_v16, %v4846_v54  ;;  %v2116_v5 = vadd.f32 0.5, %v2115_v36  ;;  %v6297_v54 = vld [vmem:[#allocation107_spill] sm:$0xff]  ;;  %v6304_v16 = vld [vmem:[#allocation114_spill] sm:$0xff]  ;;  %v6310_v36 = vld [vmem:[#allocation120_spill] sm:$0xff] }
 0x5bb   :  { %v2090_v28 = vadd.f32 0.5, %v2089_v12  ;;  %v6311_v12 = vld [vmem:[#allocation121_spill] sm:$0xff] }
 0x5bc   :  { %v5000_v52 = vadd.f32 %v2092_v37, %v2091_v44  ;;  %v2121_v2 = vmul.f32 %v3342_v47, %v2116_v5  ;;  %v6306_v44 = vld [vmem:[#allocation116_spill] sm:$0xff]  ;;  %v6307_v37 = vld [vmem:[#allocation117_spill] sm:$0xff]  ;;  %v6312_v47 = vld [vmem:[#allocation122_spill] sm:$0xff] }
 0x5bd   :  { %v6313_v5 = vld [vmem:[#allocation123_spill] sm:$0xff] }
 0x5be   :  { %3343 = vtanh.f32 %v5000_v52  ;;  %v5003_v18 = vpack.c.bf16 %v2121_v2, %v2121_v2  ;;  %v6316_v2 = vld [vmem:[#allocation126_spill] sm:$0xff] }
 0x5cb   :  { %v3344_v35 = vpop.eup %3343 }
 0x5cc   :  { %v2095_v25 = vmul.f32 %v3344_v35, %v2090_v28  ;;  %v6314_v28 = vld [vmem:[#allocation124_spill] sm:$0xff]  ;;  %v6315_v35 = vld [vmem:[#allocation125_spill] sm:$0xff] }
 0x5ce   :  { %v2123_v40 = vpack.c.bf16 %v2095_v25, %v2095_v25  ;;  %v6317_v25 = vld [vmem:[#allocation127_spill] sm:$0xff] }
 0x5d0   :  { %2156 = vmatprep.mubr.bf16.mxu0 %v2123_v40  ;;  %2197 = vmatprep.mubr.bf16.mxu1 %v2123_v40 }
 0x5d1   :  { %2157 = vmatmul.mubr.bf16.vlgmr.msra.gmra.mxu0 %v5003_v18  ;;  %2198 = vmatmul.mubr.bf16.vlgmr.msra.gmra.mxu1 %v5003_v18 }
 0x5d2   :  { %2207 = vmatpush1.bf16.msra.mxu0 %v5999_v27  ;;  %2248 = vmatpush1.bf16.msra.mxu1 %v6000_v0 }
 0x5d3   :  { %2238 = vmatprep.mubr.bf16.mxu0 %v2123_v40  ;;  %2279 = vmatprep.mubr.bf16.mxu1 %v2123_v40  ;;  %v6318_v40 = vld [vmem:[#allocation128_spill] sm:$0xff] }
 0x5d4   :  { %2208 = vmatprep.subr.bf16.mxu0 %v6001_v48  ;;  %2249 = vmatprep.subr.bf16.mxu1 %v6002_v29 }
 0x5d6   :  { %2209 = vmatpush1.bf16.msra.mxu0 %v6003_v34  ;;  %2250 = vmatpush1.bf16.msra.mxu1 %v6004_v55 }
 0x5d7   :  { %2210 = vmatprep.subr.bf16.mxu0 %v6095_v15  ;;  %2251 = vmatprep.subr.bf16.mxu1 %v6096_v8 }
 0x5da   :  { %2211 = vmatpush1.bf16.msra.mxu0 %v6097_v26  ;;  %2252 = vmatpush1.bf16.msra.mxu1 %v6098_v30 }
 0x5db   :  { %2212 = vmatprep.subr.bf16.mxu0 %v6099_v6  ;;  %2253 = vmatprep.subr.bf16.mxu1 %v6100_v9 }
 0x5de   :  { %2213 = vmatpush1.bf16.msra.mxu0 %v6101_v24  ;;  %2254 = vmatpush1.bf16.msra.mxu1 %v6102_v3 }
 0x5df   :  { %2214 = vmatprep.subr.bf16.mxu0 %v6103_v58  ;;  %2255 = vmatprep.subr.bf16.mxu1 %v6104_v61 }
 0x5e2   :  { %2215 = vmatpush1.bf16.msra.mxu0 %v6105_v14  ;;  %2256 = vmatpush1.bf16.msra.mxu1 %v6196_v7 }
 0x5e3   :  { %2216 = vmatprep.subr.bf16.mxu0 %v6197_v56  ;;  %2257 = vmatprep.subr.bf16.mxu1 %v6198_v49 }
 0x5e6   :  { %2217 = vmatpush1.bf16.msra.mxu0 %v6199_v50  ;;  %2258 = vmatpush1.bf16.msra.mxu1 %v6200_v23 }
 0x5e7   :  { %2218 = vmatprep.subr.bf16.mxu0 %v6201_v45  ;;  %2259 = vmatprep.subr.bf16.mxu1 %v6202_v46 }
 0x5ea   :  { %2219 = vmatpush1.bf16.msra.mxu0 %v6203_v31  ;;  %2260 = vmatpush1.bf16.msra.mxu1 %v6204_v38 }
 0x5eb   :  { %2220 = vmatprep.subr.bf16.mxu0 %v6205_v41  ;;  %2261 = vmatprep.subr.bf16.mxu1 %v6206_v1 }
 0x5ee   :  { %2221 = vmatpush1.bf16.msra.mxu0 %v6207_v20  ;;  %2262 = vmatpush1.bf16.msra.mxu1 %v6208_v42 }
 0x5ef   :  { %2222 = vmatprep.subr.bf16.mxu0 %v6209_v4  ;;  %2263 = vmatprep.subr.bf16.mxu1 %v6120_v10 }
 0x5f2   :  { %2223 = vmatpush2.bf16.msra.mxu0 %v6121_v57  ;;  %2264 = vmatpush2.bf16.msra.mxu1 %v6122_v22 }
 0x5f3   :  { %2224 = vmatprep.subr.bf16.mxu0 %v6297_v54  ;;  %2265 = vmatprep.subr.bf16.mxu1 %v6298_v32 }
 0x5f6   :  { %2225 = vmatpush2.bf16.msra.mxu0 %v6299_v21  ;;  %2266 = vmatpush2.bf16.msra.mxu1 %v6300_v51 }
 0x5f7   :  { %2226 = vmatprep.subr.bf16.mxu0 %v6301_v60  ;;  %2267 = vmatprep.subr.bf16.mxu1 %v6302_v19 }
 0x5fa   :  { %2227 = vmatpush2.bf16.msra.mxu0 %v6303_v59  ;;  %2268 = vmatpush2.bf16.msra.mxu1 %v6304_v16 }
 0x5fb   :  { %2228 = vmatprep.subr.bf16.mxu0 %v6305_v17  ;;  %2269 = vmatprep.subr.bf16.mxu1 %v6306_v44  ;;  %v6395_v17 = vld [vmem:[#allocation72_spill] sm:$0xff] }
 0x5fe   :  { %2229 = vmatpush2.bf16.msra.mxu0 %v6307_v37  ;;  %2270 = vmatpush2.bf16.msra.mxu1 %v6308_v53  ;;  %v6319_v53 = vld [vmem:[#allocation129_spill] sm:$0xff]  ;;  %v6394_v37 = vld [vmem:[#allocation147_spill] sm:$0xff] }
 0x5ff   :  { %2230 = vmatprep.subr.bf16.mxu0 %v6309_v11  ;;  %2271 = vmatprep.subr.bf16.mxu1 %v6310_v36  ;;  %v6320_v11 = vld [vmem:[#allocation130_spill] sm:$0xff]  ;;  %v6321_v36 = vld [vmem:[#allocation131_spill] sm:$0xff] }
 0x602   :  { %2231 = vmatpush2.bf16.msra.mxu0 %v6311_v12  ;;  %2272 = vmatpush2.bf16.msra.mxu1 %v6312_v47  ;;  %v6322_v12 = vld [vmem:[#allocation132_spill] sm:$0xff]  ;;  %v6323_v47 = vld [vmem:[#allocation133_spill] sm:$0xff] }
 0x603   :  { %2232 = vmatprep.subr.bf16.mxu0 %v6313_v5  ;;  %2273 = vmatprep.subr.bf16.mxu1 %v6314_v28  ;;  %v6324_v5 = vld [vmem:[#allocation134_spill] sm:$0xff]  ;;  %v6325_v28 = vld [vmem:[#allocation3_spill] sm:$0xff] }
 0x606   :  { %2233 = vmatpush2.bf16.msra.mxu0 %v6315_v35  ;;  %2274 = vmatpush2.bf16.msra.mxu1 %v6316_v2  ;;  %v6326_v35 = vld [vmem:[#allocation4_spill] sm:$0xff] }
 0x607   :  { %2234 = vmatprep.subr.bf16.mxu0 %v6317_v25  ;;  %2275 = vmatprep.subr.bf16.mxu1 %v6318_v40  ;;  %v6327_v40 = vld [vmem:[#allocation5_spill] sm:$0xff]  ;;  %v6336_v25 = vld [vmem:[#allocation15_spill] sm:$0xff] }
 0x60a   :  { %2235 = vmatpush2.bf16.msra.mxu0 %v6319_v53  ;;  %2276 = vmatpush2.bf16.msra.mxu1 %v6320_v11  ;;  %v6328_v53 = vld [vmem:[#allocation7_spill] sm:$0xff]  ;;  %v6329_v11 = vld [vmem:[#allocation6_spill] sm:$0xff] }
 0x60b   :  { %2236 = vmatprep.subr.bf16.mxu0 %v6321_v36  ;;  %2277 = vmatprep.subr.bf16.mxu1 %v6322_v12  ;;  %v6330_v36 = vld [vmem:[#allocation8_spill] sm:$0xff]  ;;  %v6331_v12 = vld [vmem:[#allocation9_spill] sm:$0xff] }
 0x60e   :  { %2237 = vmatpush2.bf16.msra.mxu0 %v6323_v47  ;;  %2278 = vmatpush2.bf16.msra.mxu1 %v6324_v5  ;;  %v6332_v47 = vld [vmem:[#allocation11_spill] sm:$0xff]  ;;  %v6333_v5 = vld [vmem:[#allocation10_spill] sm:$0xff] }
 0x60f   :  { %2338 = vmatprep.subr.bf16.mxu0 %v6325_v28  ;;  %2379 = vmatprep.subr.bf16.mxu1 %v6326_v35  ;;  %v6334_v28 = vld [vmem:[#allocation12_spill] sm:$0xff]  ;;  %v6335_v35 = vld [vmem:[#allocation13_spill] sm:$0xff] }
 0x611   :  { %2239 = vmatmul.mubr.bf16.vlgmr.msra.gmra.mxu0 %v5003_v18  ;;  %2280 = vmatmul.mubr.bf16.vlgmr.msra.gmra.mxu1 %v5003_v18  ;;  %v6337_v18 = vld [vmem:[#allocation14_spill] sm:$0xff] }
 0x612   :  { %2339 = vmatpush1.bf16.msra.mxu0 %v6327_v40  ;;  %2380 = vmatpush1.bf16.msra.mxu1 %v6328_v53  ;;  %v6338_v40 = vld [vmem:[#allocation16_spill] sm:$0xff]  ;;  %v6339_v53 = vld [vmem:[#allocation17_spill] sm:$0xff] }
 0x613   :  { %2340 = vmatprep.subr.bf16.mxu0 %v6329_v11  ;;  %2381 = vmatprep.subr.bf16.mxu1 %v6330_v36  ;;  %v6340_v11 = vld [vmem:[#allocation19_spill] sm:$0xff]  ;;  %v6341_v36 = vld [vmem:[#allocation18_spill] sm:$0xff] }
 0x616   :  { %2341 = vmatpush1.bf16.msra.mxu0 %v6331_v12  ;;  %2382 = vmatpush1.bf16.msra.mxu1 %v6332_v47  ;;  %v6342_v12 = vld [vmem:[#allocation20_spill] sm:$0xff]  ;;  %v6343_v47 = vld [vmem:[#allocation21_spill] sm:$0xff] }
 0x617   :  { %2342 = vmatprep.subr.bf16.mxu0 %v6333_v5  ;;  %2383 = vmatprep.subr.bf16.mxu1 %v6334_v28  ;;  %v6344_v5 = vld [vmem:[#allocation22_spill] sm:$0xff]  ;;  %v6345_v28 = vld [vmem:[#allocation23_spill] sm:$0xff] }
 0x61a   :  { %2343 = vmatpush1.bf16.msra.mxu0 %v6335_v35  ;;  %2384 = vmatpush1.bf16.msra.mxu1 %v6336_v25  ;;  %v6346_v35 = vld [vmem:[#allocation24_spill] sm:$0xff]  ;;  %v6347_v25 = vld [vmem:[#allocation25_spill] sm:$0xff] }
 0x61b   :  { %2344 = vmatprep.subr.bf16.mxu0 %v6337_v18  ;;  %2385 = vmatprep.subr.bf16.mxu1 %v6338_v40  ;;  %v6348_v18 = vld [vmem:[#allocation26_spill] sm:$0xff]  ;;  %v6349_v40 = vld [vmem:[#allocation27_spill] sm:$0xff] }
 0x61e   :  { %2345 = vmatpush1.bf16.msra.mxu0 %v6339_v53  ;;  %2386 = vmatpush1.bf16.msra.mxu1 %v6340_v11  ;;  %v6350_v53 = vld [vmem:[#allocation28_spill] sm:$0xff]  ;;  %v6351_v11 = vld [vmem:[#allocation29_spill] sm:$0xff] }
 0x61f   :  { %2346 = vmatprep.subr.bf16.mxu0 %v6341_v36  ;;  %2387 = vmatprep.subr.bf16.mxu1 %v6342_v12  ;;  %v6352_v36 = vld [vmem:[#allocation30_spill] sm:$0xff]  ;;  %v6353_v12 = vld [vmem:[#allocation31_spill] sm:$0xff] }
 0x622   :  { %2347 = vmatpush1.bf16.msra.mxu0 %v6343_v47  ;;  %2388 = vmatpush1.bf16.msra.mxu1 %v6344_v5  ;;  %v6354_v47 = vld [vmem:[#allocation32_spill] sm:$0xff]  ;;  %v6355_v5 = vld [vmem:[#allocation33_spill] sm:$0xff] }
 0x623   :  { %2348 = vmatprep.subr.bf16.mxu0 %v6345_v28  ;;  %2389 = vmatprep.subr.bf16.mxu1 %v6346_v35  ;;  %v6356_v28 = vld [vmem:[#allocation34_spill] sm:$0xff]  ;;  %v6357_v35 = vld [vmem:[#allocation35_spill] sm:$0xff] }
 0x626   :  { %2349 = vmatpush1.bf16.msra.mxu0 %v6347_v25  ;;  %2390 = vmatpush1.bf16.msra.mxu1 %v6348_v18  ;;  %v6358_v25 = vld [vmem:[#allocation36_spill] sm:$0xff]  ;;  %v6359_v18 = vld [vmem:[#allocation37_spill] sm:$0xff] }
 0x627   :  { %2350 = vmatprep.subr.bf16.mxu0 %v6349_v40  ;;  %2391 = vmatprep.subr.bf16.mxu1 %v6350_v53  ;;  %v6360_v40 = vld [vmem:[#allocation38_spill] sm:$0xff]  ;;  %v6361_v53 = vld [vmem:[#allocation39_spill] sm:$0xff] }
 0x62a   :  { %2351 = vmatpush1.bf16.msra.mxu0 %v6351_v11  ;;  %2392 = vmatpush1.bf16.msra.mxu1 %v6352_v36  ;;  %v6362_v11 = vld [vmem:[#allocation40_spill] sm:$0xff]  ;;  %v6363_v36 = vld [vmem:[#allocation41_spill] sm:$0xff] }
 0x62b   :  { %2352 = vmatprep.subr.bf16.mxu0 %v6353_v12  ;;  %2393 = vmatprep.subr.bf16.mxu1 %v6354_v47  ;;  %v6364_v12 = vld [vmem:[#allocation42_spill] sm:$0xff]  ;;  %v6365_v47 = vld [vmem:[#allocation43_spill] sm:$0xff] }
 0x62e   :  { %2353 = vmatpush1.bf16.msra.mxu0 %v6355_v5  ;;  %2394 = vmatpush1.bf16.msra.mxu1 %v6356_v28  ;;  %v6366_v5 = vld [vmem:[#allocation44_spill] sm:$0xff]  ;;  %v6367_v28 = vld [vmem:[#allocation45_spill] sm:$0xff] }
 0x62f   :  { %2354 = vmatprep.subr.bf16.mxu0 %v6357_v35  ;;  %2395 = vmatprep.subr.bf16.mxu1 %v6358_v25  ;;  %v6368_v35 = vld [vmem:[#allocation46_spill] sm:$0xff]  ;;  %v6369_v25 = vld [vmem:[#allocation47_spill] sm:$0xff] }
 0x632   :  { %2355 = vmatpush2.bf16.msra.mxu0 %v6359_v18  ;;  %2396 = vmatpush2.bf16.msra.mxu1 %v6360_v40  ;;  %v6370_v18 = vld [vmem:[#allocation48_spill] sm:$0xff]  ;;  %v6371_v40 = vld [vmem:[#allocation49_spill] sm:$0xff] }
 0x633   :  { %2356 = vmatprep.subr.bf16.mxu0 %v6361_v53  ;;  %2397 = vmatprep.subr.bf16.mxu1 %v6362_v11  ;;  %v6372_v53 = vld [vmem:[#allocation50_spill] sm:$0xff]  ;;  %v6373_v11 = vld [vmem:[#allocation51_spill] sm:$0xff] }
 0x636   :  { %2357 = vmatpush2.bf16.msra.mxu0 %v6363_v36  ;;  %2398 = vmatpush2.bf16.msra.mxu1 %v6364_v12  ;;  %v6374_v36 = vld [vmem:[#allocation52_spill] sm:$0xff]  ;;  %v6375_v12 = vld [vmem:[#allocation53_spill] sm:$0xff] }
 0x637   :  { %2358 = vmatprep.subr.bf16.mxu0 %v6365_v47  ;;  %2399 = vmatprep.subr.bf16.mxu1 %v6366_v5  ;;  %v6376_v47 = vld [vmem:[#allocation54_spill] sm:$0xff]  ;;  %v6377_v5 = vld [vmem:[#allocation55_spill] sm:$0xff] }
 0x63a   :  { %2359 = vmatpush2.bf16.msra.mxu0 %v6367_v28  ;;  %2400 = vmatpush2.bf16.msra.mxu1 %v6368_v35  ;;  %v6378_v28 = vld [vmem:[#allocation56_spill] sm:$0xff]  ;;  %v6379_v35 = vld [vmem:[#allocation57_spill] sm:$0xff] }
 0x63b   :  { %2360 = vmatprep.subr.bf16.mxu0 %v6369_v25  ;;  %2401 = vmatprep.subr.bf16.mxu1 %v6370_v18  ;;  %v6380_v25 = vld [vmem:[#allocation58_spill] sm:$0xff]  ;;  %v6381_v18 = vld [vmem:[#allocation59_spill] sm:$0xff] }
 0x63e   :  { %2361 = vmatpush2.bf16.msra.mxu0 %v6371_v40  ;;  %2402 = vmatpush2.bf16.msra.mxu1 %v6372_v53  ;;  %v6382_v40 = vld [vmem:[#allocation60_spill] sm:$0xff]  ;;  %v6383_v53 = vld [vmem:[#allocation61_spill] sm:$0xff] }
 0x63f   :  { %2362 = vmatprep.subr.bf16.mxu0 %v6373_v11  ;;  %2403 = vmatprep.subr.bf16.mxu1 %v6374_v36  ;;  %v6384_v11 = vld [vmem:[#allocation62_spill] sm:$0xff]  ;;  %v6385_v36 = vld [vmem:[#allocation63_spill] sm:$0xff] }
 0x642   :  { %2363 = vmatpush2.bf16.msra.mxu0 %v6375_v12  ;;  %2404 = vmatpush2.bf16.msra.mxu1 %v6376_v47  ;;  %v6386_v12 = vld [vmem:[#allocation64_spill] sm:$0xff]  ;;  %v6387_v47 = vld [vmem:[#allocation65_spill] sm:$0xff] }
 0x643   :  { %2364 = vmatprep.subr.bf16.mxu0 %v6377_v5  ;;  %2405 = vmatprep.subr.bf16.mxu1 %v6378_v28  ;;  %v6388_v5 = vld [vmem:[#allocation66_spill] sm:$0xff]  ;;  %v6389_v28 = vld [vmem:[#allocation67_spill] sm:$0xff] }
 0x646   :  { %2365 = vmatpush2.bf16.msra.mxu0 %v6379_v35  ;;  %2406 = vmatpush2.bf16.msra.mxu1 %v6380_v25  ;;  %v6390_v35 = vld [vmem:[#allocation68_spill] sm:$0xff]  ;;  %v6391_v25 = vld [vmem:[#allocation71_spill] sm:$0xff] }
 0x647   :  { %2366 = vmatprep.subr.bf16.mxu0 %v6381_v18  ;;  %2407 = vmatprep.subr.bf16.mxu1 %v6382_v40  ;;  %v6392_v18 = vld [vmem:[#allocation148_spill] sm:$0xff]  ;;  %v6393_v40 = vld [vmem:[#allocation73_spill] sm:$0xff] }
 0x648   :  { %v335_v2 = vadd.f32 %v6392_v18, %v6391_v25 }
 0x64a   :  { %2367 = vmatpush2.bf16.msra.mxu0 %v6383_v53  ;;  %2408 = vmatpush2.bf16.msra.mxu1 %v6384_v11  ;;  %v408_v53 = vadd.f32 %v6394_v37, %v6393_v40 }
 0x64b   :  { %2368 = vmatprep.subr.bf16.mxu0 %v6385_v36  ;;  %2409 = vmatprep.subr.bf16.mxu1 %v6386_v12  ;;  %v6396_v36 = vld [vmem:[#allocation150_spill] sm:$0xff]  ;;  %v6397_v12 = vld [vmem:[#allocation149_spill] sm:$0xff] }
 0x64c   :  { %v337_v16 = vadd.f32 %v6396_v36, %v6395_v17 }
 0x64e   :  { %2369 = vmatpush2.bf16.msra.mxu0 %v6387_v47  ;;  %2410 = vmatpush2.bf16.msra.mxu1 %v6388_v5  ;;  %v410_v47 = vadd.f32 %v6397_v12, %v5998_v43 }
 0x64f   :  { %2420 = vmatprep.subr.bf16.mxu0 %v6389_v28  ;;  %2461 = vmatprep.subr.bf16.mxu1 %v6390_v35 }
 0x691   :  { %v2158_v44 = vpop.f32.mrf.mxu0  ;;  %v2199_v11 = vpop.f32.mrf.mxu1 }
 0x692   :  { %v2314_v59 = vadd.f32 %v2158_v44, %v335_v2  ;;  %v2316_v5 = vadd.f32 %v2199_v11, %v408_v53 }
 0x693   :  { %v2160_v19 = vpop.f32.mrf.mxu0  ;;  %v2201_v28 = vpop.f32.mrf.mxu1 }
 0x694   :  { %v2318_v60 = vmul.f32 0.5, %v2314_v59  ;;  %v2315_v35 = vadd.f32 %v2160_v19, %v337_v16  ;;  %v2317_v51 = vadd.f32 %v2201_v28, %v410_v47 }
 0x695   :  { %v2162_v21 = vpop.f32.mrf.mxu0  ;;  %v2203_v18 = vpop.f32.mrf.mxu1 }
 0x696   :  { %3345 = vtanh.f32 %v2318_v60  ;;  %v2322_v25 = vmul.f32 0.5, %v2315_v35  ;;  %v2327_v18 = vmul.f32 0.5, %v2317_v51 }
 0x697   :  { %v2163_v37 = vpop.f32.mrf.mxu0  ;;  %v2204_v40 = vpop.f32.mrf.mxu1 }
 0x698   :  { %3347 = vtanh.f32 %v2322_v25 }
 0x699   :  { %3349 = vtanh.f32 %v2316_v5 }
 0x6a3   :  { %v3346_v32 = vpop.eup %3345 }
 0x6a4   :  { %v2320_v36 = vmul.f32 0.5, %v3346_v32 }
 0x6a5   :  { %v3348_v17 = vpop.eup %3347 }
 0x6a6   :  { %v2321_v54 = vadd.f32 0.5, %v2320_v36  ;;  %v2324_v12 = vmul.f32 0.5, %v3348_v17  ;;  %v3350_v44 = vpop.eup %3349 }
 0x6a8   :  { %v2325_v53 = vadd.f32 0.5, %v2324_v12  ;;  %v2332_v11 = vmul.f32 %v3350_v44, %v2321_v54 }
 0x6aa   :  { %v2331_v59 = vmul.f32 %v2325_v53, %v4992_v62 }
 0x6ac   :  { %v5146_v19 = vadd.f32 %v2332_v11, %v2331_v59 }
 0x6d1   :  { %v2240_v21 = vpop.f32.mrf.mxu0  ;;  %v2281_v16 = vpop.f32.mrf.mxu1 }
 0x6d2   :  { %v2288_v60 = vadd.f32 %v2240_v21, %v4517_v39  ;;  %v2290_v54 = vadd.f32 %v2281_v16, %v4526_v13 }
 0x6d3   :  { %v2242_v47 = vpop.f32.mrf.mxu0  ;;  %v2283_v28 = vpop.f32.mrf.mxu1 }
 0x6d4   :  { %v2292_v35 = vmul.f32 0.5, %v2288_v60  ;;  %v2289_v5 = vadd.f32 %v2242_v47, %v4521_v63  ;;  %v2291_v62 = vadd.f32 %v2283_v28, %v4532_v33 }
 0x6d5   :  { %v2244_v32 = vpop.f32.mrf.mxu0  ;;  %v2285_v2 = vpop.f32.mrf.mxu1 }
 0x6d6   :  { %3351 = vtanh.f32 %v2292_v35  ;;  %v2296_v17 = vmul.f32 0.5, %v2289_v5  ;;  %v2301_v37 = vmul.f32 0.5, %v2291_v62 }
 0x6d7   :  { %v2245_v25 = vpop.f32.mrf.mxu0  ;;  %v2286_v40 = vpop.f32.mrf.mxu1 }
 0x6d8   :  { %3353 = vtanh.f32 %v2296_v17 }
 0x6d9   :  { %3355 = vtanh.f32 %v2290_v54 }
 0x6da   :  { %3357 = vtanh.f32 %v2327_v18 }
 0x6db   :  { %3359 = vtanh.f32 %v2301_v37  ;;  %v6399_v37 = vld [vmem:[#allocation108_spill] sm:$0xff] }
 0x6dc   :  { %3361 = vtanh.f32 %v5146_v19 }
 0x6e3   :  { %v3352_v36 = vpop.eup %3351 }
 0x6e4   :  { %v2294_v12 = vmul.f32 0.5, %v3352_v36  ;;  %v6400_v36 = vld [vmem:[#allocation109_spill] sm:$0xff] }
 0x6e5   :  { %v3354_v44 = vpop.eup %3353 }
 0x6e6   :  { %v2295_v53 = vadd.f32 0.5, %v2294_v12  ;;  %v2298_v11 = vmul.f32 0.5, %v3354_v44  ;;  %v3356_v21 = vpop.eup %3355  ;;  %v6401_v12 = vld [vmem:[#allocation110_spill] sm:$0xff]  ;;  %v6402_v44 = vld [vmem:[#allocation111_spill] sm:$0xff] }
 0x6e7   :  { %v3358_v51 = vpop.eup %3357 }
 0x6e8   :  { %v2299_v59 = vadd.f32 0.5, %v2298_v11  ;;  %v2306_v47 = vmul.f32 %v3356_v21, %v2295_v53  ;;  %v3360_v28 = vpop.eup %3359  ;;  %v2329_v35 = vmul.f32 0.5, %v3358_v51  ;;  %v6403_v53 = vld [vmem:[#allocation112_spill] sm:$0xff]  ;;  %v6404_v11 = vld [vmem:[#allocation113_spill] sm:$0xff]  ;;  %v6406_v21 = vld [vmem:[#allocation115_spill] sm:$0xff] }
 0x6e9   :  { %v2303_v5 = vmul.f32 0.5, %v3360_v28  ;;  %v3362_v32 = vpop.eup %3361  ;;  %v6409_v51 = vld [vmem:[#allocation118_spill] sm:$0xff]  ;;  %v6410_v28 = vld [vmem:[#allocation119_spill] sm:$0xff] }
 0x6ea   :  { %v2305_v60 = vmul.f32 %v2299_v59, %v5000_v52  ;;  %v2330_v2 = vadd.f32 0.5, %v2329_v35  ;;  %v6398_v52 = vld [vmem:[#allocation107_spill] sm:$0xff]  ;;  %v6405_v59 = vld [vmem:[#allocation114_spill] sm:$0xff]  ;;  %v6411_v35 = vld [vmem:[#allocation120_spill] sm:$0xff] }
 0x6eb   :  { %v2304_v17 = vadd.f32 0.5, %v2303_v5  ;;  %v6412_v5 = vld [vmem:[#allocation121_spill] sm:$0xff] }
 0x6ec   :  { %v5154_v16 = vadd.f32 %v2306_v47, %v2305_v60  ;;  %v2335_v40 = vmul.f32 %v3362_v32, %v2330_v2  ;;  %v6407_v60 = vld [vmem:[#allocation116_spill] sm:$0xff]  ;;  %v6408_v47 = vld [vmem:[#allocation117_spill] sm:$0xff]  ;;  %v6413_v32 = vld [vmem:[#allocation122_spill] sm:$0xff] }
 0x6ed   :  { %v6414_v2 = vld [vmem:[#allocation123_spill] sm:$0xff] }
 0x6ee   :  { %3363 = vtanh.f32 %v5154_v16  ;;  %v5157_v18 = vpack.c.bf16 %v2335_v40, %v2335_v40  ;;  %v6417_v40 = vld [vmem:[#allocation126_spill] sm:$0xff] }
 0x6fb   :  { %v3364_v25 = vpop.eup %3363 }
 0x6fc   :  { %v2309_v54 = vmul.f32 %v3364_v25, %v2304_v17  ;;  %v6415_v17 = vld [vmem:[#allocation124_spill] sm:$0xff]  ;;  %v6416_v25 = vld [vmem:[#allocation125_spill] sm:$0xff] }
 0x6fe   :  { %v2337_v62 = vpack.c.bf16 %v2309_v54, %v2309_v54  ;;  %v6418_v54 = vld [vmem:[#allocation127_spill] sm:$0xff] }
 0x700   :  { %2370 = vmatprep.mubr.bf16.mxu0 %v2337_v62  ;;  %2411 = vmatprep.mubr.bf16.mxu1 %v2337_v62 }
 0x701   :  { %2371 = vmatmul.mubr.bf16.vlgmr.msra.gmra.mxu0 %v5157_v18  ;;  %2412 = vmatmul.mubr.bf16.vlgmr.msra.gmra.mxu1 %v5157_v18 }
 0x702   :  { %2421 = vmatpush1.bf16.msra.mxu0 %v5999_v27  ;;  %2462 = vmatpush1.bf16.msra.mxu1 %v6000_v0 }
 0x703   :  { %2452 = vmatprep.mubr.bf16.mxu0 %v2337_v62  ;;  %2493 = vmatprep.mubr.bf16.mxu1 %v2337_v62  ;;  %v6419_v62 = vld [vmem:[#allocation128_spill] sm:$0xff] }
 0x704   :  { %2422 = vmatprep.subr.bf16.mxu0 %v6001_v48  ;;  %2463 = vmatprep.subr.bf16.mxu1 %v6002_v29 }
 0x706   :  { %2423 = vmatpush1.bf16.msra.mxu0 %v6003_v34  ;;  %2464 = vmatpush1.bf16.msra.mxu1 %v6004_v55 }
 0x707   :  { %2424 = vmatprep.subr.bf16.mxu0 %v6095_v15  ;;  %2465 = vmatprep.subr.bf16.mxu1 %v6096_v8 }
 0x70a   :  { %2425 = vmatpush1.bf16.msra.mxu0 %v6097_v26  ;;  %2466 = vmatpush1.bf16.msra.mxu1 %v6098_v30 }
 0x70b   :  { %2426 = vmatprep.subr.bf16.mxu0 %v6099_v6  ;;  %2467 = vmatprep.subr.bf16.mxu1 %v6100_v9 }
 0x70e   :  { %2427 = vmatpush1.bf16.msra.mxu0 %v6101_v24  ;;  %2468 = vmatpush1.bf16.msra.mxu1 %v6102_v3 }
 0x70f   :  { %2428 = vmatprep.subr.bf16.mxu0 %v6103_v58  ;;  %2469 = vmatprep.subr.bf16.mxu1 %v6104_v61 }
 0x712   :  { %2429 = vmatpush1.bf16.msra.mxu0 %v6105_v14  ;;  %2470 = vmatpush1.bf16.msra.mxu1 %v6196_v7 }
 0x713   :  { %2430 = vmatprep.subr.bf16.mxu0 %v6197_v56  ;;  %2471 = vmatprep.subr.bf16.mxu1 %v6198_v49 }
 0x716   :  { %2431 = vmatpush1.bf16.msra.mxu0 %v6199_v50  ;;  %2472 = vmatpush1.bf16.msra.mxu1 %v6200_v23 }
 0x717   :  { %2432 = vmatprep.subr.bf16.mxu0 %v6201_v45  ;;  %2473 = vmatprep.subr.bf16.mxu1 %v6202_v46 }
 0x71a   :  { %2433 = vmatpush1.bf16.msra.mxu0 %v6203_v31  ;;  %2474 = vmatpush1.bf16.msra.mxu1 %v6204_v38 }
 0x71b   :  { %2434 = vmatprep.subr.bf16.mxu0 %v6205_v41  ;;  %2475 = vmatprep.subr.bf16.mxu1 %v6206_v1 }
 0x71e   :  { %2435 = vmatpush1.bf16.msra.mxu0 %v6207_v20  ;;  %2476 = vmatpush1.bf16.msra.mxu1 %v6208_v42 }
 0x71f   :  { %2436 = vmatprep.subr.bf16.mxu0 %v6209_v4  ;;  %2477 = vmatprep.subr.bf16.mxu1 %v6120_v10 }
 0x722   :  { %2437 = vmatpush2.bf16.msra.mxu0 %v6121_v57  ;;  %2478 = vmatpush2.bf16.msra.mxu1 %v6122_v22 }
 0x723   :  { %2438 = vmatprep.subr.bf16.mxu0 %v6398_v52  ;;  %2479 = vmatprep.subr.bf16.mxu1 %v6399_v37 }
 0x726   :  { %2439 = vmatpush2.bf16.msra.mxu0 %v6400_v36  ;;  %2480 = vmatpush2.bf16.msra.mxu1 %v6401_v12 }
 0x727   :  { %2440 = vmatprep.subr.bf16.mxu0 %v6402_v44  ;;  %2481 = vmatprep.subr.bf16.mxu1 %v6403_v53 }
 0x72a   :  { %2441 = vmatpush2.bf16.msra.mxu0 %v6404_v11  ;;  %2482 = vmatpush2.bf16.msra.mxu1 %v6405_v59 }
 0x72b   :  { %2442 = vmatprep.subr.bf16.mxu0 %v6406_v21  ;;  %2483 = vmatprep.subr.bf16.mxu1 %v6407_v60  ;;  %v6496_v21 = vld [vmem:[#allocation72_spill] sm:$0xff] }
 0x72e   :  { %2443 = vmatpush2.bf16.msra.mxu0 %v6408_v47  ;;  %2484 = vmatpush2.bf16.msra.mxu1 %v6409_v51  ;;  %v6420_v51 = vld [vmem:[#allocation129_spill] sm:$0xff]  ;;  %v6495_v47 = vld [vmem:[#allocation151_spill] sm:$0xff] }
 0x72f   :  { %2444 = vmatprep.subr.bf16.mxu0 %v6410_v28  ;;  %2485 = vmatprep.subr.bf16.mxu1 %v6411_v35  ;;  %v6421_v28 = vld [vmem:[#allocation130_spill] sm:$0xff]  ;;  %v6422_v35 = vld [vmem:[#allocation131_spill] sm:$0xff] }
 0x732   :  { %2445 = vmatpush2.bf16.msra.mxu0 %v6412_v5  ;;  %2486 = vmatpush2.bf16.msra.mxu1 %v6413_v32  ;;  %v6423_v5 = vld [vmem:[#allocation132_spill] sm:$0xff]  ;;  %v6424_v32 = vld [vmem:[#allocation133_spill] sm:$0xff] }
 0x733   :  { %2446 = vmatprep.subr.bf16.mxu0 %v6414_v2  ;;  %2487 = vmatprep.subr.bf16.mxu1 %v6415_v17  ;;  %v6425_v2 = vld [vmem:[#allocation134_spill] sm:$0xff]  ;;  %v6426_v17 = vld [vmem:[#allocation3_spill] sm:$0xff] }
 0x736   :  { %2447 = vmatpush2.bf16.msra.mxu0 %v6416_v25  ;;  %2488 = vmatpush2.bf16.msra.mxu1 %v6417_v40  ;;  %v6427_v25 = vld [vmem:[#allocation4_spill] sm:$0xff] }
 0x737   :  { %2448 = vmatprep.subr.bf16.mxu0 %v6418_v54  ;;  %2489 = vmatprep.subr.bf16.mxu1 %v6419_v62  ;;  %v6428_v62 = vld [vmem:[#allocation5_spill] sm:$0xff]  ;;  %v6437_v54 = vld [vmem:[#allocation15_spill] sm:$0xff] }
 0x73a   :  { %2449 = vmatpush2.bf16.msra.mxu0 %v6420_v51  ;;  %2490 = vmatpush2.bf16.msra.mxu1 %v6421_v28  ;;  %v6429_v51 = vld [vmem:[#allocation7_spill] sm:$0xff]  ;;  %v6430_v28 = vld [vmem:[#allocation6_spill] sm:$0xff] }
 0x73b   :  { %2450 = vmatprep.subr.bf16.mxu0 %v6422_v35  ;;  %2491 = vmatprep.subr.bf16.mxu1 %v6423_v5  ;;  %v6431_v35 = vld [vmem:[#allocation8_spill] sm:$0xff]  ;;  %v6432_v5 = vld [vmem:[#allocation9_spill] sm:$0xff] }
 0x73e   :  { %2451 = vmatpush2.bf16.msra.mxu0 %v6424_v32  ;;  %2492 = vmatpush2.bf16.msra.mxu1 %v6425_v2  ;;  %v6433_v32 = vld [vmem:[#allocation11_spill] sm:$0xff]  ;;  %v6434_v2 = vld [vmem:[#allocation10_spill] sm:$0xff] }
 0x73f   :  { %2552 = vmatprep.subr.bf16.mxu0 %v6426_v17  ;;  %2593 = vmatprep.subr.bf16.mxu1 %v6427_v25  ;;  %v6435_v17 = vld [vmem:[#allocation12_spill] sm:$0xff]  ;;  %v6436_v25 = vld [vmem:[#allocation13_spill] sm:$0xff] }
 0x741   :  { %2453 = vmatmul.mubr.bf16.vlgmr.msra.gmra.mxu0 %v5157_v18  ;;  %2494 = vmatmul.mubr.bf16.vlgmr.msra.gmra.mxu1 %v5157_v18  ;;  %v6438_v18 = vld [vmem:[#allocation14_spill] sm:$0xff] }
 0x742   :  { %2553 = vmatpush1.bf16.msra.mxu0 %v6428_v62  ;;  %2594 = vmatpush1.bf16.msra.mxu1 %v6429_v51  ;;  %v6439_v62 = vld [vmem:[#allocation16_spill] sm:$0xff]  ;;  %v6440_v51 = vld [vmem:[#allocation17_spill] sm:$0xff] }
 0x743   :  { %2554 = vmatprep.subr.bf16.mxu0 %v6430_v28  ;;  %2595 = vmatprep.subr.bf16.mxu1 %v6431_v35  ;;  %v6441_v28 = vld [vmem:[#allocation19_spill] sm:$0xff]  ;;  %v6442_v35 = vld [vmem:[#allocation18_spill] sm:$0xff] }
 0x746   :  { %2555 = vmatpush1.bf16.msra.mxu0 %v6432_v5  ;;  %2596 = vmatpush1.bf16.msra.mxu1 %v6433_v32  ;;  %v6443_v5 = vld [vmem:[#allocation20_spill] sm:$0xff]  ;;  %v6444_v32 = vld [vmem:[#allocation21_spill] sm:$0xff] }
 0x747   :  { %2556 = vmatprep.subr.bf16.mxu0 %v6434_v2  ;;  %2597 = vmatprep.subr.bf16.mxu1 %v6435_v17  ;;  %v6445_v2 = vld [vmem:[#allocation22_spill] sm:$0xff]  ;;  %v6446_v17 = vld [vmem:[#allocation23_spill] sm:$0xff] }
 0x74a   :  { %2557 = vmatpush1.bf16.msra.mxu0 %v6436_v25  ;;  %2598 = vmatpush1.bf16.msra.mxu1 %v6437_v54  ;;  %v6447_v25 = vld [vmem:[#allocation24_spill] sm:$0xff]  ;;  %v6448_v54 = vld [vmem:[#allocation25_spill] sm:$0xff] }
 0x74b   :  { %2558 = vmatprep.subr.bf16.mxu0 %v6438_v18  ;;  %2599 = vmatprep.subr.bf16.mxu1 %v6439_v62  ;;  %v6449_v18 = vld [vmem:[#allocation26_spill] sm:$0xff]  ;;  %v6450_v62 = vld [vmem:[#allocation27_spill] sm:$0xff] }
 0x74e   :  { %2559 = vmatpush1.bf16.msra.mxu0 %v6440_v51  ;;  %2600 = vmatpush1.bf16.msra.mxu1 %v6441_v28  ;;  %v6451_v51 = vld [vmem:[#allocation28_spill] sm:$0xff]  ;;  %v6452_v28 = vld [vmem:[#allocation29_spill] sm:$0xff] }
 0x74f   :  { %2560 = vmatprep.subr.bf16.mxu0 %v6442_v35  ;;  %2601 = vmatprep.subr.bf16.mxu1 %v6443_v5  ;;  %v6453_v35 = vld [vmem:[#allocation30_spill] sm:$0xff]  ;;  %v6454_v5 = vld [vmem:[#allocation31_spill] sm:$0xff] }
 0x752   :  { %2561 = vmatpush1.bf16.msra.mxu0 %v6444_v32  ;;  %2602 = vmatpush1.bf16.msra.mxu1 %v6445_v2  ;;  %v6455_v32 = vld [vmem:[#allocation32_spill] sm:$0xff]  ;;  %v6456_v2 = vld [vmem:[#allocation33_spill] sm:$0xff] }
 0x753   :  { %2562 = vmatprep.subr.bf16.mxu0 %v6446_v17  ;;  %2603 = vmatprep.subr.bf16.mxu1 %v6447_v25  ;;  %v6457_v17 = vld [vmem:[#allocation34_spill] sm:$0xff]  ;;  %v6458_v25 = vld [vmem:[#allocation35_spill] sm:$0xff] }
 0x756   :  { %2563 = vmatpush1.bf16.msra.mxu0 %v6448_v54  ;;  %2604 = vmatpush1.bf16.msra.mxu1 %v6449_v18  ;;  %v6459_v54 = vld [vmem:[#allocation36_spill] sm:$0xff]  ;;  %v6460_v18 = vld [vmem:[#allocation37_spill] sm:$0xff] }
 0x757   :  { %2564 = vmatprep.subr.bf16.mxu0 %v6450_v62  ;;  %2605 = vmatprep.subr.bf16.mxu1 %v6451_v51  ;;  %v6461_v62 = vld [vmem:[#allocation38_spill] sm:$0xff]  ;;  %v6462_v51 = vld [vmem:[#allocation39_spill] sm:$0xff] }
 0x75a   :  { %2565 = vmatpush1.bf16.msra.mxu0 %v6452_v28  ;;  %2606 = vmatpush1.bf16.msra.mxu1 %v6453_v35  ;;  %v6463_v28 = vld [vmem:[#allocation40_spill] sm:$0xff]  ;;  %v6464_v35 = vld [vmem:[#allocation41_spill] sm:$0xff] }
 0x75b   :  { %2566 = vmatprep.subr.bf16.mxu0 %v6454_v5  ;;  %2607 = vmatprep.subr.bf16.mxu1 %v6455_v32  ;;  %v6465_v5 = vld [vmem:[#allocation42_spill] sm:$0xff]  ;;  %v6466_v32 = vld [vmem:[#allocation43_spill] sm:$0xff] }
 0x75e   :  { %2567 = vmatpush1.bf16.msra.mxu0 %v6456_v2  ;;  %2608 = vmatpush1.bf16.msra.mxu1 %v6457_v17  ;;  %v6467_v2 = vld [vmem:[#allocation44_spill] sm:$0xff]  ;;  %v6468_v17 = vld [vmem:[#allocation45_spill] sm:$0xff] }
 0x75f   :  { %2568 = vmatprep.subr.bf16.mxu0 %v6458_v25  ;;  %2609 = vmatprep.subr.bf16.mxu1 %v6459_v54  ;;  %v6469_v25 = vld [vmem:[#allocation46_spill] sm:$0xff]  ;;  %v6470_v54 = vld [vmem:[#allocation47_spill] sm:$0xff] }
 0x762   :  { %2569 = vmatpush2.bf16.msra.mxu0 %v6460_v18  ;;  %2610 = vmatpush2.bf16.msra.mxu1 %v6461_v62  ;;  %v6471_v18 = vld [vmem:[#allocation48_spill] sm:$0xff]  ;;  %v6472_v62 = vld [vmem:[#allocation49_spill] sm:$0xff] }
 0x763   :  { %2570 = vmatprep.subr.bf16.mxu0 %v6462_v51  ;;  %2611 = vmatprep.subr.bf16.mxu1 %v6463_v28  ;;  %v6473_v51 = vld [vmem:[#allocation50_spill] sm:$0xff]  ;;  %v6474_v28 = vld [vmem:[#allocation51_spill] sm:$0xff] }
 0x766   :  { %2571 = vmatpush2.bf16.msra.mxu0 %v6464_v35  ;;  %2612 = vmatpush2.bf16.msra.mxu1 %v6465_v5  ;;  %v6475_v35 = vld [vmem:[#allocation52_spill] sm:$0xff]  ;;  %v6476_v5 = vld [vmem:[#allocation53_spill] sm:$0xff] }
 0x767   :  { %2572 = vmatprep.subr.bf16.mxu0 %v6466_v32  ;;  %2613 = vmatprep.subr.bf16.mxu1 %v6467_v2  ;;  %v6477_v32 = vld [vmem:[#allocation54_spill] sm:$0xff]  ;;  %v6478_v2 = vld [vmem:[#allocation55_spill] sm:$0xff] }
 0x76a   :  { %2573 = vmatpush2.bf16.msra.mxu0 %v6468_v17  ;;  %2614 = vmatpush2.bf16.msra.mxu1 %v6469_v25  ;;  %v6479_v17 = vld [vmem:[#allocation56_spill] sm:$0xff]  ;;  %v6480_v25 = vld [vmem:[#allocation57_spill] sm:$0xff] }
 0x76b   :  { %2574 = vmatprep.subr.bf16.mxu0 %v6470_v54  ;;  %2615 = vmatprep.subr.bf16.mxu1 %v6471_v18  ;;  %v6481_v54 = vld [vmem:[#allocation58_spill] sm:$0xff]  ;;  %v6482_v18 = vld [vmem:[#allocation59_spill] sm:$0xff] }
 0x76e   :  { %2575 = vmatpush2.bf16.msra.mxu0 %v6472_v62  ;;  %2616 = vmatpush2.bf16.msra.mxu1 %v6473_v51  ;;  %v6483_v62 = vld [vmem:[#allocation60_spill] sm:$0xff]  ;;  %v6484_v51 = vld [vmem:[#allocation61_spill] sm:$0xff] }
 0x76f   :  { %2576 = vmatprep.subr.bf16.mxu0 %v6474_v28  ;;  %2617 = vmatprep.subr.bf16.mxu1 %v6475_v35  ;;  %v6485_v28 = vld [vmem:[#allocation62_spill] sm:$0xff]  ;;  %v6486_v35 = vld [vmem:[#allocation63_spill] sm:$0xff] }
 0x772   :  { %2577 = vmatpush2.bf16.msra.mxu0 %v6476_v5  ;;  %2618 = vmatpush2.bf16.msra.mxu1 %v6477_v32  ;;  %v6487_v5 = vld [vmem:[#allocation64_spill] sm:$0xff]  ;;  %v6488_v32 = vld [vmem:[#allocation65_spill] sm:$0xff] }
 0x773   :  { %2578 = vmatprep.subr.bf16.mxu0 %v6478_v2  ;;  %2619 = vmatprep.subr.bf16.mxu1 %v6479_v17  ;;  %v6489_v2 = vld [vmem:[#allocation66_spill] sm:$0xff]  ;;  %v6490_v17 = vld [vmem:[#allocation67_spill] sm:$0xff] }
 0x776   :  { %2579 = vmatpush2.bf16.msra.mxu0 %v6480_v25  ;;  %2620 = vmatpush2.bf16.msra.mxu1 %v6481_v54  ;;  %v6491_v25 = vld [vmem:[#allocation68_spill] sm:$0xff]  ;;  %v6492_v54 = vld [vmem:[#allocation71_spill] sm:$0xff] }
 0x777   :  { %2580 = vmatprep.subr.bf16.mxu0 %v6482_v18  ;;  %2621 = vmatprep.subr.bf16.mxu1 %v6483_v62  ;;  %v6493_v18 = vld [vmem:[#allocation152_spill] sm:$0xff]  ;;  %v6494_v62 = vld [vmem:[#allocation73_spill] sm:$0xff] }
 0x778   :  { %v341_v40 = vadd.f32 %v6493_v18, %v6492_v54 }
 0x77a   :  { %2581 = vmatpush2.bf16.msra.mxu0 %v6484_v51  ;;  %2622 = vmatpush2.bf16.msra.mxu1 %v6485_v28  ;;  %v414_v51 = vadd.f32 %v6495_v47, %v6494_v62 }
 0x77b   :  { %2582 = vmatprep.subr.bf16.mxu0 %v6486_v35  ;;  %2623 = vmatprep.subr.bf16.mxu1 %v6487_v5  ;;  %v6497_v35 = vld [vmem:[#allocation154_spill] sm:$0xff]  ;;  %v6498_v5 = vld [vmem:[#allocation153_spill] sm:$0xff] }
 0x77c   :  { %v343_v59 = vadd.f32 %v6497_v35, %v6496_v21 }
 0x77e   :  { %2583 = vmatpush2.bf16.msra.mxu0 %v6488_v32  ;;  %2624 = vmatpush2.bf16.msra.mxu1 %v6489_v2  ;;  %v416_v32 = vadd.f32 %v6498_v5, %v5998_v43  ;;  %v6529_v43 = vld [vmem:[#allocation67_spill] sm:$0xff] }
 0x77f   :  { %2634 = vmatprep.subr.bf16.mxu0 %v6490_v17  ;;  %2675 = vmatprep.subr.bf16.mxu1 %v6491_v25 }
 0x7c1   :  { %v2372_v60 = vpop.f32.mrf.mxu0  ;;  %v2413_v28 = vpop.f32.mrf.mxu1 }
 0x7c2   :  { %v2528_v11 = vadd.f32 %v2372_v60, %v341_v40  ;;  %v2530_v2 = vadd.f32 %v2413_v28, %v414_v51 }
 0x7c3   :  { %v2374_v53 = vpop.f32.mrf.mxu0  ;;  %v2415_v17 = vpop.f32.mrf.mxu1 }
 0x7c4   :  { %v2532_v44 = vmul.f32 0.5, %v2528_v11  ;;  %v2529_v25 = vadd.f32 %v2374_v53, %v343_v59  ;;  %v2531_v12 = vadd.f32 %v2415_v17, %v416_v32 }
 0x7c5   :  { %v2376_v36 = vpop.f32.mrf.mxu0  ;;  %v2417_v18 = vpop.f32.mrf.mxu1 }
 0x7c6   :  { %3365 = vtanh.f32 %v2532_v44  ;;  %v2536_v54 = vmul.f32 0.5, %v2529_v25  ;;  %v2541_v18 = vmul.f32 0.5, %v2531_v12 }
 0x7c7   :  { %v2377_v47 = vpop.f32.mrf.mxu0  ;;  %v2418_v62 = vpop.f32.mrf.mxu1 }
 0x7c8   :  { %3367 = vtanh.f32 %v2536_v54 }
 0x7c9   :  { %3369 = vtanh.f32 %v2530_v2 }
 0x7d3   :  { %v3366_v37 = vpop.eup %3365 }
 0x7d4   :  { %v2534_v35 = vmul.f32 0.5, %v3366_v37 }
 0x7d5   :  { %v3368_v21 = vpop.eup %3367 }
 0x7d6   :  { %v2535_v52 = vadd.f32 0.5, %v2534_v35  ;;  %v2538_v5 = vmul.f32 0.5, %v3368_v21  ;;  %v3370_v60 = vpop.eup %3369 }
 0x7d8   :  { %v2539_v40 = vadd.f32 0.5, %v2538_v5  ;;  %v2546_v51 = vmul.f32 %v3370_v60, %v2535_v52 }
 0x7da   :  { %v2545_v11 = vmul.f32 %v2539_v40, %v5146_v19 }
 0x7dc   :  { %v5300_v53 = vadd.f32 %v2546_v51, %v2545_v11 }
 0x7de   :  { %6499 = vst [vmem:[#allocation69_spill] sm:$0xff] %v5300_v53 }
 0x801   :  { %v2454_v36 = vpop.f32.mrf.mxu0  ;;  %v2495_v59 = vpop.f32.mrf.mxu1 }
 0x802   :  { %v2502_v44 = vadd.f32 %v2454_v36, %v4517_v39  ;;  %v2504_v52 = vadd.f32 %v2495_v59, %v4526_v13  ;;  %v6525_v13 = vld [vmem:[#allocation131_spill] sm:$0xff]  ;;  %v6527_v39 = vld [vmem:[#allocation133_spill] sm:$0xff] }
 0x803   :  { %v2456_v17 = vpop.f32.mrf.mxu0  ;;  %v2497_v25 = vpop.f32.mrf.mxu1 }
 0x804   :  { %v2506_v54 = vmul.f32 0.5, %v2502_v44  ;;  %v2503_v62 = vadd.f32 %v2456_v17, %v4521_v63  ;;  %v2505_v19 = vadd.f32 %v2497_v25, %v4532_v33  ;;  %v6524_v33 = vld [vmem:[#allocation130_spill] sm:$0xff]  ;;  %v6526_v63 = vld [vmem:[#allocation132_spill] sm:$0xff] }
 0x805   :  { %v2458_v37 = vpop.f32.mrf.mxu0  ;;  %v2499_v28 = vpop.f32.mrf.mxu1 }
 0x806   :  { %3371 = vtanh.f32 %v2506_v54  ;;  %v2510_v21 = vmul.f32 0.5, %v2503_v62  ;;  %v2515_v47 = vmul.f32 0.5, %v2505_v19 }
 0x807   :  { %v2459_v32 = vpop.f32.mrf.mxu0  ;;  %v2500_v2 = vpop.f32.mrf.mxu1 }
 0x808   :  { %3373 = vtanh.f32 %v2510_v21 }
 0x809   :  { %3375 = vtanh.f32 %v2504_v52 }
 0x80a   :  { %3377 = vtanh.f32 %v2541_v18 }
 0x80b   :  { %3379 = vtanh.f32 %v2515_v47  ;;  %v6502_v47 = vld [vmem:[#allocation108_spill] sm:$0xff] }
 0x80c   :  { %3381 = vtanh.f32 %v5300_v53  ;;  %v6528_v53 = vld [vmem:[#allocation134_spill] sm:$0xff] }
 0x813   :  { %v3372_v35 = vpop.eup %3371 }
 0x814   :  { %v2508_v5 = vmul.f32 0.5, %v3372_v35  ;;  %v6503_v35 = vld [vmem:[#allocation109_spill] sm:$0xff] }
 0x815   :  { %v3374_v60 = vpop.eup %3373 }
 0x816   :  { %v2509_v40 = vadd.f32 0.5, %v2508_v5  ;;  %v2512_v51 = vmul.f32 0.5, %v3374_v60  ;;  %v3376_v36 = vpop.eup %3375  ;;  %v6504_v5 = vld [vmem:[#allocation110_spill] sm:$0xff]  ;;  %v6505_v60 = vld [vmem:[#allocation111_spill] sm:$0xff] }
 0x817   :  { %v3378_v12 = vpop.eup %3377 }
 0x818   :  { %v2513_v11 = vadd.f32 0.5, %v2512_v51  ;;  %v2520_v17 = vmul.f32 %v3376_v36, %v2509_v40  ;;  %v3380_v25 = vpop.eup %3379  ;;  %v2543_v54 = vmul.f32 0.5, %v3378_v12  ;;  %v6506_v40 = vld [vmem:[#allocation112_spill] sm:$0xff]  ;;  %v6507_v51 = vld [vmem:[#allocation113_spill] sm:$0xff]  ;;  %v6509_v36 = vld [vmem:[#allocation115_spill] sm:$0xff] }
 0x819   :  { %v2517_v62 = vmul.f32 0.5, %v3380_v25  ;;  %v3382_v37 = vpop.eup %3381  ;;  %v6512_v12 = vld [vmem:[#allocation118_spill] sm:$0xff]  ;;  %v6513_v25 = vld [vmem:[#allocation119_spill] sm:$0xff] }
 0x81a   :  { %v2519_v44 = vmul.f32 %v2513_v11, %v5154_v16  ;;  %v2544_v28 = vadd.f32 0.5, %v2543_v54  ;;  %v6501_v16 = vld [vmem:[#allocation107_spill] sm:$0xff]  ;;  %v6508_v11 = vld [vmem:[#allocation114_spill] sm:$0xff]  ;;  %v6514_v54 = vld [vmem:[#allocation120_spill] sm:$0xff] }
 0x81b   :  { %v2518_v21 = vadd.f32 0.5, %v2517_v62  ;;  %v6515_v62 = vld [vmem:[#allocation121_spill] sm:$0xff] }
 0x81c   :  { %v5308_v59 = vadd.f32 %v2520_v17, %v2519_v44  ;;  %v2549_v2 = vmul.f32 %v3382_v37, %v2544_v28  ;;  %v6510_v44 = vld [vmem:[#allocation116_spill] sm:$0xff]  ;;  %v6511_v17 = vld [vmem:[#allocation117_spill] sm:$0xff]  ;;  %v6516_v37 = vld [vmem:[#allocation122_spill] sm:$0xff] }
 0x81d   :  { %v6517_v28 = vld [vmem:[#allocation123_spill] sm:$0xff] }
 0x81e   :  { %6500 = vst [vmem:[#allocation70_spill] sm:$0xff] %v5308_v59  ;;  %3383 = vtanh.f32 %v5308_v59  ;;  %v5311_v18 = vpack.c.bf16 %v2549_v2, %v2549_v2  ;;  %v6520_v2 = vld [vmem:[#allocation126_spill] sm:$0xff]  ;;  %v6523_v59 = vld [vmem:[#allocation129_spill] sm:$0xff] }
 0x82b   :  { %v3384_v32 = vpop.eup %3383 }
 0x82c   :  { %v2523_v52 = vmul.f32 %v3384_v32, %v2518_v21  ;;  %v6518_v21 = vld [vmem:[#allocation124_spill] sm:$0xff]  ;;  %v6519_v32 = vld [vmem:[#allocation125_spill] sm:$0xff] }
 0x82e   :  { %v2551_v19 = vpack.c.bf16 %v2523_v52, %v2523_v52  ;;  %v6521_v52 = vld [vmem:[#allocation127_spill] sm:$0xff] }
 0x830   :  { %2584 = vmatprep.mubr.bf16.mxu0 %v2551_v19  ;;  %2625 = vmatprep.mubr.bf16.mxu1 %v2551_v19 }
 0x831   :  { %2585 = vmatmul.mubr.bf16.vlgmr.msra.gmra.mxu0 %v5311_v18  ;;  %2626 = vmatmul.mubr.bf16.vlgmr.msra.gmra.mxu1 %v5311_v18 }
 0x832   :  { %2635 = vmatpush1.bf16.msra.mxu0 %v5999_v27  ;;  %2676 = vmatpush1.bf16.msra.mxu1 %v6000_v0 }
 0x833   :  { %2666 = vmatprep.mubr.bf16.mxu0 %v2551_v19  ;;  %2707 = vmatprep.mubr.bf16.mxu1 %v2551_v19  ;;  %v6522_v19 = vld [vmem:[#allocation128_spill] sm:$0xff] }
 0x834   :  { %2636 = vmatprep.subr.bf16.mxu0 %v6001_v48  ;;  %2677 = vmatprep.subr.bf16.mxu1 %v6002_v29 }
 0x836   :  { %2637 = vmatpush1.bf16.msra.mxu0 %v6003_v34  ;;  %2678 = vmatpush1.bf16.msra.mxu1 %v6004_v55 }
 0x837   :  { %2638 = vmatprep.subr.bf16.mxu0 %v6095_v15  ;;  %2679 = vmatprep.subr.bf16.mxu1 %v6096_v8 }
 0x83a   :  { %2639 = vmatpush1.bf16.msra.mxu0 %v6097_v26  ;;  %2680 = vmatpush1.bf16.msra.mxu1 %v6098_v30 }
 0x83b   :  { %2640 = vmatprep.subr.bf16.mxu0 %v6099_v6  ;;  %2681 = vmatprep.subr.bf16.mxu1 %v6100_v9 }
 0x83e   :  { %2641 = vmatpush1.bf16.msra.mxu0 %v6101_v24  ;;  %2682 = vmatpush1.bf16.msra.mxu1 %v6102_v3 }
 0x83f   :  { %2642 = vmatprep.subr.bf16.mxu0 %v6103_v58  ;;  %2683 = vmatprep.subr.bf16.mxu1 %v6104_v61 }
 0x842   :  { %2643 = vmatpush1.bf16.msra.mxu0 %v6105_v14  ;;  %2684 = vmatpush1.bf16.msra.mxu1 %v6196_v7 }
 0x843   :  { %2644 = vmatprep.subr.bf16.mxu0 %v6197_v56  ;;  %2685 = vmatprep.subr.bf16.mxu1 %v6198_v49 }
 0x846   :  { %2645 = vmatpush1.bf16.msra.mxu0 %v6199_v50  ;;  %2686 = vmatpush1.bf16.msra.mxu1 %v6200_v23 }
 0x847   :  { %2646 = vmatprep.subr.bf16.mxu0 %v6201_v45  ;;  %2687 = vmatprep.subr.bf16.mxu1 %v6202_v46 }
 0x84a   :  { %2647 = vmatpush1.bf16.msra.mxu0 %v6203_v31  ;;  %2688 = vmatpush1.bf16.msra.mxu1 %v6204_v38 }
 0x84b   :  { %2648 = vmatprep.subr.bf16.mxu0 %v6205_v41  ;;  %2689 = vmatprep.subr.bf16.mxu1 %v6206_v1 }
 0x84e   :  { %2649 = vmatpush1.bf16.msra.mxu0 %v6207_v20  ;;  %2690 = vmatpush1.bf16.msra.mxu1 %v6208_v42 }
 0x84f   :  { %2650 = vmatprep.subr.bf16.mxu0 %v6209_v4  ;;  %2691 = vmatprep.subr.bf16.mxu1 %v6120_v10 }
 0x852   :  { %2651 = vmatpush2.bf16.msra.mxu0 %v6121_v57  ;;  %2692 = vmatpush2.bf16.msra.mxu1 %v6122_v22 }
 0x853   :  { %2652 = vmatprep.subr.bf16.mxu0 %v6501_v16  ;;  %2693 = vmatprep.subr.bf16.mxu1 %v6502_v47 }
 0x856   :  { %2653 = vmatpush2.bf16.msra.mxu0 %v6503_v35  ;;  %2694 = vmatpush2.bf16.msra.mxu1 %v6504_v5 }
 0x857   :  { %2654 = vmatprep.subr.bf16.mxu0 %v6505_v60  ;;  %2695 = vmatprep.subr.bf16.mxu1 %v6506_v40 }
 0x85a   :  { %2655 = vmatpush2.bf16.msra.mxu0 %v6507_v51  ;;  %2696 = vmatpush2.bf16.msra.mxu1 %v6508_v11 }
 0x85b   :  { %2656 = vmatprep.subr.bf16.mxu0 %v6509_v36  ;;  %2697 = vmatprep.subr.bf16.mxu1 %v6510_v44 }
 0x85e   :  { %2657 = vmatpush2.bf16.msra.mxu0 %v6511_v17  ;;  %2698 = vmatpush2.bf16.msra.mxu1 %v6512_v12 }
 0x85f   :  { %2658 = vmatprep.subr.bf16.mxu0 %v6513_v25  ;;  %2699 = vmatprep.subr.bf16.mxu1 %v6514_v54 }
 0x862   :  { %2659 = vmatpush2.bf16.msra.mxu0 %v6515_v62  ;;  %2700 = vmatpush2.bf16.msra.mxu1 %v6516_v37 }
 0x863   :  { %2660 = vmatprep.subr.bf16.mxu0 %v6517_v28  ;;  %2701 = vmatprep.subr.bf16.mxu1 %v6518_v21 }
 0x866   :  { %2661 = vmatpush2.bf16.msra.mxu0 %v6519_v32  ;;  %2702 = vmatpush2.bf16.msra.mxu1 %v6520_v2  ;;  %v6530_v32 = vld [vmem:[#allocation68_spill] sm:$0xff] }
 0x867   :  { %2662 = vmatprep.subr.bf16.mxu0 %v6521_v52  ;;  %2703 = vmatprep.subr.bf16.mxu1 %v6522_v19 }
 0x86a   :  { %2663 = vmatpush2.bf16.msra.mxu0 %v6523_v59  ;;  %2704 = vmatpush2.bf16.msra.mxu1 %v6524_v33 }
 0x86b   :  { %2664 = vmatprep.subr.bf16.mxu0 %v6525_v13  ;;  %2705 = vmatprep.subr.bf16.mxu1 %v6526_v63 }
 0x86e   :  { %2665 = vmatpush2.bf16.msra.mxu0 %v6527_v39  ;;  %2706 = vmatpush2.bf16.msra.mxu1 %v6528_v53 }
 0x86f   :  { %2766 = vmatprep.subr.bf16.mxu0 %v6529_v43  ;;  %2807 = vmatprep.subr.bf16.mxu1 %v6530_v32  ;;  %v6531_v43 = vld [vmem:[#allocation125_spill] sm:$0xff]  ;;  %v6544_v32 = vld [vmem:[#allocation162_spill] sm:$0xff] }
 0x871   :  { %2667 = vmatmul.mubr.bf16.vlgmr.msra.gmra.mxu0 %v5311_v18  ;;  %2708 = vmatmul.mubr.bf16.vlgmr.msra.gmra.mxu1 %v5311_v18 }
 0x872   :  { %2767 = vmatpush1.bf16.msra.mxu0 %v5999_v27  ;;  %2808 = vmatpush1.bf16.msra.mxu1 %v6000_v0  ;;  %v6532_v27 = vld [vmem:[#allocation71_spill] sm:$0xff]  ;;  %v6533_v0 = vld [vmem:[#allocation156_spill] sm:$0xff] }
 0x873   :  { %2768 = vmatprep.subr.bf16.mxu0 %v6001_v48  ;;  %2809 = vmatprep.subr.bf16.mxu1 %v6002_v29  ;;  %v345_v48 = vadd.f32 %v6533_v0, %v6532_v27  ;;  %v6534_v29 = vld [vmem:[#allocation73_spill] sm:$0xff] }
 0x876   :  { %2769 = vmatpush1.bf16.msra.mxu0 %v6003_v34  ;;  %2810 = vmatpush1.bf16.msra.mxu1 %v6004_v55  ;;  %v6535_v34 = vld [vmem:[#allocation155_spill] sm:$0xff] }
 0x877   :  { %2770 = vmatprep.subr.bf16.mxu0 %v6095_v15  ;;  %2811 = vmatprep.subr.bf16.mxu1 %v6096_v8  ;;  %v418_v55 = vadd.f32 %v6535_v34, %v6534_v29 }
 0x87a   :  { %2771 = vmatpush1.bf16.msra.mxu0 %v6097_v26  ;;  %2812 = vmatpush1.bf16.msra.mxu1 %v6098_v30  ;;  %v6536_v26 = vld [vmem:[#allocation72_spill] sm:$0xff]  ;;  %v6537_v30 = vld [vmem:[#allocation158_spill] sm:$0xff] }
 0x87b   :  { %2772 = vmatprep.subr.bf16.mxu0 %v6099_v6  ;;  %2813 = vmatprep.subr.bf16.mxu1 %v6100_v9  ;;  %v347_v6 = vadd.f32 %v6537_v30, %v6536_v26 }
 0x87e   :  { %2773 = vmatpush1.bf16.msra.mxu0 %v6101_v24  ;;  %2814 = vmatpush1.bf16.msra.mxu1 %v6102_v3 }
 0x87f   :  { %2774 = vmatprep.subr.bf16.mxu0 %v6103_v58  ;;  %2815 = vmatprep.subr.bf16.mxu1 %v6104_v61 }
 0x882   :  { %2775 = vmatpush1.bf16.msra.mxu0 %v6105_v14  ;;  %2816 = vmatpush1.bf16.msra.mxu1 %v6196_v7 }
 0x883   :  { %2776 = vmatprep.subr.bf16.mxu0 %v6197_v56  ;;  %2817 = vmatprep.subr.bf16.mxu1 %v6198_v49 }
 0x886   :  { %2777 = vmatpush1.bf16.msra.mxu0 %v6199_v50  ;;  %2818 = vmatpush1.bf16.msra.mxu1 %v6200_v23 }
 0x887   :  { %2778 = vmatprep.subr.bf16.mxu0 %v6201_v45  ;;  %2819 = vmatprep.subr.bf16.mxu1 %v6202_v46 }
 0x88a   :  { %2779 = vmatpush1.bf16.msra.mxu0 %v6203_v31  ;;  %2820 = vmatpush1.bf16.msra.mxu1 %v6204_v38 }
 0x88b   :  { %2780 = vmatprep.subr.bf16.mxu0 %v6205_v41  ;;  %2821 = vmatprep.subr.bf16.mxu1 %v6206_v1 }
 0x88e   :  { %2781 = vmatpush1.bf16.msra.mxu0 %v6207_v20  ;;  %2822 = vmatpush1.bf16.msra.mxu1 %v6208_v42  ;;  %v6540_v20 = vld [vmem:[#allocation69_spill] sm:$0xff] }
 0x88f   :  { %2782 = vmatprep.subr.bf16.mxu0 %v6209_v4  ;;  %2823 = vmatprep.subr.bf16.mxu1 %v6120_v10 }
 0x892   :  { %2783 = vmatpush2.bf16.msra.mxu0 %v6121_v57  ;;  %2824 = vmatpush2.bf16.msra.mxu1 %v6122_v22  ;;  %v6538_v57 = vld [vmem:[#allocation74_spill] sm:$0xff]  ;;  %v6539_v22 = vld [vmem:[#allocation157_spill] sm:$0xff] }
 0x893   :  { %2784 = vmatprep.subr.bf16.mxu0 %v6501_v16  ;;  %2825 = vmatprep.subr.bf16.mxu1 %v6502_v47  ;;  %v420_v7 = vadd.f32 %v6539_v22, %v6538_v57  ;;  %v3252_v57 = vld [vmem:[%s5503_s5 + $0x10] sm:$0xff]   ;;  %v3253_v22 = vld [vmem:[%s5503_s5 + $0x8] sm:$0xff]  }
 0x896   :  { %2785 = vmatpush2.bf16.msra.mxu0 %v6503_v35  ;;  %2826 = vmatpush2.bf16.msra.mxu1 %v6504_v5 }
 0x897   :  { %2786 = vmatprep.subr.bf16.mxu0 %v6505_v60  ;;  %2827 = vmatprep.subr.bf16.mxu1 %v6506_v40  ;;  %v6541_v60 = vld [vmem:[#allocation159_spill] sm:$0xff] }
 0x89a   :  { %2787 = vmatpush2.bf16.msra.mxu0 %v6507_v51  ;;  %2828 = vmatpush2.bf16.msra.mxu1 %v6508_v11 }
 0x89b   :  { %2788 = vmatprep.subr.bf16.mxu0 %v6509_v36  ;;  %2829 = vmatprep.subr.bf16.mxu1 %v6510_v44  ;;  %v6542_v44 = vld [vmem:[#allocation160_spill] sm:$0xff] }
 0x89e   :  { %2789 = vmatpush2.bf16.msra.mxu0 %v6511_v17  ;;  %2830 = vmatpush2.bf16.msra.mxu1 %v6512_v12 }
 0x89f   :  { %2790 = vmatprep.subr.bf16.mxu0 %v6513_v25  ;;  %2831 = vmatprep.subr.bf16.mxu1 %v6514_v54 }
 0x8a2   :  { %2791 = vmatpush2.bf16.msra.mxu0 %v6515_v62  ;;  %2832 = vmatpush2.bf16.msra.mxu1 %v6516_v37 }
 0x8a3   :  { %2792 = vmatprep.subr.bf16.mxu0 %v6517_v28  ;;  %2833 = vmatprep.subr.bf16.mxu1 %v6518_v21  ;;  %v6543_v28 = vld [vmem:[#allocation161_spill] sm:$0xff] }
 0x8a6   :  { %2793 = vmatpush2.bf16.msra.mxu0 %v6531_v43  ;;  %2834 = vmatpush2.bf16.msra.mxu1 %v6520_v2 }
 0x8a7   :  { %2794 = vmatprep.subr.bf16.mxu0 %v6521_v52  ;;  %2835 = vmatprep.subr.bf16.mxu1 %v6522_v19 }
 0x8aa   :  { %2795 = vmatpush2.bf16.msra.mxu0 %v6523_v59  ;;  %2836 = vmatpush2.bf16.msra.mxu1 %v6524_v33 }
 0x8ab   :  { %2796 = vmatprep.subr.bf16.mxu0 %v6525_v13  ;;  %2837 = vmatprep.subr.bf16.mxu1 %v6526_v63 }
 0x8ae   :  { %2797 = vmatpush2.bf16.msra.mxu0 %v6527_v39  ;;  %2838 = vmatpush2.bf16.msra.mxu1 %v6528_v53 }
 0x8f1   :  { %v2586_v15 = vpop.f32.mrf.mxu0  ;;  %v2627_v8 = vpop.f32.mrf.mxu1 }
 0x8f2   :  { %v2742_v33 = vadd.f32 %v2586_v15, %v345_v48  ;;  %v2744_v9 = vadd.f32 %v2627_v8, %v418_v55  ;;  %v6545_v55 = vld [vmem:[#allocation70_spill] sm:$0xff] }
 0x8f3   :  { %v2588_v13 = vpop.f32.mrf.mxu0  ;;  %v2629_v24 = vpop.f32.mrf.mxu1 }
 0x8f4   :  { %v2746_v63 = vmul.f32 0.5, %v2742_v33  ;;  %v2743_v3 = vadd.f32 %v2588_v13, %v347_v6  ;;  %v2745_v56 = vadd.f32 %v2629_v24, %v420_v7  ;;  %v3254_v7 = vld [vmem:[%s5503_s5] sm:$0xff]  }
 0x8f5   :  { %v2590_v39 = vpop.f32.mrf.mxu0  ;;  %v2631_v58 = vpop.f32.mrf.mxu1 }
 0x8f6   :  { %3385 = vtanh.f32 %v2746_v63  ;;  %v2750_v61 = vmul.f32 0.5, %v2743_v3  ;;  %v2755_v49 = vmul.f32 0.5, %v2745_v56  ;;  %v3247_v3 = vld [vmem:[%s5503_s5 + $0x38] sm:$0xff]   ;;  %v3417_v39 = vmov 0.0   ;;  %v3248_v58 = vld [vmem:[%s5503_s5 + $0x30] sm:$0xff]  }
 0x8f7   :  { %v2591_v14 = vpop.f32.mrf.mxu0  ;;  %v2632_v10 = vpop.f32.mrf.mxu1  ;;  %3171 = vmatprep.subr.bf16.mxu0 %v3417_v39 }
 0x8f8   :  { %3387 = vtanh.f32 %v2750_v61  ;;  %v3249_v61 = vld [vmem:[%s5503_s5 + $0x28] sm:$0xff]   ;;  %v3250_v14 = vld [vmem:[%s5503_s5 + $0x20] sm:$0xff]   ;;  %v3251_v10 = vld [vmem:[%s5503_s5 + $0x18] sm:$0xff]  }
 0x8f9   :  { %3389 = vtanh.f32 %v2744_v9 }
 0x8fa   :  { %3391 = vtanh.f32 %v2755_v49 }
 0x903   :  { %v3386_v50 = vpop.eup %3385 }
 0x904   :  { %v2748_v23 = vmul.f32 0.5, %v3386_v50 }
 0x905   :  { %v3388_v45 = vpop.eup %3387 }
 0x906   :  { %v2749_v46 = vadd.f32 0.5, %v2748_v23  ;;  %v2752_v31 = vmul.f32 0.5, %v3388_v45  ;;  %v3390_v38 = vpop.eup %3389 }
 0x907   :  { %v3392_v53 = vpop.eup %3391 }
 0x908   :  { %v2753_v41 = vadd.f32 0.5, %v2752_v31  ;;  %v2760_v1 = vmul.f32 %v3390_v38, %v2749_v46  ;;  %v2757_v59 = vmul.f32 0.5, %v3392_v53 }
 0x90a   :  { %v2759_v42 = vmul.f32 %v2753_v41, %v6540_v20  ;;  %v2758_v18 = vadd.f32 0.5, %v2757_v59 }
 0x90c   :  { %v2761_v4 = vadd.f32 %v2760_v1, %v2759_v42 }
 0x90e   :  { %3393 = vtanh.f32 %v2761_v4 }
 0x91b   :  { %v3394_v16 = vpop.eup %3393 }
 0x91c   :  { %v2763_v47 = vmul.f32 %v3394_v16, %v2758_v18 }
 0x91e   :  { %v2764_v63 = vpack.c.bf16 %v2763_v47, %v2763_v47 }
 0x931   :  { %v2668_v35 = vpop.f32.mrf.mxu0  ;;  %v2709_v5 = vpop.f32.mrf.mxu1 }
 0x932   :  { %v2716_v40 = vadd.f32 %v2668_v35, %v6541_v60  ;;  %v2718_v21 = vadd.f32 %v2709_v5, %v6543_v28 }
 0x933   :  { %v2670_v51 = vpop.f32.mrf.mxu0  ;;  %v2711_v11 = vpop.f32.mrf.mxu1 }
 0x934   :  { %v2720_v36 = vmul.f32 0.5, %v2716_v40  ;;  %v2717_v17 = vadd.f32 %v2670_v51, %v6542_v44  ;;  %v2719_v2 = vadd.f32 %v2711_v11, %v6544_v32 }
 0x935   :  { %v2672_v12 = vpop.f32.mrf.mxu0  ;;  %v2713_v25 = vpop.f32.mrf.mxu1 }
 0x936   :  { %3395 = vtanh.f32 %v2720_v36  ;;  %v2724_v54 = vmul.f32 0.5, %v2717_v17  ;;  %v2729_v52 = vmul.f32 0.5, %v2719_v2 }
 0x937   :  { %v2673_v62 = vpop.f32.mrf.mxu0  ;;  %v2714_v37 = vpop.f32.mrf.mxu1 }
 0x938   :  { %3397 = vtanh.f32 %v2724_v54  ;;  %v2870_v54 = vld [vmem:[%s5504_s7] sm:$0xff] }
 0x939   :  { %3399 = vtanh.f32 %v2718_v21  ;;  %v3153_v21 = vld [vmem:[%s5505_s6] ss:$0 sm:$0xff] }
 0x93a   :  { %3401 = vtanh.f32 %v2729_v52 }
 0x943   :  { %v3396_v19 = vpop.eup %3395 }
 0x944   :  { %v2722_v43 = vmul.f32 0.5, %v3396_v19 }
 0x945   :  { %v3398_v27 = vpop.eup %3397 }
 0x946   :  { %v2723_v0 = vadd.f32 0.5, %v2722_v43  ;;  %v2726_v48 = vmul.f32 0.5, %v3398_v27  ;;  %v3400_v34 = vpop.eup %3399 }
 0x947   :  { %v3402_v30 = vpop.eup %3401 }
 0x948   :  { %v2727_v29 = vadd.f32 0.5, %v2726_v48  ;;  %v2734_v8 = vmul.f32 %v3400_v34, %v2723_v0  ;;  %v2731_v6 = vmul.f32 0.5, %v3402_v30 }
 0x94a   :  { %v2733_v15 = vmul.f32 %v2727_v29, %v6545_v55  ;;  %v2732_v33 = vadd.f32 0.5, %v2731_v6 }
 0x94c   :  { %v5457_v26 = vadd.f32 %v2734_v8, %v2733_v15 }
 0x94e   :  { %3403 = vtanh.f32 %v5457_v26 }
 0x95b   :  { %v3404_v9 = vpop.eup %3403 }
 0x95c   :  { %v2737_v13 = vmul.f32 %v3404_v9, %v2732_v33 }
 0x95e   :  { %v2765_v24 = vpack.c.bf16 %v2737_v13, %v2737_v13 }
 0x960   :  { %2798 = vmatprep.mubr.bf16.mxu0 %v2765_v24  ;;  %2839 = vmatprep.mubr.bf16.mxu1 %v2765_v24 }
 0x961   :  { %2799 = vmatmul.mubr.bf16.vlgmr.msra.gmra.mxu0 %v2764_v63  ;;  %2840 = vmatmul.mubr.bf16.vlgmr.msra.gmra.mxu1 %v2764_v63 }
 0x962   :  { %3172 = vmatpush3.bf16.msra.mxu0 %v3247_v3  ;;  %3187 = vmatprep.mubr.msk.bf16.mxu0 %vm3418_vm0, %v3417_v39 }
 0x963   :  { %3173 = vmatprep.subr.bf16.mxu0 %v3417_v39 }
 0x966   :  { %3174 = vmatpush3.bf16.msra.mxu0 %v3248_v58 }
 0x967   :  { %3175 = vmatprep.subr.bf16.mxu0 %v3417_v39 }
 0x96a   :  { %3176 = vmatpush3.bf16.msra.mxu0 %v3249_v61 }
 0x96b   :  { %3177 = vmatprep.subr.bf16.mxu0 %v3417_v39 }
 0x96e   :  { %3178 = vmatpush3.bf16.msra.mxu0 %v3250_v14 }
 0x96f   :  { %3179 = vmatprep.subr.bf16.mxu0 %v3417_v39 }
 0x972   :  { %3180 = vmatpush3.bf16.msra.mxu0 %v3251_v10 }
 0x973   :  { %3181 = vmatprep.subr.bf16.mxu0 %v3417_v39 }
 0x976   :  { %3182 = vmatpush3.bf16.msra.mxu0 %v3252_v57 }
 0x977   :  { %3183 = vmatprep.subr.bf16.mxu0 %v3417_v39 }
 0x97a   :  { %3184 = vmatpush3.bf16.msra.mxu0 %v3253_v22 }
 0x97b   :  { %3185 = vmatprep.subr.bf16.mxu0 %v3417_v39 }
 0x97e   :  { %3186 = vmatpush3.bf16.msra.mxu0 %v3254_v7 }
 0xa21   :  { %v2800_v56 = vpop.f32.mrf.mxu0  ;;  %v2841_v49 = vpop.f32.mrf.mxu1 }
 0xa22   :  { %v2848_v50 = vadd.f32 %v2800_v56, %v6541_v60  ;;  %v2850_v4 = vadd.f32 %v2841_v49, %v6543_v28 }
 0xa23   :  { %v2802_v23 = vpop.f32.mrf.mxu0  ;;  %v2843_v45 = vpop.f32.mrf.mxu1 }
 0xa24   :  { %v2852_v46 = vmul.f32 0.5, %v2848_v50  ;;  %v2849_v31 = vadd.f32 %v2802_v23, %v6542_v44  ;;  %v2851_v53 = vadd.f32 %v2843_v45, %v6544_v32 }
 0xa25   :  { %v2804_v38 = vpop.f32.mrf.mxu0  ;;  %v2845_v41 = vpop.f32.mrf.mxu1 }
 0xa26   :  { %3405 = vtanh.f32 %v2852_v46  ;;  %v2856_v1 = vmul.f32 0.5, %v2849_v31  ;;  %v2861_v59 = vmul.f32 0.5, %v2851_v53 }
 0xa27   :  { %v2805_v20 = vpop.f32.mrf.mxu0  ;;  %v2846_v42 = vpop.f32.mrf.mxu1 }
 0xa28   :  { %3407 = vtanh.f32 %v2856_v1 }
 0xa29   :  { %3409 = vtanh.f32 %v2850_v4 }
 0xa2a   :  { %3411 = vtanh.f32 %v2861_v59 }
 0xa33   :  { %v3406_v18 = vpop.eup %3405 }
 0xa34   :  { %v2854_v16 = vmul.f32 0.5, %v3406_v18 }
 0xa35   :  { %v3408_v47 = vpop.eup %3407 }
 0xa36   :  { %v2855_v35 = vadd.f32 0.5, %v2854_v16  ;;  %v2858_v5 = vmul.f32 0.5, %v3408_v47  ;;  %v3410_v40 = vpop.eup %3409 }
 0xa37   :  { %v3412_v44 = vpop.eup %3411 }
 0xa38   :  { %v2859_v60 = vadd.f32 0.5, %v2858_v5  ;;  %v2866_v11 = vmul.f32 %v3410_v40, %v2855_v35  ;;  %v2863_v17 = vmul.f32 0.5, %v3412_v44 }
 0xa3a   :  { %v2865_v51 = vmul.f32 %v2859_v60, %v5457_v26  ;;  %v2864_v12 = vadd.f32 0.5, %v2863_v17 }
 0xa3c   :  { %v2867_v36 = vadd.f32 %v2866_v11, %v2865_v51 }
 0xa3e   :  { %3413 = vtanh.f32 %v2867_v36 }
 0xa4b   :  { %v3414_v25 = vpop.eup %3413 }
 0xa4c   :  { %v2869_v62 = vmul.f32 %v3414_v25, %v2864_v12 }
 0xa4e   :  { %v2871_v37 = vmul.f32 %v2870_v54, %v2869_v62 }
 0xa50   :  { %v2872_v28 = vpack.c.bf16 %v2871_v37, %v2871_v37 }
 0xa52   :  { %3188 = vmatmul.mubr.bf16.vlgmr.msra.gmra.mxu0 %v2872_v28 }
 0xb12   :  { %v2978_v32 = vpop.f32.mrf.mxu0 }
 0xb13   :  { %v2979_v2 = vadd.f32 %v3153_v21, %v2978_v32 }
 0xb14   :  { %v3189_v52 = vpop.f32.mrf.mxu0 }
 0xb15   :  { %2984 = vst [vmem:[%s5506_s8] sm:$0xff] %v2979_v2 }
 0xb16   :  { %v2981_v19 = vpop.f32.mrf.mxu0 }
 0xb18   :  { %v3190_v43 = vpop.f32.mrf.mxu0 }

</bundles_post_ra>
